<compile_context>
chip_gen: v7x
topology: tpu7x:2x2x1
jax: 0.10.0
libtpu: 0.0.40
codegen_flags: <defaults>
</compile_context>

<pallas_src>
import math

import jax
import jax.numpy as jnp
from jax.experimental import pallas as pl
from jax.experimental.pallas import tpu as pltpu


# ----------------------------------------------------------------------------
# Fixed geometry for the 3x32x32 inputs this model implies (LazyLinear -> 128).
# ----------------------------------------------------------------------------
CIN, HIN, WIN = 3, 32, 32
KH1 = KW1 = 15
PAD1 = 1
C1 = 16
OH1 = HIN + 2 * PAD1 - KH1 + 1          # 20
OW1 = WIN + 2 * PAD1 - KW1 + 1          # 20
PWID1 = WIN + 2 * PAD1                  # 34 padded width seen by the conv1 matmul
F1 = KH1 * CIN                          # 45 features per (oh, pw): (kh, ci)
F1P = 48                                # lane-tidy padded feature group

PK1, PS1 = 10, 2                        # pool1: 10x10, stride 2
Q1 = (OH1 - PK1) // PS1 + 1             # 6

KH2 = KW2 = 4
PAD2 = 1
C2 = 32
IW2 = Q1 + 2 * PAD2                     # 8 (pool1 output padded by 1)
OH2 = OW2 = IW2 - KH2 + 1               # 5

PK2, PS2 = 3, 2                         # pool2: 3x3, stride 2
Q2 = (OH2 - PK2) // PS2 + 1             # 2

NHID = 512
NOUT = 30
NOUTP = 128                             # lane-dense padded logits width


# ----------------------------------------------------------------------------
# One-time weight packing (block-Toeplitz conv matrices, fc permutes, padding)
# ----------------------------------------------------------------------------
def prepare_params(p):
    w1, b1, w2, b2 = p["w1"], p["b1"], p["w2"], p["b2"]

    # conv1 Toeplitz: rows = pw*48 + (kh*3+ci), cols = ow*16 + co.
    wk = w1.transpose(3, 2, 1, 0).reshape(KW1, F1, C1)                  # (kw, kh*ci, co)
    wk = jnp.pad(wk, ((0, 0), (0, F1P - F1), (0, 0)))                   # (15, 48, 16)
    cols = [jnp.pad(wk, ((ow, PWID1 - KW1 - ow), (0, 0), (0, 0)))       # (34, 48, 16)
            for ow in range(OW1)]
    w1big = jnp.stack(cols, axis=2).reshape(PWID1 * F1P, OW1 * C1)      # (1632, 320)
    b1t = jnp.tile(b1, OW1).reshape(1, -1)                              # (1, 320)

    # conv2 Toeplitz: rows = kh*128 + pw'*16 + ci (pw' over the padded 8-wide
    # pool1 row, so padding=1 is already baked in), cols = ow*32 + co.
    wk2 = w2.transpose(2, 3, 1, 0)                                      # (kh, kw, ci, co)
    blks = []
    for kh in range(KH2):
        cols2 = [jnp.pad(wk2[kh], ((ow, IW2 - KW2 - ow), (0, 0), (0, 0)))
                 for ow in range(OW2)]                                  # (8, 16, 32) each
        blks.append(jnp.stack(cols2, axis=2).reshape(IW2 * C1, OW2 * C2))   # (128, 160)
    w2big = jnp.stack(blks, axis=0).reshape(KH2 * IW2 * C1, OW2 * C2)   # (512, 160)
    b2t = jnp.tile(b2, OW2).reshape(1, -1)                              # (1, 160)

    # fc1: torch flatten order is (co, ph, pw); the kernel flattens (ph, pw, co).
    wfc1 = (p["wfc1"].reshape(C2, Q2, Q2, NHID)
                     .transpose(1, 2, 0, 3)
                     .reshape(C2 * Q2 * Q2, NHID))                      # (128, 512)

    # fc2: pad the 30 logits out to 128 lanes (lane-dense output store).
    wfc2 = jnp.pad(p["wfc2"], ((0, 0), (0, NOUTP - NOUT)))              # (512, 128)
    bfc2 = jnp.pad(p["bfc2"], ((0, NOUTP - NOUT),)).reshape(1, -1)

    return {
        "w1big": w1big.astype(jnp.bfloat16), "b1t": b1t.astype(jnp.float32),
        "w2big": w2big.astype(jnp.bfloat16), "b2t": b2t.astype(jnp.float32),
        "wfc1": wfc1.astype(jnp.bfloat16),
        "bfc1": p["bfc1"].reshape(1, -1).astype(jnp.float32),
        "wfc2": wfc2.astype(jnp.bfloat16), "bfc2": bfc2.astype(jnp.float32),
    }


def _conv1_strips(x):
    """kh-only im2col: (N, 3, 32, 32) -> (N*20, 34*48) bf16 (~65 KiB/image).

    Row = (n, oh); lane = pw*48 + (kh*3 + ci).  The kw unrolling lives in the
    block-Toeplitz weight, so this is ~9x less HBM traffic than a full im2col."""
    N = x.shape[0]
    xp = jnp.pad(x.astype(jnp.bfloat16),
                 ((0, 0), (0, 0), (PAD1, PAD1), (PAD1, PAD1)))           # (N,3,34,34)
    s = jnp.stack([xp[:, :, kh:kh + OH1, :] for kh in range(KH1)], axis=1)  # (N,15,3,20,34)
    s = s.transpose(0, 3, 4, 1, 2).reshape(N, OH1, PWID1, F1)            # (N,20,34,45)
    s = jnp.pad(s, ((0, 0), (0, 0), (0, 0), (0, F1P - F1)))              # (N,20,34,48)
    return s.reshape(N * OH1, PWID1 * F1P)


# ----------------------------------------------------------------------------
# Fused forward: one pallas_call, grid over batch blocks of B images
# ----------------------------------------------------------------------------
def _make_kernel(B):
    def kernel(lhs1_ref, w1_ref, b1_ref, w2_ref, b2_ref,
               wf1_ref, bf1_ref, wf2_ref, bf2_ref, out_ref):
        f32 = jnp.float32

        # ---- conv1 + bias + relu: ONE matmul --------------------------------
        h1 = jnp.dot(lhs1_ref[...], w1_ref[...], preferred_element_type=f32)
        h1 = jnp.maximum(h1 + b1_ref[...], 0.0)          # (B*20, 320) lanes=(ow,co)

        # ---- pool1 width pass (window 10, stride 2 over ow) -----------------
        pairs = [jnp.maximum(h1[:, 32 * e:32 * e + 16],
                             h1[:, 32 * e + 16:32 * e + 32])
                 for e in range(OW1 // 2)]                # 10 pair maxima (B*20, 16)
        wcols = []
        for j in range(Q1):
            m = pairs[j]
            for t in range(1, PK1 // 2):
                m = jnp.maximum(m, pairs[j + t])
            wcols.append(m)
        u1 = jnp.concatenate(wcols, axis=-1)              # (B*20, 96) lanes=(pw,co)

        # ---- pool1 height pass + conv2 lhs assembly, per image --------------
        zl = jnp.zeros((Q1, C1), f32)
        zt = jnp.zeros((1, IW2 * C1), f32)
        lhs2_rows = []
        for b in range(B):
            rows = [jnp.max(u1[b * OH1 + PS1 * i: b * OH1 + PS1 * i + PK1, :],
                            axis=0, keepdims=True) for i in range(Q1)]
            p1 = jnp.concatenate(rows, axis=0)            # (6, 96)
            p1 = jnp.concatenate([zl, p1, zl], axis=-1)   # (6, 128)  width pad=1
            p1 = jnp.concatenate([zt, p1, zt], axis=0)    # (8, 128)  height pad=1
            # kh-im2col over padded rows: lane = kh*128 + pw'*16 + ci
            lhs2_rows.append(jnp.concatenate(
                [p1[kh:kh + OH2, :] for kh in range(KH2)], axis=-1))  # (5, 512)
        lhs2 = jnp.concatenate(lhs2_rows, axis=0).astype(jnp.bfloat16)  # (B*5, 512)

        # ---- conv2 + bias + relu: ONE matmul ---------------------------------
        h2 = jnp.dot(lhs2, w2_ref[...], preferred_element_type=f32)
        h2 = jnp.maximum(h2 + b2_ref[...], 0.0)           # (B*5, 160) lanes=(ow,co)

        # ---- pool2 (3x3, stride 2): width pass then height pass + flatten ----
        w2cols = []
        for j in range(Q2):
            m = h2[:, C2 * (PS2 * j): C2 * (PS2 * j) + C2]
            for t in range(1, PK2):
                m = jnp.maximum(m, h2[:, C2 * (PS2 * j + t): C2 * (PS2 * j + t) + C2])
            w2cols.append(m)
        u2 = jnp.concatenate(w2cols, axis=-1)             # (B*5, 64) lanes=(pw,co)

        flat_rows = []
        for b in range(B):
            chunks = [jnp.max(u2[b * OH2 + PS2 * i: b * OH2 + PS2 * i + PK2, :],
                              axis=0, keepdims=True) for i in range(Q2)]
            flat_rows.append(jnp.concatenate(chunks, axis=-1))  # (1, 128) (ph,pw,co)
        flat = jnp.concatenate(flat_rows, axis=0)         # (B, 128)

        # ---- fc1 + relu, fc2 --------------------------------------------------
        # TODO(synk): nn.Dropout(0.2) is train-time only; inference treats it as identity.
        z = jnp.dot(flat.astype(jnp.bfloat16), wf1_ref[...],
                    preferred_element_type=f32) + bf1_ref[...]
        z = jnp.maximum(z, 0.0)                           # (B, 512)
        z = jnp.dot(z.astype(jnp.bfloat16), wf2_ref[...],
                    preferred_element_type=f32) + bf2_ref[...]
        out_ref[...] = z                                  # (B, 128) lane-dense store
    return kernel


def net_forward(x, prep):
    N = x.shape[0]
    B = N if N <= 8 else 8                 # batch block per grid step
    npad = -(-N // B) * B
    if npad != N:
        x = jnp.pad(x, ((0, npad - N), (0, 0), (0, 0), (0, 0)))

    lhs1 = _conv1_strips(x)                               # (npad*20, 1632) bf16
    full = lambda n: (0, 0)

    flops = 2 * npad * (OH1 * (PWID1 * F1P) * (OW1 * C1)
                        + OH2 * (KH2 * IW2 * C1) * (OW2 * C2)
                        + (C2 * Q2 * Q2) * NHID + NHID * NOUTP)
    bytes_accessed = (lhs1.size * 2
                      + 2 * (prep["w1big"].size + prep["w2big"].size
                             + prep["wfc1"].size + prep["wfc2"].size)
                      + npad * NOUTP * 4)

    out = pl.pallas_call(
        _make_kernel(B),
        out_shape=jax.ShapeDtypeStruct((npad, NOUTP), jnp.float32),
        grid=(npad // B,),
        in_specs=[
            pl.BlockSpec((B * OH1, PWID1 * F1P), lambda n: (n, 0)),
            pl.BlockSpec(prep["w1big"].shape, full),
            pl.BlockSpec(prep["b1t"].shape, full),
            pl.BlockSpec(prep["w2big"].shape, full),
            pl.BlockSpec(prep["b2t"].shape, full),
            pl.BlockSpec(prep["wfc1"].shape, full),
            pl.BlockSpec(prep["bfc1"].shape, full),
            pl.BlockSpec(prep["wfc2"].shape, full),
            pl.BlockSpec(prep["bfc2"].shape, full),
        ],
        out_specs=pl.BlockSpec((B, NOUTP), lambda n: (n, 0)),
        compiler_params=pltpu.CompilerParams(dimension_semantics=("parallel",)),
        cost_estimate=pl.CostEstimate(flops=flops, transcendentals=0,
                                      bytes_accessed=bytes_accessed),
    )(lhs1, prep["w1big"], prep["b1t"], prep["w2big"], prep["b2t"],
      prep["wfc1"], prep["bfc1"], prep["wfc2"], prep["bfc2"])
    return out[:N, :NOUT]


# ----------------------------------------------------------------------------
# Deterministic parameter init (PyTorch-style uniform(-1/sqrt(fan_in), +))
# ----------------------------------------------------------------------------
def init_params(key):
    ks = jax.random.split(key, 8)

    def u(k, shape, fan_in):
        bnd = 1.0 / math.sqrt(fan_in)
        return jax.random.uniform(k, shape, jnp.float32, -bnd, bnd)

    fan1 = CIN * KH1 * KW1
    fan2 = C1 * KH2 * KW2
    fanf1 = C2 * Q2 * Q2        # LazyLinear in_features = 128 for 32x32 input
    fanf2 = NHID
    return {
        "w1": u(ks[0], (C1, CIN, KH1, KW1), fan1),
        "b1": u(ks[1], (C1,), fan1),
        "w2": u(ks[2], (C2, C1, KH2, KW2), fan2),
        "b2": u(ks[3], (C2,), fan2),
        "wfc1": u(ks[4], (fanf1, NHID), fanf1),   # (in, out), torch flatten row order
        "bfc1": u(ks[5], (NHID,), fanf1),
        "wfc2": u(ks[6], (NHID, NOUT), fanf2),
        "bfc2": u(ks[7], (NOUT,), fanf2),
    }


# ----------------------------------------------------------------------------
# Pure-JAX f32 reference (correctness sanity check)
# ----------------------------------------------------------------------------
def reference_forward(x, p):
    def conv(x, w, b, pad):
        y = jax.lax.conv_general_dilated(
            x, w, (1, 1), ((pad, pad), (pad, pad)),
            dimension_numbers=("NCHW", "OIHW", "NCHW"),
            precision=jax.lax.Precision.HIGHEST)
        return jnp.maximum(y + b[None, :, None, None], 0.0)

    def pool(x, k, s):
        return jax.lax.reduce_window(
            x, -jnp.inf, jax.lax.max, (1, 1, k, k), (1, 1, s, s), "VALID")

    y = pool(conv(x, p["w1"], p["b1"], 1), 10, 2)
    y = pool(conv(y, p["w2"], p["b2"], 1), 3, 2)
    y = y.reshape(y.shape[0], -1)
    y = jnp.maximum(
        jnp.dot(y, p["wfc1"], precision=jax.lax.Precision.HIGHEST) + p["bfc1"], 0.0)
    return jnp.dot(y, p["wfc2"], precision=jax.lax.Precision.HIGHEST) + p["bfc2"]


if __name__ == "__main__":
    key = jax.random.PRNGKey(0)
    kp, kx = jax.random.split(key)
    params = init_params(kp)
    x = jax.random.normal(kx, (2, CIN, HIN, WIN), jnp.float32)

    prep = prepare_params(params)            # one-time weight packing
    fwd = jax.jit(net_forward)
    out = jax.block_until_ready(fwd(x, prep))
    assert out.shape == (2, NOUT), out.shape

    ref = reference_forward(x, params)
    max_err = float(jnp.max(jnp.abs(out - ref)))
    # bf16 MXU operands with f32 accumulation => small, bounded mismatch vs f32 ref
    assert max_err < 5e-2, f"mismatch vs reference: {max_err}"

    print("KERNEL_OK")
</pallas_src>

<mosaic_0001>
module attributes {stable_mosaic.version = 11 : i64} {
  func.func @kernel(%arg0: i32, %arg1: memref<40x1632xbf16, #tpu.memory_space<vmem>>, %arg2: memref<1632x320xbf16, #tpu.memory_space<vmem>>, %arg3: memref<1x320xf32, #tpu.memory_space<vmem>>, %arg4: memref<512x160xbf16, #tpu.memory_space<vmem>>, %arg5: memref<1x160xf32, #tpu.memory_space<vmem>>, %arg6: memref<128x512xbf16, #tpu.memory_space<vmem>>, %arg7: memref<1x512xf32, #tpu.memory_space<vmem>>, %arg8: memref<512x128xbf16, #tpu.memory_space<vmem>>, %arg9: memref<1x128xf32, #tpu.memory_space<vmem>>, %arg10: memref<2x128xf32, #tpu.memory_space<vmem>>) attributes {dimension_semantics = [#tpu.dimension_semantics<parallel>], iteration_bounds = array<i64: 1>, scalar_prefetch = 0 : i64, scratch_operands = 0 : i64, tpu.core_type = #tpu.core_type<tc>, window_params = [{transform_indices = @transform_0, window_bounds = array<i64: 40, 1632>}, {pipeline_mode = #tpu.pipeline_mode<synchronous>, transform_indices = @transform_1, window_bounds = array<i64: 1632, 320>}, {pipeline_mode = #tpu.pipeline_mode<synchronous>, transform_indices = @transform_2, window_bounds = array<i64: 1, 320>}, {pipeline_mode = #tpu.pipeline_mode<synchronous>, transform_indices = @transform_3, window_bounds = array<i64: 512, 160>}, {pipeline_mode = #tpu.pipeline_mode<synchronous>, transform_indices = @transform_4, window_bounds = array<i64: 1, 160>}, {pipeline_mode = #tpu.pipeline_mode<synchronous>, transform_indices = @transform_5, window_bounds = array<i64: 128, 512>}, {pipeline_mode = #tpu.pipeline_mode<synchronous>, transform_indices = @transform_6, window_bounds = array<i64: 1, 512>}, {pipeline_mode = #tpu.pipeline_mode<synchronous>, transform_indices = @transform_7, window_bounds = array<i64: 512, 128>}, {pipeline_mode = #tpu.pipeline_mode<synchronous>, transform_indices = @transform_8, window_bounds = array<i64: 1, 128>}, {transform_indices = @transform_9, window_bounds = array<i64: 2, 128>}]} {
    %c0 = arith.constant 0 : index
    %c0_0 = arith.constant 0 : index
    %0 = vector.load %arg1[%c0, %c0_0] : memref<40x1632xbf16, #tpu.memory_space<vmem>>, vector<40x1632xbf16>
    %c0_1 = arith.constant 0 : index
    %c0_2 = arith.constant 0 : index
    %1 = vector.load %arg2[%c0_1, %c0_2] : memref<1632x320xbf16, #tpu.memory_space<vmem>>, vector<1632x320xbf16>
    %cst = arith.constant dense<0.000000e+00> : vector<40x320xf32>
    %2 = tpu.matmul %0, %1, %cst {dimension_numbers = #tpu.dot_dimension_numbers<[1], [0], [0], [1], [0, 0, 1, 1], [], []>} : vector<40x1632xbf16>, vector<1632x320xbf16>, vector<40x320xf32> -> vector<40x320xf32>
    %c0_3 = arith.constant 0 : index
    %c0_4 = arith.constant 0 : index
    %3 = vector.load %arg3[%c0_3, %c0_4] : memref<1x320xf32, #tpu.memory_space<vmem>>, vector<1x320xf32>
    %4 = vector.broadcast %3 : vector<1x320xf32> to vector<40x320xf32>
    %5 = arith.addf %2, %4 : vector<40x320xf32>
    %cst_5 = arith.constant 0.000000e+00 : f32
    %6 = vector.broadcast %cst_5 : f32 to vector<40x320xf32>
    %7 = arith.maximumf %5, %6 : vector<40x320xf32>
    %8 = vector.extract_strided_slice %7 {offsets = [0, 0], sizes = [40, 16], strides = [1, 1]} : vector<40x320xf32> to vector<40x16xf32>
    %9 = vector.extract_strided_slice %7 {offsets = [0, 16], sizes = [40, 16], strides = [1, 1]} : vector<40x320xf32> to vector<40x16xf32>
    %10 = arith.maximumf %8, %9 : vector<40x16xf32>
    %11 = vector.extract_strided_slice %7 {offsets = [0, 32], sizes = [40, 16], strides = [1, 1]} : vector<40x320xf32> to vector<40x16xf32>
    %12 = vector.extract_strided_slice %7 {offsets = [0, 48], sizes = [40, 16], strides = [1, 1]} : vector<40x320xf32> to vector<40x16xf32>
    %13 = arith.maximumf %11, %12 : vector<40x16xf32>
    %14 = vector.extract_strided_slice %7 {offsets = [0, 64], sizes = [40, 16], strides = [1, 1]} : vector<40x320xf32> to vector<40x16xf32>
    %15 = vector.extract_strided_slice %7 {offsets = [0, 80], sizes = [40, 16], strides = [1, 1]} : vector<40x320xf32> to vector<40x16xf32>
    %16 = arith.maximumf %14, %15 : vector<40x16xf32>
    %17 = vector.extract_strided_slice %7 {offsets = [0, 96], sizes = [40, 16], strides = [1, 1]} : vector<40x320xf32> to vector<40x16xf32>
    %18 = vector.extract_strided_slice %7 {offsets = [0, 112], sizes = [40, 16], strides = [1, 1]} : vector<40x320xf32> to vector<40x16xf32>
    %19 = arith.maximumf %17, %18 : vector<40x16xf32>
    %20 = vector.extract_strided_slice %7 {offsets = [0, 128], sizes = [40, 16], strides = [1, 1]} : vector<40x320xf32> to vector<40x16xf32>
    %21 = vector.extract_strided_slice %7 {offsets = [0, 144], sizes = [40, 16], strides = [1, 1]} : vector<40x320xf32> to vector<40x16xf32>
    %22 = arith.maximumf %20, %21 : vector<40x16xf32>
    %23 = vector.extract_strided_slice %7 {offsets = [0, 160], sizes = [40, 16], strides = [1, 1]} : vector<40x320xf32> to vector<40x16xf32>
    %24 = vector.extract_strided_slice %7 {offsets = [0, 176], sizes = [40, 16], strides = [1, 1]} : vector<40x320xf32> to vector<40x16xf32>
    %25 = arith.maximumf %23, %24 : vector<40x16xf32>
    %26 = vector.extract_strided_slice %7 {offsets = [0, 192], sizes = [40, 16], strides = [1, 1]} : vector<40x320xf32> to vector<40x16xf32>
    %27 = vector.extract_strided_slice %7 {offsets = [0, 208], sizes = [40, 16], strides = [1, 1]} : vector<40x320xf32> to vector<40x16xf32>
    %28 = arith.maximumf %26, %27 : vector<40x16xf32>
    %29 = vector.extract_strided_slice %7 {offsets = [0, 224], sizes = [40, 16], strides = [1, 1]} : vector<40x320xf32> to vector<40x16xf32>
    %30 = vector.extract_strided_slice %7 {offsets = [0, 240], sizes = [40, 16], strides = [1, 1]} : vector<40x320xf32> to vector<40x16xf32>
    %31 = arith.maximumf %29, %30 : vector<40x16xf32>
    %32 = vector.extract_strided_slice %7 {offsets = [0, 256], sizes = [40, 16], strides = [1, 1]} : vector<40x320xf32> to vector<40x16xf32>
    %33 = vector.extract_strided_slice %7 {offsets = [0, 272], sizes = [40, 16], strides = [1, 1]} : vector<40x320xf32> to vector<40x16xf32>
    %34 = arith.maximumf %32, %33 : vector<40x16xf32>
    %35 = vector.extract_strided_slice %7 {offsets = [0, 288], sizes = [40, 16], strides = [1, 1]} : vector<40x320xf32> to vector<40x16xf32>
    %36 = vector.extract_strided_slice %7 {offsets = [0, 304], sizes = [40, 16], strides = [1, 1]} : vector<40x320xf32> to vector<40x16xf32>
    %37 = arith.maximumf %35, %36 : vector<40x16xf32>
    %38 = arith.maximumf %10, %13 : vector<40x16xf32>
    %39 = arith.maximumf %38, %16 : vector<40x16xf32>
    %40 = arith.maximumf %39, %19 : vector<40x16xf32>
    %41 = arith.maximumf %40, %22 : vector<40x16xf32>
    %42 = arith.maximumf %13, %16 : vector<40x16xf32>
    %43 = arith.maximumf %42, %19 : vector<40x16xf32>
    %44 = arith.maximumf %43, %22 : vector<40x16xf32>
    %45 = arith.maximumf %44, %25 : vector<40x16xf32>
    %46 = arith.maximumf %16, %19 : vector<40x16xf32>
    %47 = arith.maximumf %46, %22 : vector<40x16xf32>
    %48 = arith.maximumf %47, %25 : vector<40x16xf32>
    %49 = arith.maximumf %48, %28 : vector<40x16xf32>
    %50 = arith.maximumf %19, %22 : vector<40x16xf32>
    %51 = arith.maximumf %50, %25 : vector<40x16xf32>
    %52 = arith.maximumf %51, %28 : vector<40x16xf32>
    %53 = arith.maximumf %52, %31 : vector<40x16xf32>
    %54 = arith.maximumf %22, %25 : vector<40x16xf32>
    %55 = arith.maximumf %54, %28 : vector<40x16xf32>
    %56 = arith.maximumf %55, %31 : vector<40x16xf32>
    %57 = arith.maximumf %56, %34 : vector<40x16xf32>
    %58 = arith.maximumf %25, %28 : vector<40x16xf32>
    %59 = arith.maximumf %58, %31 : vector<40x16xf32>
    %60 = arith.maximumf %59, %34 : vector<40x16xf32>
    %61 = arith.maximumf %60, %37 : vector<40x16xf32>
    %62 = tpu.concatenate %41, %45, %49, %53, %57, %61 in 1 : vector<40x16xf32>, vector<40x16xf32>, vector<40x16xf32>, vector<40x16xf32>, vector<40x16xf32>, vector<40x16xf32> -> vector<40x96xf32>
    %cst_6 = arith.constant 0.000000e+00 : f32
    %63 = vector.broadcast %cst_6 : f32 to vector<6x16xf32>
    %cst_7 = arith.constant 0.000000e+00 : f32
    %64 = vector.broadcast %cst_7 : f32 to vector<1x128xf32>
    %65 = vector.extract_strided_slice %62 {offsets = [0, 0], sizes = [10, 96], strides = [1, 1]} : vector<40x96xf32> to vector<10x96xf32>
    %cst_8 = arith.constant dense<0xFF800000> : vector<96xf32>
    %66 = vector.multi_reduction <maximumf>, %65, %cst_8 [0] : vector<10x96xf32> to vector<96xf32>
    %67 = vector.shape_cast %66 : vector<96xf32> to vector<1x96xf32>
    %68 = vector.extract_strided_slice %62 {offsets = [2, 0], sizes = [10, 96], strides = [1, 1]} : vector<40x96xf32> to vector<10x96xf32>
    %cst_9 = arith.constant dense<0xFF800000> : vector<96xf32>
    %69 = vector.multi_reduction <maximumf>, %68, %cst_9 [0] : vector<10x96xf32> to vector<96xf32>
    %70 = vector.shape_cast %69 : vector<96xf32> to vector<1x96xf32>
    %71 = vector.extract_strided_slice %62 {offsets = [4, 0], sizes = [10, 96], strides = [1, 1]} : vector<40x96xf32> to vector<10x96xf32>
    %cst_10 = arith.constant dense<0xFF800000> : vector<96xf32>
    %72 = vector.multi_reduction <maximumf>, %71, %cst_10 [0] : vector<10x96xf32> to vector<96xf32>
    %73 = vector.shape_cast %72 : vector<96xf32> to vector<1x96xf32>
    %74 = vector.extract_strided_slice %62 {offsets = [6, 0], sizes = [10, 96], strides = [1, 1]} : vector<40x96xf32> to vector<10x96xf32>
    %cst_11 = arith.constant dense<0xFF800000> : vector<96xf32>
    %75 = vector.multi_reduction <maximumf>, %74, %cst_11 [0] : vector<10x96xf32> to vector<96xf32>
    %76 = vector.shape_cast %75 : vector<96xf32> to vector<1x96xf32>
    %77 = vector.extract_strided_slice %62 {offsets = [8, 0], sizes = [10, 96], strides = [1, 1]} : vector<40x96xf32> to vector<10x96xf32>
    %cst_12 = arith.constant dense<0xFF800000> : vector<96xf32>
    %78 = vector.multi_reduction <maximumf>, %77, %cst_12 [0] : vector<10x96xf32> to vector<96xf32>
    %79 = vector.shape_cast %78 : vector<96xf32> to vector<1x96xf32>
    %80 = vector.extract_strided_slice %62 {offsets = [10, 0], sizes = [10, 96], strides = [1, 1]} : vector<40x96xf32> to vector<10x96xf32>
    %cst_13 = arith.constant dense<0xFF800000> : vector<96xf32>
    %81 = vector.multi_reduction <maximumf>, %80, %cst_13 [0] : vector<10x96xf32> to vector<96xf32>
    %82 = vector.shape_cast %81 : vector<96xf32> to vector<1x96xf32>
    %83 = tpu.concatenate %67, %70, %73, %76, %79, %82 in 0 : vector<1x96xf32>, vector<1x96xf32>, vector<1x96xf32>, vector<1x96xf32>, vector<1x96xf32>, vector<1x96xf32> -> vector<6x96xf32>
    %84 = tpu.concatenate %63, %83, %63 in 1 : vector<6x16xf32>, vector<6x96xf32>, vector<6x16xf32> -> vector<6x128xf32>
    %85 = tpu.concatenate %64, %84, %64 in 0 : vector<1x128xf32>, vector<6x128xf32>, vector<1x128xf32> -> vector<8x128xf32>
    %86 = vector.extract_strided_slice %85 {offsets = [0, 0], sizes = [5, 128], strides = [1, 1]} : vector<8x128xf32> to vector<5x128xf32>
    %87 = vector.extract_strided_slice %85 {offsets = [1, 0], sizes = [5, 128], strides = [1, 1]} : vector<8x128xf32> to vector<5x128xf32>
    %88 = vector.extract_strided_slice %85 {offsets = [2, 0], sizes = [5, 128], strides = [1, 1]} : vector<8x128xf32> to vector<5x128xf32>
    %89 = vector.extract_strided_slice %85 {offsets = [3, 0], sizes = [5, 128], strides = [1, 1]} : vector<8x128xf32> to vector<5x128xf32>
    %90 = tpu.concatenate %86, %87, %88, %89 in 1 : vector<5x128xf32>, vector<5x128xf32>, vector<5x128xf32>, vector<5x128xf32> -> vector<5x512xf32>
    %91 = vector.extract_strided_slice %62 {offsets = [20, 0], sizes = [10, 96], strides = [1, 1]} : vector<40x96xf32> to vector<10x96xf32>
    %cst_14 = arith.constant dense<0xFF800000> : vector<96xf32>
    %92 = vector.multi_reduction <maximumf>, %91, %cst_14 [0] : vector<10x96xf32> to vector<96xf32>
    %93 = vector.shape_cast %92 : vector<96xf32> to vector<1x96xf32>
    %94 = vector.extract_strided_slice %62 {offsets = [22, 0], sizes = [10, 96], strides = [1, 1]} : vector<40x96xf32> to vector<10x96xf32>
    %cst_15 = arith.constant dense<0xFF800000> : vector<96xf32>
    %95 = vector.multi_reduction <maximumf>, %94, %cst_15 [0] : vector<10x96xf32> to vector<96xf32>
    %96 = vector.shape_cast %95 : vector<96xf32> to vector<1x96xf32>
    %97 = vector.extract_strided_slice %62 {offsets = [24, 0], sizes = [10, 96], strides = [1, 1]} : vector<40x96xf32> to vector<10x96xf32>
    %cst_16 = arith.constant dense<0xFF800000> : vector<96xf32>
    %98 = vector.multi_reduction <maximumf>, %97, %cst_16 [0] : vector<10x96xf32> to vector<96xf32>
    %99 = vector.shape_cast %98 : vector<96xf32> to vector<1x96xf32>
    %100 = vector.extract_strided_slice %62 {offsets = [26, 0], sizes = [10, 96], strides = [1, 1]} : vector<40x96xf32> to vector<10x96xf32>
    %cst_17 = arith.constant dense<0xFF800000> : vector<96xf32>
    %101 = vector.multi_reduction <maximumf>, %100, %cst_17 [0] : vector<10x96xf32> to vector<96xf32>
    %102 = vector.shape_cast %101 : vector<96xf32> to vector<1x96xf32>
    %103 = vector.extract_strided_slice %62 {offsets = [28, 0], sizes = [10, 96], strides = [1, 1]} : vector<40x96xf32> to vector<10x96xf32>
    %cst_18 = arith.constant dense<0xFF800000> : vector<96xf32>
    %104 = vector.multi_reduction <maximumf>, %103, %cst_18 [0] : vector<10x96xf32> to vector<96xf32>
    %105 = vector.shape_cast %104 : vector<96xf32> to vector<1x96xf32>
    %106 = vector.extract_strided_slice %62 {offsets = [30, 0], sizes = [10, 96], strides = [1, 1]} : vector<40x96xf32> to vector<10x96xf32>
    %cst_19 = arith.constant dense<0xFF800000> : vector<96xf32>
    %107 = vector.multi_reduction <maximumf>, %106, %cst_19 [0] : vector<10x96xf32> to vector<96xf32>
    %108 = vector.shape_cast %107 : vector<96xf32> to vector<1x96xf32>
    %109 = tpu.concatenate %93, %96, %99, %102, %105, %108 in 0 : vector<1x96xf32>, vector<1x96xf32>, vector<1x96xf32>, vector<1x96xf32>, vector<1x96xf32>, vector<1x96xf32> -> vector<6x96xf32>
    %110 = tpu.concatenate %63, %109, %63 in 1 : vector<6x16xf32>, vector<6x96xf32>, vector<6x16xf32> -> vector<6x128xf32>
    %111 = tpu.concatenate %64, %110, %64 in 0 : vector<1x128xf32>, vector<6x128xf32>, vector<1x128xf32> -> vector<8x128xf32>
    %112 = vector.extract_strided_slice %111 {offsets = [0, 0], sizes = [5, 128], strides = [1, 1]} : vector<8x128xf32> to vector<5x128xf32>
    %113 = vector.extract_strided_slice %111 {offsets = [1, 0], sizes = [5, 128], strides = [1, 1]} : vector<8x128xf32> to vector<5x128xf32>
    %114 = vector.extract_strided_slice %111 {offsets = [2, 0], sizes = [5, 128], strides = [1, 1]} : vector<8x128xf32> to vector<5x128xf32>
    %115 = vector.extract_strided_slice %111 {offsets = [3, 0], sizes = [5, 128], strides = [1, 1]} : vector<8x128xf32> to vector<5x128xf32>
    %116 = tpu.concatenate %112, %113, %114, %115 in 1 : vector<5x128xf32>, vector<5x128xf32>, vector<5x128xf32>, vector<5x128xf32> -> vector<5x512xf32>
    %117 = tpu.concatenate %90, %116 in 0 : vector<5x512xf32>, vector<5x512xf32> -> vector<10x512xf32>
    %118 = arith.truncf %117 : vector<10x512xf32> to vector<10x512xbf16>
    %c0_20 = arith.constant 0 : index
    %c0_21 = arith.constant 0 : index
    %119 = vector.load %arg4[%c0_20, %c0_21] : memref<512x160xbf16, #tpu.memory_space<vmem>>, vector<512x160xbf16>
    %cst_22 = arith.constant dense<0.000000e+00> : vector<10x160xf32>
    %120 = tpu.matmul %118, %119, %cst_22 {dimension_numbers = #tpu.dot_dimension_numbers<[1], [0], [0], [1], [0, 0, 1, 1], [], []>} : vector<10x512xbf16>, vector<512x160xbf16>, vector<10x160xf32> -> vector<10x160xf32>
    %c0_23 = arith.constant 0 : index
    %c0_24 = arith.constant 0 : index
    %121 = vector.load %arg5[%c0_23, %c0_24] : memref<1x160xf32, #tpu.memory_space<vmem>>, vector<1x160xf32>
    %122 = vector.broadcast %121 : vector<1x160xf32> to vector<10x160xf32>
    %123 = arith.addf %120, %122 : vector<10x160xf32>
    %cst_25 = arith.constant 0.000000e+00 : f32
    %124 = vector.broadcast %cst_25 : f32 to vector<10x160xf32>
    %125 = arith.maximumf %123, %124 : vector<10x160xf32>
    %126 = vector.extract_strided_slice %125 {offsets = [0, 0], sizes = [10, 32], strides = [1, 1]} : vector<10x160xf32> to vector<10x32xf32>
    %127 = vector.extract_strided_slice %125 {offsets = [0, 32], sizes = [10, 32], strides = [1, 1]} : vector<10x160xf32> to vector<10x32xf32>
    %128 = arith.maximumf %126, %127 : vector<10x32xf32>
    %129 = vector.extract_strided_slice %125 {offsets = [0, 64], sizes = [10, 32], strides = [1, 1]} : vector<10x160xf32> to vector<10x32xf32>
    %130 = arith.maximumf %128, %129 : vector<10x32xf32>
    %131 = vector.extract_strided_slice %125 {offsets = [0, 64], sizes = [10, 32], strides = [1, 1]} : vector<10x160xf32> to vector<10x32xf32>
    %132 = vector.extract_strided_slice %125 {offsets = [0, 96], sizes = [10, 32], strides = [1, 1]} : vector<10x160xf32> to vector<10x32xf32>
    %133 = arith.maximumf %131, %132 : vector<10x32xf32>
    %134 = vector.extract_strided_slice %125 {offsets = [0, 128], sizes = [10, 32], strides = [1, 1]} : vector<10x160xf32> to vector<10x32xf32>
    %135 = arith.maximumf %133, %134 : vector<10x32xf32>
    %136 = tpu.concatenate %130, %135 in 1 : vector<10x32xf32>, vector<10x32xf32> -> vector<10x64xf32>
    %137 = vector.extract_strided_slice %136 {offsets = [0, 0], sizes = [3, 64], strides = [1, 1]} : vector<10x64xf32> to vector<3x64xf32>
    %cst_26 = arith.constant dense<0xFF800000> : vector<64xf32>
    %138 = vector.multi_reduction <maximumf>, %137, %cst_26 [0] : vector<3x64xf32> to vector<64xf32>
    %139 = vector.shape_cast %138 : vector<64xf32> to vector<1x64xf32>
    %140 = vector.extract_strided_slice %136 {offsets = [2, 0], sizes = [3, 64], strides = [1, 1]} : vector<10x64xf32> to vector<3x64xf32>
    %cst_27 = arith.constant dense<0xFF800000> : vector<64xf32>
    %141 = vector.multi_reduction <maximumf>, %140, %cst_27 [0] : vector<3x64xf32> to vector<64xf32>
    %142 = vector.shape_cast %141 : vector<64xf32> to vector<1x64xf32>
    %143 = tpu.concatenate %139, %142 in 1 : vector<1x64xf32>, vector<1x64xf32> -> vector<1x128xf32>
    %144 = vector.extract_strided_slice %136 {offsets = [5, 0], sizes = [3, 64], strides = [1, 1]} : vector<10x64xf32> to vector<3x64xf32>
    %cst_28 = arith.constant dense<0xFF800000> : vector<64xf32>
    %145 = vector.multi_reduction <maximumf>, %144, %cst_28 [0] : vector<3x64xf32> to vector<64xf32>
    %146 = vector.shape_cast %145 : vector<64xf32> to vector<1x64xf32>
    %147 = vector.extract_strided_slice %136 {offsets = [7, 0], sizes = [3, 64], strides = [1, 1]} : vector<10x64xf32> to vector<3x64xf32>
    %cst_29 = arith.constant dense<0xFF800000> : vector<64xf32>
    %148 = vector.multi_reduction <maximumf>, %147, %cst_29 [0] : vector<3x64xf32> to vector<64xf32>
    %149 = vector.shape_cast %148 : vector<64xf32> to vector<1x64xf32>
    %150 = tpu.concatenate %146, %149 in 1 : vector<1x64xf32>, vector<1x64xf32> -> vector<1x128xf32>
    %151 = tpu.concatenate %143, %150 in 0 : vector<1x128xf32>, vector<1x128xf32> -> vector<2x128xf32>
    %152 = arith.truncf %151 : vector<2x128xf32> to vector<2x128xbf16>
    %c0_30 = arith.constant 0 : index
    %c0_31 = arith.constant 0 : index
    %153 = vector.load %arg6[%c0_30, %c0_31] : memref<128x512xbf16, #tpu.memory_space<vmem>>, vector<128x512xbf16>
    %cst_32 = arith.constant dense<0.000000e+00> : vector<2x512xf32>
    %154 = tpu.matmul %152, %153, %cst_32 {dimension_numbers = #tpu.dot_dimension_numbers<[1], [0], [0], [1], [0, 0, 1, 1], [], []>} : vector<2x128xbf16>, vector<128x512xbf16>, vector<2x512xf32> -> vector<2x512xf32>
    %c0_33 = arith.constant 0 : index
    %c0_34 = arith.constant 0 : index
    %155 = vector.load %arg7[%c0_33, %c0_34] : memref<1x512xf32, #tpu.memory_space<vmem>>, vector<1x512xf32>
    %156 = vector.broadcast %155 : vector<1x512xf32> to vector<2x512xf32>
    %157 = arith.addf %154, %156 : vector<2x512xf32>
    %cst_35 = arith.constant 0.000000e+00 : f32
    %158 = vector.broadcast %cst_35 : f32 to vector<2x512xf32>
    %159 = arith.maximumf %157, %158 : vector<2x512xf32>
    %160 = arith.truncf %159 : vector<2x512xf32> to vector<2x512xbf16>
    %c0_36 = arith.constant 0 : index
    %c0_37 = arith.constant 0 : index
    %161 = vector.load %arg8[%c0_36, %c0_37] : memref<512x128xbf16, #tpu.memory_space<vmem>>, vector<512x128xbf16>
    %cst_38 = arith.constant dense<0.000000e+00> : vector<2x128xf32>
    %162 = tpu.matmul %160, %161, %cst_38 {dimension_numbers = #tpu.dot_dimension_numbers<[1], [0], [0], [1], [0, 0, 1, 1], [], []>} : vector<2x512xbf16>, vector<512x128xbf16>, vector<2x128xf32> -> vector<2x128xf32>
    %c0_39 = arith.constant 0 : index
    %c0_40 = arith.constant 0 : index
    %163 = vector.load %arg9[%c0_39, %c0_40] : memref<1x128xf32, #tpu.memory_space<vmem>>, vector<1x128xf32>
    %164 = vector.broadcast %163 : vector<1x128xf32> to vector<2x128xf32>
    %165 = arith.addf %162, %164 : vector<2x128xf32>
    %c0_41 = arith.constant 0 : index
    %c0_42 = arith.constant 0 : index
    %166 = vector.load %arg10[%c0_41, %c0_42] : memref<2x128xf32, #tpu.memory_space<vmem>>, vector<2x128xf32>
    tpu.vector_store %arg10[%c0_41, %c0_42], %165 {strides = array<i32>} : memref<2x128xf32, #tpu.memory_space<vmem>>, vector<2x128xf32>,
    return
  }
  func.func @transform_0(%arg0: i32) -> (i32, i32) {
    %c0_i32 = arith.constant 0 : i32
    %c0_i32_0 = arith.constant 0 : i32
    return %arg0, %c0_i32 : i32, i32
  }
  func.func @transform_1(%arg0: i32) -> (i32, i32) {
    %c0_i32 = arith.constant 0 : i32
    %c0_i32_0 = arith.constant 0 : i32
    %c0_i32_1 = arith.constant 0 : i32
    return %c0_i32, %c0_i32_0 : i32, i32
  }
  func.func @transform_2(%arg0: i32) -> (i32, i32) {
    %c0_i32 = arith.constant 0 : i32
    %c0_i32_0 = arith.constant 0 : i32
    %c0_i32_1 = arith.constant 0 : i32
    return %c0_i32, %c0_i32_0 : i32, i32
  }
  func.func @transform_3(%arg0: i32) -> (i32, i32) {
    %c0_i32 = arith.constant 0 : i32
    %c0_i32_0 = arith.constant 0 : i32
    %c0_i32_1 = arith.constant 0 : i32
    return %c0_i32, %c0_i32_0 : i32, i32
  }
  func.func @transform_4(%arg0: i32) -> (i32, i32) {
    %c0_i32 = arith.constant 0 : i32
    %c0_i32_0 = arith.constant 0 : i32
    %c0_i32_1 = arith.constant 0 : i32
    return %c0_i32, %c0_i32_0 : i32, i32
  }
  func.func @transform_5(%arg0: i32) -> (i32, i32) {
    %c0_i32 = arith.constant 0 : i32
    %c0_i32_0 = arith.constant 0 : i32
    %c0_i32_1 = arith.constant 0 : i32
    return %c0_i32, %c0_i32_0 : i32, i32
  }
  func.func @transform_6(%arg0: i32) -> (i32, i32) {
    %c0_i32 = arith.constant 0 : i32
    %c0_i32_0 = arith.constant 0 : i32
    %c0_i32_1 = arith.constant 0 : i32
    return %c0_i32, %c0_i32_0 : i32, i32
  }
  func.func @transform_7(%arg0: i32) -> (i32, i32) {
    %c0_i32 = arith.constant 0 : i32
    %c0_i32_0 = arith.constant 0 : i32
    %c0_i32_1 = arith.constant 0 : i32
    return %c0_i32, %c0_i32_0 : i32, i32
  }
  func.func @transform_8(%arg0: i32) -> (i32, i32) {
    %c0_i32 = arith.constant 0 : i32
    %c0_i32_0 = arith.constant 0 : i32
    %c0_i32_1 = arith.constant 0 : i32
    return %c0_i32, %c0_i32_0 : i32, i32
  }
  func.func @transform_9(%arg0: i32) -> (i32, i32) {
    %c0_i32 = arith.constant 0 : i32
    %c0_i32_0 = arith.constant 0 : i32
    return %arg0, %c0_i32 : i32, i32
  }
}

</mosaic_0001>

<bundles_post_ra>
// kernel: net_forward.1
= control target key start
LH: loop header
LB: loop body
LE: loop exit
PB: predicated region body
PF: predicated region fallthrough
CT: control target
= control target key end

     0   :  { %vm6698_vm0 = vmmov 0   ;;  %vm2301_vm1 = vcmask 785408   ;;  %s8708_s0 = inlined_call_operand.vmem [shape: bf16[40,1632], index: 0, kind: input, shape index: {}]   ;;  %s8709_s1 = inlined_call_operand.vmem [shape: bf16[1632,320], index: 1, kind: input, shape index: {}]   ;;  %s8710_s2 = inlined_call_operand.vmem [shape: f32[1,320], index: 2, kind: input, shape index: {}]   ;;  %s8711_s3 = inlined_call_operand.vmem [shape: bf16[512,160], index: 3, kind: input, shape index: {}]   ;;  %s8712_s4 = inlined_call_operand.vmem [shape: f32[1,160], index: 4, kind: input, shape index: {}]   ;;  %s8713_s5 = inlined_call_operand.vmem [shape: bf16[128,512], index: 5, kind: input, shape index: {}]   ;;  %s8714_s6 = inlined_call_operand.vmem [shape: f32[1,512], index: 6, kind: input, shape index: {}]   ;;  %s8715_s7 = inlined_call_operand.vmem [shape: bf16[512,128], index: 7, kind: input, shape index: {}]   ;;  %s8716_s8 = inlined_call_operand.vmem [shape: f32[1,128], index: 8, kind: input, shape index: {}]   ;;  %s8717_s9 = inlined_call_operand.hbm [shape: f32[2,128], index: 9, kind: output, shape index: {}]  }
   0x1   :  { %v6030_v0 = vld [vmem:[%s8709_s1 + $0x4] ss:$12 sps:$4 sm:$0xff]   ;;  %v6032_v1 = vld [vmem:[%s8709_s1] ss:$12 sps:$4 sm:$0xff]   ;;  %v6033_v2 = vld [vmem:[%s8709_s1 + $0x1c] ss:$12 sps:$4 sm:$0xff]  }
   0x2   :  { %2311 = vmatprep.subr.bf16.mxu0 %v6030_v0  ;;  %v6035_v3 = vld [vmem:[%s8709_s1 + $0x18] ss:$12 sps:$4 sm:$0xff]   ;;  %v6036_v4 = vld [vmem:[%s8709_s1 + $0x34] ss:$12 sps:$4 sm:$0xff]   ;;  %v6038_v5 = vld [vmem:[%s8709_s1 + $0x30] ss:$12 sps:$4 sm:$0xff]  }
   0x3   :  { %2312 = vmatpush1.bf16.msra.mxu0 %v6032_v1  ;;  %v6039_v6 = vld [vmem:[%s8709_s1 + $0x4c] ss:$12 sps:$4 sm:$0xff]   ;;  %v6041_v7 = vld [vmem:[%s8709_s1 + $0x48] ss:$12 sps:$4 sm:$0xff]   ;;  %v6042_v8 = vld [vmem:[%s8709_s1 + $0x64] ss:$12 sps:$4 sm:$0xff]  }
   0x4   :  { %2313 = vmatprep.subr.bf16.mxu0 %v6033_v2  ;;  %v6044_v9 = vld [vmem:[%s8709_s1 + $0x60] ss:$12 sps:$4 sm:$0xff]   ;;  %v6060_v10 = vld [vmem:[%s8709_s1 + $0xc8] ss:$12 sps:$4 sm:$0xff]   ;;  %v6047_v15 = vld [vmem:[%s8709_s1 + $0x78] ss:$12 sps:$4 sm:$0xff]  }
   0x5   :  { %v6061_v11 = vld [vmem:[%s8709_s1 + $0x8] ss:$12 sps:$4 sm:$0xff]   ;;  %5458 = vmatprep.subr.bf16.mxu1 %v6060_v10  ;;  %v6065_v13 = vld [vmem:[%s8709_s1 + $0xe0] ss:$12 sps:$4 sm:$0xff]   ;;  %v6070_v17 = vld [vmem:[%s8709_s1 + $0xf8] ss:$12 sps:$4 sm:$0xff]  }
   0x6   :  { %v6045_v12 = vld [vmem:[%s8709_s1 + $0x7c] ss:$12 sps:$4 sm:$0xff]   ;;  %5459 = vmatpush3.bf16.msra.mxu1 %v6061_v11  ;;  %v6066_v14 = vld [vmem:[%s8709_s1 + $0x20] ss:$12 sps:$4 sm:$0xff]   ;;  %v6071_v18 = vld [vmem:[%s8709_s1 + $0x38] ss:$12 sps:$4 sm:$0xff]  }
   0x7   :  { %2314 = vmatpush1.bf16.msra.mxu0 %v6035_v3  ;;  %v6048_v16 = vld [vmem:[%s8709_s1 + $0x94] ss:$12 sps:$4 sm:$0xff]   ;;  %5460 = vmatprep.subr.bf16.mxu1 %v6065_v13  ;;  %v6050_v19 = vld [vmem:[%s8709_s1 + $0x90] ss:$12 sps:$4 sm:$0xff]   ;;  %v6051_v20 = vld [vmem:[%s8709_s1 + $0xac] ss:$12 sps:$4 sm:$0xff]  }
   0x8   :  { %2315 = vmatprep.subr.bf16.mxu0 %v6036_v4  ;;  %v6075_v21 = vld [vmem:[%s8709_s1 + $0x110] ss:$12 sps:$4 sm:$0xff]   ;;  %v6053_v23 = vld [vmem:[%s8709_s1 + $0xa8] ss:$12 sps:$4 sm:$0xff]   ;;  %v6085_v27 = vld [vmem:[%s8709_s1 + $0x140] ss:$12 sps:$4 sm:$0xff]  }
   0x9   :  { %v6076_v22 = vld [vmem:[%s8709_s1 + $0x50] ss:$12 sps:$4 sm:$0xff]   ;;  %v6080_v24 = vld [vmem:[%s8709_s1 + $0x128] ss:$12 sps:$4 sm:$0xff]   ;;  %v6056_v28 = vld [vmem:[%s8709_s1 + $0xc0] ss:$12 sps:$4 sm:$0xff]  }
   0xa   :  { %5461 = vmatpush3.bf16.msra.mxu1 %v6066_v14  ;;  %v6054_v25 = vld [vmem:[%s8709_s1 + $0xc4] ss:$12 sps:$4 sm:$0xff]   ;;  %v6081_v26 = vld [vmem:[%s8709_s1 + $0x68] ss:$12 sps:$4 sm:$0xff]   ;;  %v6086_v30 = vld [vmem:[%s8709_s1 + $0x80] ss:$12 sps:$4 sm:$0xff]  }
   0xb   :  { %2316 = vmatpush1.bf16.msra.mxu0 %v6038_v5  ;;  %5462 = vmatprep.subr.bf16.mxu1 %v6070_v17  ;;  %v6057_v29 = vld [vmem:[%s8709_s1 + $0xdc] ss:$12 sps:$4 sm:$0xff]   ;;  %v6090_v31 = vld [vmem:[%s8709_s1 + $0x158] ss:$12 sps:$4 sm:$0xff]   ;;  %v6062_v33 = vld [vmem:[%s8709_s1 + $0xf4] ss:$12 sps:$4 sm:$0xff]  }
   0xc   :  { %2317 = vmatprep.subr.bf16.mxu0 %v6039_v6  ;;  %v6059_v32 = vld [vmem:[%s8709_s1 + $0xd8] ss:$12 sps:$4 sm:$0xff]   ;;  %v6098_v36 = vld [vmem:[%s8709_s1 + $0x170] ss:$12 sps:$4 sm:$0xff]   ;;  %v6103_v40 = vld [vmem:[%s8709_s1 + $0x248] ss:$12 sps:$4 sm:$0xff]  }
   0xd   :  { %v6094_v34 = vld [vmem:[%s8708_s0 + $0x4] ss:$52 sps:$4 sm:$0xff]   ;;  %v6064_v37 = vld [vmem:[%s8709_s1 + $0xf0] ss:$12 sps:$4 sm:$0xff]   ;;  %v6069_v41 = vld [vmem:[%s8709_s1 + $0x108] ss:$12 sps:$4 sm:$0xff]  }
   0xe   :  { %5463 = vmatpush3.bf16.msra.mxu1 %v6071_v18  ;;  %v6091_v35 = vld [vmem:[%s8709_s1 + $0x98] ss:$12 sps:$4 sm:$0xff]   ;;  %2343 = vmatprep.mubr.bf16.mxu0 %v6094_v34  ;;  %v6099_v39 = vld [vmem:[%s8709_s1 + $0xb0] ss:$12 sps:$4 sm:$0xff]   ;;  %v6092_v43 = vld [vmem:[%s8708_s0] ss:$52 sps:$4 sm:$0xff]  }
   0xf   :  { %2318 = vmatpush1.bf16.msra.mxu0 %v6041_v7  ;;  %5464 = vmatprep.subr.bf16.mxu1 %v6075_v21  ;;  %v6067_v38 = vld [vmem:[%s8709_s1 + $0x10c] ss:$12 sps:$4 sm:$0xff]   ;;  %v6072_v42 = vld [vmem:[%s8709_s1 + $0x124] ss:$12 sps:$4 sm:$0xff]   ;;  %v6104_v44 = vld [vmem:[%s8709_s1 + $0x188] ss:$12 sps:$4 sm:$0xff]  }
  0x10   :  { %2319 = vmatprep.subr.bf16.mxu0 %v6042_v8  ;;  %2770 = vmatprep.mubr.bf16.mxu1 %v6094_v34  ;;  %v6108_v45 = vld [vmem:[%s8709_s1 + $0x260] ss:$12 sps:$4 sm:$0xff]   ;;  %v6077_v47 = vld [vmem:[%s8709_s1 + $0x13c] ss:$12 sps:$4 sm:$0xff]   ;;  %v6113_v49 = vld [vmem:[%s8709_s1 + $0x278] ss:$12 sps:$4 sm:$0xff]  }
  0x11   :  { %v6074_v46 = vld [vmem:[%s8709_s1 + $0x120] ss:$12 sps:$4 sm:$0xff]   ;;  %v6079_v50 = vld [vmem:[%s8709_s1 + $0x138] ss:$12 sps:$4 sm:$0xff]   ;;  %v6084_v53 = vld [vmem:[%s8709_s1 + $0x150] ss:$12 sps:$4 sm:$0xff]  }
  0x12   :  { %5465 = vmatpush3.bf16.msra.mxu1 %v6076_v22  ;;  %v6109_v48 = vld [vmem:[%s8709_s1 + $0x1a0] ss:$12 sps:$4 sm:$0xff]   ;;  %v6114_v52 = vld [vmem:[%s8709_s1 + $0x1b8] ss:$12 sps:$4 sm:$0xff]   ;;  %v6118_v54 = vld [vmem:[%s8709_s1 + $0x290] ss:$12 sps:$4 sm:$0xff]  }
  0x13   :  { %2320 = vmatpush1.bf16.msra.mxu0 %v6044_v9  ;;  %5466 = vmatprep.subr.bf16.mxu1 %v6080_v24  ;;  %v6082_v51 = vld [vmem:[%s8709_s1 + $0x154] ss:$12 sps:$4 sm:$0xff]   ;;  %v6087_v56 = vld [vmem:[%s8709_s1 + $0x16c] ss:$12 sps:$4 sm:$0xff]   ;;  %v6126_v57 = vld [vmem:[%s8708_s0 + $0x68] ss:$52 sps:$4 sm:$0xff]  }
  0x14   :  { %2321 = vmatprep.subr.bf16.mxu0 %v6045_v12  ;;  %v6123_v55 = vld [vmem:[%s8708_s0 + $0x6c] ss:$52 sps:$4 sm:$0xff]   ;;  %v6119_v58 = vld [vmem:[%s8709_s1 + $0x1d0] ss:$12 sps:$4 sm:$0xff]   ;;  %v6125_v59 = vld [vmem:[%s8709_s1 + $0x2a8] ss:$12 sps:$4 sm:$0xff]  }
  0x15   :  { %v6089_v60 = vld [vmem:[%s8709_s1 + $0x168] ss:$12 sps:$4 sm:$0xff]   ;;  %v6097_v61 = vld [vmem:[%s8709_s1 + $0x184] ss:$12 sps:$4 sm:$0xff]   ;;  %v6131_v63 = vld [vmem:[%s8709_s1 + $0x2c0] ss:$12 sps:$4 sm:$0xff]  }
  0x16   :  { %5467 = vmatpush3.bf16.msra.mxu1 %v6081_v26  ;;  %v6127_v62 = vld [vmem:[%s8709_s1 + $0x1e8] ss:$12 sps:$4 sm:$0xff]   ;;  %v6095_v1 = vld [vmem:[%s8709_s1 + $0x180] ss:$12 sps:$4 sm:$0xff]   ;;  %v6137_v6 = vld [vmem:[%s8709_s1 + $0x2d8] ss:$12 sps:$4 sm:$0xff]  }
  0x17   :  { %2322 = vmatpush1.bf16.msra.mxu0 %v6047_v15  ;;  %5468 = vmatprep.subr.bf16.mxu1 %v6085_v27  ;;  %v62_v0 = vld [vmem:[%s8708_s0 + $0xd0] sm:$0xff]  ;;  %v6102_v4 = vld [vmem:[%s8709_s1 + $0x19c] ss:$12 sps:$4 sm:$0xff]   ;;  %v6132_v5 = vld [vmem:[%s8709_s1 + $0x200] ss:$12 sps:$4 sm:$0xff]  }
  0x18   :  { %2323 = vmatprep.subr.bf16.mxu0 %v6048_v16  ;;  %v5005_v2 = vcombine.high %v62_v0, %v62_v0  ;;  %v5004_v3 = vcombine.low %v62_v0, %v62_v0  ;;  %v6100_v7 = vld [vmem:[%s8709_s1 + $0x198] ss:$12 sps:$4 sm:$0xff]   ;;  %v6107_v8 = vld [vmem:[%s8709_s1 + $0x1b4] ss:$12 sps:$4 sm:$0xff]   ;;  %v6143_v10 = vld [vmem:[%s8709_s1 + $0x2f0] ss:$12 sps:$4 sm:$0xff]  }
  0x19   :  { %v6139_v9 = vld [vmem:[%s8709_s1 + $0x218] ss:$12 sps:$4 sm:$0xff]   ;;  %v6150_v11 = vld [vmem:[%s8708_s0 + $0xc] ss:$52 sps:$4 sm:$0xff]   ;;  %v6105_v12 = vld [vmem:[%s8709_s1 + $0x1b0] ss:$12 sps:$4 sm:$0xff]  }
  0x1a   :  { %5469 = vmatpush3.bf16.msra.mxu1 %v6086_v30  ;;  %v6112_v13 = vld [vmem:[%s8709_s1 + $0x1cc] ss:$12 sps:$4 sm:$0xff]   ;;  %v6110_v14 = vld [vmem:[%s8709_s1 + $0x1c8] ss:$12 sps:$4 sm:$0xff]   ;;  %v6144_v15 = vld [vmem:[%s8709_s1 + $0x230] ss:$12 sps:$4 sm:$0xff]  }
  0x1b   :  { %2324 = vmatpush1.bf16.msra.mxu0 %v6050_v19  ;;  %5470 = vmatprep.subr.bf16.mxu1 %v6090_v31  ;;  %v6151_v16 = vld [vmem:[%s8709_s1 + $0x3c8] ss:$12 sps:$4 sm:$0xff]   ;;  %v6117_v17 = vld [vmem:[%s8709_s1 + $0x1e4] ss:$12 sps:$4 sm:$0xff]   ;;  %v6115_v21 = vld [vmem:[%s8709_s1 + $0x1e0] ss:$12 sps:$4 sm:$0xff]  }
  0x1c   :  { %2325 = vmatprep.subr.bf16.mxu0 %v6051_v20  ;;  %v7001_v18 = vld [vmem:[%s8708_s0 + $0x8] ss:$52 sps:$4 sm:$0xff]   ;;  %v6156_v20 = vld [vmem:[%s8709_s1 + $0x3e0] ss:$12 sps:$4 sm:$0xff]   ;;  %v6162_v27 = vld [vmem:[%s8709_s1 + $0x338] ss:$12 sps:$4 sm:$0xff]  }
  0x1d   :  { %v6152_v19 = vld [vmem:[%s8709_s1 + $0x308] ss:$12 sps:$4 sm:$0xff]   ;;  %v6157_v24 = vld [vmem:[%s8709_s1 + $0x320] ss:$12 sps:$4 sm:$0xff]   ;;  %v7042_v30 = vld [vmem:[%s8708_s0 + $0x70] ss:$52 sps:$4 sm:$0xff]  }
  0x1e   :  { %5471 = vmatpush3.bf16.msra.mxu1 %v6091_v35  ;;  %v6122_v22 = vld [vmem:[%s8709_s1 + $0x1fc] ss:$12 sps:$4 sm:$0xff]   ;;  %v6130_v26 = vld [vmem:[%s8709_s1 + $0x214] ss:$12 sps:$4 sm:$0xff]   ;;  %v6209_v0 = vld [vmem:[%s8709_s1 + $0x578] ss:$12 sps:$4 sm:$0xff]  }
  0x1f   :  { %2326 = vmatpush1.bf16.msra.mxu0 %v6053_v23  ;;  %5472 = vmatprep.subr.bf16.mxu1 %v6098_v36  ;;  %v6120_v23 = vld [vmem:[%s8709_s1 + $0x1f8] ss:$12 sps:$4 sm:$0xff]   ;;  %v6128_v31 = vld [vmem:[%s8709_s1 + $0x210] ss:$12 sps:$4 sm:$0xff]   ;;  %v6173_v34 = vld [vmem:[%s8709_s1 + $0x428] ss:$12 sps:$4 sm:$0xff]  }
  0x20   :  { %2327 = vmatprep.subr.bf16.mxu0 %v6054_v25  ;;  %v6161_v25 = vld [vmem:[%s8709_s1 + $0x3f8] ss:$12 sps:$4 sm:$0xff]   ;;  %v6133_v35 = vld [vmem:[%s8709_s1 + $0x228] ss:$12 sps:$4 sm:$0xff]  }
  0x21   :  { %v6142_v36 = vld [vmem:[%s8709_s1 + $0x244] ss:$12 sps:$4 sm:$0xff]  }
  0x22   :  { %5473 = vmatpush3.bf16.msra.mxu1 %v6099_v39 }
  0x23   :  { %2328 = vmatpush1.bf16.msra.mxu0 %v6056_v28  ;;  %5492 = vmatprep.subr.bf16.mxu1 %v6103_v40  ;;  %v7034_v28 = vld [vmem:[%s8708_s0 + $0x74] ss:$52 sps:$4 sm:$0xff]  }
  0x24   :  { %2329 = vmatprep.subr.bf16.mxu0 %v6057_v29  ;;  %v6166_v29 = vld [vmem:[%s8709_s1 + $0x410] ss:$12 sps:$4 sm:$0xff]  }
  0x25   :  { %2771 = vmatmul.mubr.bf16.vlgmr.msra.gmra.mrb[0].mxu1 %v6092_v43 }
  0x26   :  { %5493 = vmatpush3.bf16.msra.mxu1 %v6104_v44  ;;  %2778 = vmatprep.mubr.bf16.mxu1 %v6123_v55  ;;  %v6180_v44 = vld [vmem:[%s8709_s1 + $0x380] ss:$12 sps:$4 sm:$0xff]  }
  0x27   :  { %2330 = vmatpush1.bf16.msra.mxu0 %v6059_v32  ;;  %5494 = vmatprep.subr.bf16.mxu1 %v6108_v45  ;;  %v6135_v32 = vld [vmem:[%s8709_s1 + $0x22c] ss:$12 sps:$4 sm:$0xff]  }
  0x28   :  { %2331 = vmatprep.subr.bf16.mxu0 %v6062_v33  ;;  %v6167_v33 = vld [vmem:[%s8709_s1 + $0x350] ss:$12 sps:$4 sm:$0xff]   ;;  %v6185_v45 = vld [vmem:[%s8709_s1 + $0x458] ss:$12 sps:$4 sm:$0xff]  }
  0x2a   :  { %5495 = vmatpush3.bf16.msra.mxu1 %v6109_v48  ;;  %v7100_v48 = vld [vmem:[%s8708_s0 + $0x14] ss:$52 sps:$4 sm:$0xff]  }
  0x2b   :  { %2332 = vmatpush1.bf16.msra.mxu0 %v6064_v37  ;;  %5496 = vmatprep.subr.bf16.mxu1 %v6113_v49  ;;  %v63_v37 = vld [vmem:[%s8708_s0 + $0xd8] sm:$0xff] }
  0x2c   :  { %2333 = vmatprep.subr.bf16.mxu0 %v6067_v38  ;;  %v6175_v38 = vld [vmem:[%s8709_s1 + $0x368] ss:$12 sps:$4 sm:$0xff]   ;;  %v7070_v39 = vcombine.high %v63_v37, %v63_v37  ;;  %v7072_v40 = vcombine.low %v63_v37, %v63_v37  ;;  %v6187_v49 = vld [vmem:[%s8709_s1 + $0x398] ss:$12 sps:$4 sm:$0xff]  }
  0x2d   :  { %2779 = vmatmul.mubr.bf16.gmra.mrb[4].mxu1 %v6126_v57  ;;  %v7281_v37 = vld [vmem:[%s8708_s0 + $0x84] ss:$52 sps:$4 sm:$0xff]  }
  0x2e   :  { %5497 = vmatpush3.bf16.msra.mxu1 %v6114_v52  ;;  %2786 = vmatprep.mubr.bf16.mxu1 %v5005_v2  ;;  %v6160_v52 = vld [vmem:[%s8709_s1 + $0x28c] ss:$12 sps:$4 sm:$0xff]  }
  0x2f   :  { %2334 = vmatpush1.bf16.msra.mxu0 %v6069_v41  ;;  %5498 = vmatprep.subr.bf16.mxu1 %v6118_v54  ;;  %v6179_v41 = vld [vmem:[%s8709_s1 + $0x440] ss:$12 sps:$4 sm:$0xff]   ;;  %v6192_v54 = vld [vmem:[%s8709_s1 + $0x3b0] ss:$12 sps:$4 sm:$0xff]  }
  0x30   :  { %2335 = vmatprep.subr.bf16.mxu0 %v6072_v42  ;;  %v6140_v42 = vld [vmem:[%s8709_s1 + $0x240] ss:$12 sps:$4 sm:$0xff]  }
  0x32   :  { %5499 = vmatpush3.bf16.msra.mxu1 %v6119_v58  ;;  %v6200_v58 = vld [vmem:[%s8709_s1 + $0x488] ss:$12 sps:$4 sm:$0xff]  }
  0x33   :  { %2336 = vmatpush1.bf16.msra.mxu0 %v6074_v46  ;;  %5500 = vmatprep.subr.bf16.mxu1 %v6125_v59  ;;  %v6145_v46 = vld [vmem:[%s8709_s1 + $0x258] ss:$12 sps:$4 sm:$0xff]   ;;  %v6204_v59 = vld [vmem:[%s8709_s1 + $0x560] ss:$12 sps:$4 sm:$0xff]  }
  0x34   :  { %2337 = vmatprep.subr.bf16.mxu0 %v6077_v47  ;;  %v6155_v47 = vld [vmem:[%s8709_s1 + $0x274] ss:$12 sps:$4 sm:$0xff]  }
  0x35   :  { %2787 = vmatmul.mubr.bf16.gmra.mrb[8].mxu1 %v5004_v3 }
  0x36   :  { %5501 = vmatpush3.bf16.msra.mxu1 %v6127_v62  ;;  %2826 = vmatprep.mubr.bf16.mxu1 %v6150_v11  ;;  %v6168_v62 = vld [vmem:[%s8709_s1 + $0x2b8] ss:$12 sps:$4 sm:$0xff]  }
  0x37   :  { %2338 = vmatpush1.bf16.msra.mxu0 %v6079_v50  ;;  %5502 = vmatprep.subr.bf16.mxu1 %v6131_v63  ;;  %v6191_v50 = vld [vmem:[%s8709_s1 + $0x470] ss:$12 sps:$4 sm:$0xff]   ;;  %v6205_v63 = vld [vmem:[%s8709_s1 + $0x4a0] ss:$12 sps:$4 sm:$0xff]  }
  0x38   :  { %2339 = vmatprep.subr.bf16.mxu0 %v6082_v51  ;;  %v6153_v51 = vld [vmem:[%s8709_s1 + $0x270] ss:$12 sps:$4 sm:$0xff]  }
  0x3a   :  { %5503 = vmatpush3.bf16.msra.mxu1 %v6132_v5  ;;  %v6214_v5 = vld [vmem:[%s8709_s1 + $0x590] ss:$12 sps:$4 sm:$0xff]  }
  0x3b   :  { %2340 = vmatpush1.bf16.msra.mxu0 %v6084_v53  ;;  %5504 = vmatprep.subr.bf16.mxu1 %v6137_v6  ;;  %v6158_v53 = vld [vmem:[%s8709_s1 + $0x288] ss:$12 sps:$4 sm:$0xff]   ;;  %v6176_v6 = vld [vmem:[%s8709_s1 + $0x2d0] ss:$12 sps:$4 sm:$0xff]  }
  0x3c   :  { %2341 = vmatprep.subr.bf16.mxu0 %v6087_v56  ;;  %v6165_v56 = vld [vmem:[%s8709_s1 + $0x2a4] ss:$12 sps:$4 sm:$0xff]  }
  0x3e   :  { %5505 = vmatpush3.bf16.msra.mxu1 %v6139_v9  ;;  %v6221_v9 = vld [vmem:[%s8709_s1 + $0x5a8] ss:$12 sps:$4 sm:$0xff]  }
  0x3f   :  { %2342 = vmatpush1.bf16.msra.mxu0 %v6089_v60  ;;  %5506 = vmatprep.subr.bf16.mxu1 %v6143_v10  ;;  %v6163_v60 = vld [vmem:[%s8709_s1 + $0x2a0] ss:$12 sps:$4 sm:$0xff]  }
  0x40   :  { %2372 = vmatprep.subr.bf16.mxu0 %v6097_v61  ;;  %v6170_v61 = vld [vmem:[%s8709_s1 + $0x2bc] ss:$12 sps:$4 sm:$0xff]   ;;  %v64_v10 = vld [vmem:[%s8708_s0 + $0xe0] sm:$0xff] }
  0x42   :  { %2344 = vmatmul.mubr.bf16.vlgmr.msra.gmra.mrb[0].mxu0 %v6092_v43  ;;  %5507 = vmatpush3.bf16.msra.mxu1 %v6144_v15  ;;  %v6147_v43 = vld [vmem:[%s8709_s1 + $0x25c] ss:$12 sps:$4 sm:$0xff]  }
  0x43   :  { %2373 = vmatpush1.bf16.msra.mxu0 %v6095_v1  ;;  %2353 = vmatprep.mubr.bf16.mxu0 %v6123_v55  ;;  %v6199_v55 = vld [vmem:[%s8709_s1 + $0x548] ss:$12 sps:$4 sm:$0xff]   ;;  %v7157_v1 = vld [vmem:[%s8708_s0 + $0x7c] ss:$52 sps:$4 sm:$0xff]  }
  0x44   :  { %2374 = vmatprep.subr.bf16.mxu0 %v6102_v4  ;;  %5526 = vmatprep.subr.bf16.mxu1 %v6151_v16  ;;  %v6210_v4 = vld [vmem:[%s8709_s1 + $0x4b8] ss:$12 sps:$4 sm:$0xff]   ;;  %v6223_v15 = vld [vmem:[%s8709_s1 + $0x4e8] ss:$12 sps:$4 sm:$0xff]   ;;  %v6227_v16 = vld [vmem:[%s8709_s1 + $0x5c0] ss:$12 sps:$4 sm:$0xff]  }
  0x45   :  { %2827 = vmatmul.mubr.bf16.vlgmr.msra.gmra.mrb[12].mxu1 %v7001_v18 }
  0x46   :  { %5527 = vmatpush3.bf16.msra.mxu1 %v6152_v19  ;;  %2834 = vmatprep.mubr.bf16.mxu1 %v7034_v28  ;;  %v6195_v19 = vld [vmem:[%s8709_s1 + $0x31c] ss:$12 sps:$4 sm:$0xff]  }
  0x47   :  { %2375 = vmatpush1.bf16.msra.mxu0 %v6100_v7  ;;  %5528 = vmatprep.subr.bf16.mxu1 %v6156_v20  ;;  %v6183_v7 = vld [vmem:[%s8709_s1 + $0x2ec] ss:$12 sps:$4 sm:$0xff]  }
  0x48   :  { %2376 = vmatprep.subr.bf16.mxu0 %v6107_v8  ;;  %v6215_v8 = vld [vmem:[%s8709_s1 + $0x4d0] ss:$12 sps:$4 sm:$0xff]   ;;  %v6228_v20 = vld [vmem:[%s8709_s1 + $0x500] ss:$12 sps:$4 sm:$0xff]  }
  0x4a   :  { %2354 = vmatmul.mubr.bf16.gmra.mrb[4].mxu0 %v6126_v57  ;;  %5529 = vmatpush3.bf16.msra.mxu1 %v6157_v24  ;;  %v7130_v57 = vld [vmem:[%s8708_s0 + $0x10] ss:$52 sps:$4 sm:$0xff]   ;;  %v6203_v24 = vld [vmem:[%s8709_s1 + $0x334] ss:$12 sps:$4 sm:$0xff]  }
  0x4b   :  { %2377 = vmatpush1.bf16.msra.mxu0 %v6105_v12  ;;  %2363 = vmatprep.mubr.bf16.mxu0 %v5005_v2  ;;  %v6178_v2 = vld [vmem:[%s8709_s1 + $0x2d4] ss:$12 sps:$4 sm:$0xff]   ;;  %v7193_v12 = vcombine.high %v64_v10, %v64_v10 }
  0x4c   :  { %2378 = vmatprep.subr.bf16.mxu0 %v6112_v13  ;;  %5530 = vmatprep.subr.bf16.mxu1 %v6161_v25  ;;  %v6190_v13 = vld [vmem:[%s8709_s1 + $0x304] ss:$12 sps:$4 sm:$0xff]  }
  0x4d   :  { %2835 = vmatmul.mubr.bf16.gmra.mrb[16].mxu1 %v7042_v30  ;;  %v6239_v25 = vld [vmem:[%s8709_s1 + $0x5f0] ss:$12 sps:$4 sm:$0xff]  }
  0x4e   :  { %5531 = vmatpush3.bf16.msra.mxu1 %v6162_v27  ;;  %2842 = vmatprep.mubr.bf16.mxu1 %v7070_v39  ;;  %v6208_v27 = vld [vmem:[%s8709_s1 + $0x34c] ss:$12 sps:$4 sm:$0xff]  }
  0x4f   :  { %2379 = vmatpush1.bf16.msra.mxu0 %v6110_v14  ;;  %5532 = vmatprep.subr.bf16.mxu1 %v6166_v29  ;;  %v7198_v14 = vcombine.low %v64_v10, %v64_v10  ;;  %v6240_v29 = vld [vmem:[%s8709_s1 + $0x530] ss:$12 sps:$4 sm:$0xff]   ;;  %v6292_v10 = vld [vmem:[%s8708_s0 + $0x20] ss:$52 sps:$4 sm:$0xff]  }
  0x50   :  { %2380 = vmatprep.subr.bf16.mxu0 %v6117_v17  ;;  %v6188_v17 = vld [vmem:[%s8709_s1 + $0x300] ss:$12 sps:$4 sm:$0xff]  }
  0x52   :  { %2364 = vmatmul.mubr.bf16.gmra.mrb[8].mxu0 %v5004_v3  ;;  %5533 = vmatpush3.bf16.msra.mxu1 %v6167_v33  ;;  %v7166_v3 = vld [vmem:[%s8708_s0 + $0x78] ss:$52 sps:$4 sm:$0xff]  }
  0x53   :  { %2381 = vmatpush1.bf16.msra.mxu0 %v6115_v21  ;;  %2404 = vmatprep.mubr.bf16.mxu0 %v6150_v11  ;;  %v6181_v11 = vld [vmem:[%s8709_s1 + $0x2e8] ss:$12 sps:$4 sm:$0xff]   ;;  %v6233_v21 = vld [vmem:[%s8709_s1 + $0x5d8] ss:$12 sps:$4 sm:$0xff]  }
  0x54   :  { %2382 = vmatprep.subr.bf16.mxu0 %v6122_v22  ;;  %5534 = vmatprep.subr.bf16.mxu1 %v6173_v34  ;;  %v7224_v22 = vld [vmem:[%s8708_s0 + $0x1c] ss:$52 sps:$4 sm:$0xff]   ;;  %v7263_v33 = vld [vmem:[%s8708_s0 + $0x18] ss:$52 sps:$4 sm:$0xff]   ;;  %v6248_v34 = vld [vmem:[%s8709_s1 + $0x608] ss:$12 sps:$4 sm:$0xff]  }
  0x55   :  { %2843 = vmatmul.mubr.bf16.gmra.mrb[20].mxu1 %v7072_v40 }
  0x56   :  { %5535 = vmatpush3.bf16.msra.mxu1 %v6175_v38  ;;  %2882 = vmatprep.mubr.bf16.mxu1 %v7100_v48  ;;  %v6216_v38 = vld [vmem:[%s8709_s1 + $0x378] ss:$12 sps:$4 sm:$0xff]  }
  0x57   :  { %2383 = vmatpush1.bf16.msra.mxu0 %v6120_v23  ;;  %5536 = vmatprep.subr.bf16.mxu1 %v6179_v41  ;;  %v6193_v23 = vld [vmem:[%s8709_s1 + $0x318] ss:$12 sps:$4 sm:$0xff]  }
  0x58   :  { %2384 = vmatprep.subr.bf16.mxu0 %v6130_v26  ;;  %v6201_v26 = vld [vmem:[%s8709_s1 + $0x330] ss:$12 sps:$4 sm:$0xff]   ;;  %v6257_v41 = vld [vmem:[%s8709_s1 + $0x6f8] ss:$12 sps:$4 sm:$0xff]  }
  0x5a   :  { %5537 = vmatpush3.bf16.msra.mxu1 %v6180_v44  ;;  %v6258_v44 = vld [vmem:[%s8709_s1 + $0x638] ss:$12 sps:$4 sm:$0xff]  }
  0x5b   :  { %2385 = vmatpush1.bf16.msra.mxu0 %v6128_v31  ;;  %5538 = vmatprep.subr.bf16.mxu1 %v6185_v45  ;;  %v6247_v31 = vld [vmem:[%s8709_s1 + $0x6c8] ss:$12 sps:$4 sm:$0xff]   ;;  %v6262_v45 = vld [vmem:[%s8709_s1 + $0x710] ss:$12 sps:$4 sm:$0xff]  }
  0x5c   :  { %2386 = vmatprep.subr.bf16.mxu0 %v6135_v32  ;;  %v6213_v32 = vld [vmem:[%s8709_s1 + $0x364] ss:$12 sps:$4 sm:$0xff]  }
  0x5e   :  { %5539 = vmatpush3.bf16.msra.mxu1 %v6187_v49  ;;  %v6263_v49 = vld [vmem:[%s8709_s1 + $0x650] ss:$12 sps:$4 sm:$0xff]  }
  0x5f   :  { %2387 = vmatpush1.bf16.msra.mxu0 %v6133_v35  ;;  %5540 = vmatprep.subr.bf16.mxu1 %v6191_v50  ;;  %v6211_v35 = vld [vmem:[%s8709_s1 + $0x360] ss:$12 sps:$4 sm:$0xff]   ;;  %v6269_v50 = vld [vmem:[%s8709_s1 + $0x728] ss:$12 sps:$4 sm:$0xff]  }
  0x60   :  { %2388 = vmatprep.subr.bf16.mxu0 %v6142_v36  ;;  %v6218_v36 = vld [vmem:[%s8709_s1 + $0x37c] ss:$12 sps:$4 sm:$0xff]  }
  0x62   :  { %5541 = vmatpush3.bf16.msra.mxu1 %v6192_v54  ;;  %v6271_v54 = vld [vmem:[%s8709_s1 + $0x668] ss:$12 sps:$4 sm:$0xff]  }
  0x63   :  { %2389 = vmatpush1.bf16.msra.mxu0 %v6140_v42  ;;  %5560 = vmatprep.subr.bf16.mxu1 %v6199_v55  ;;  %v6226_v42 = vld [vmem:[%s8709_s1 + $0x394] ss:$12 sps:$4 sm:$0xff]  }
  0x64   :  { %2390 = vmatprep.subr.bf16.mxu0 %v6147_v43  ;;  %v7299_v43 = vld [vmem:[%s8708_s0 + $0x80] ss:$52 sps:$4 sm:$0xff]  }
  0x65   :  { %2883 = vmatmul.mubr.bf16.vlgmr.msra.gmra.mrb[24].mxu1 %v7130_v57  ;;  %v6275_v55 = vld [vmem:[%s8709_s1 + $0x740] ss:$12 sps:$4 sm:$0xff]  }
  0x66   :  { %5561 = vmatpush3.bf16.msra.mxu1 %v6200_v58  ;;  %2890 = vmatprep.mubr.bf16.mxu1 %v7157_v1  ;;  %v7348_v58 = vld [vmem:[%s8708_s0 + $0x24] ss:$52 sps:$4 sm:$0xff]  }
  0x67   :  { %2391 = vmatpush1.bf16.msra.mxu0 %v6145_v46  ;;  %5562 = vmatprep.subr.bf16.mxu1 %v6204_v59  ;;  %v6224_v46 = vld [vmem:[%s8709_s1 + $0x390] ss:$12 sps:$4 sm:$0xff]  }
  0x68   :  { %2392 = vmatprep.subr.bf16.mxu0 %v6155_v47  ;;  %v6231_v47 = vld [vmem:[%s8709_s1 + $0x3ac] ss:$12 sps:$4 sm:$0xff]   ;;  %v6243_v59 = vld [vmem:[%s8709_s1 + $0x3dc] ss:$12 sps:$4 sm:$0xff]  }
  0x6a   :  { %5563 = vmatpush3.bf16.msra.mxu1 %v6205_v63  ;;  %v6251_v63 = vld [vmem:[%s8709_s1 + $0x3f4] ss:$12 sps:$4 sm:$0xff]  }
  0x6b   :  { %2393 = vmatpush1.bf16.msra.mxu0 %v6153_v51  ;;  %5564 = vmatprep.subr.bf16.mxu1 %v6209_v0  ;;  %v6229_v51 = vld [vmem:[%s8709_s1 + $0x3a8] ss:$12 sps:$4 sm:$0xff]   ;;  %v6283_v0 = vld [vmem:[%s8709_s1 + $0x698] ss:$12 sps:$4 sm:$0xff]  }
  0x6c   :  { %2394 = vmatprep.subr.bf16.mxu0 %v6160_v52  ;;  %v6238_v52 = vld [vmem:[%s8709_s1 + $0x3c4] ss:$12 sps:$4 sm:$0xff]  }
  0x6d   :  { %2891 = vmatmul.mubr.bf16.gmra.mrb[28].mxu1 %v7166_v3 }
  0x6e   :  { %5565 = vmatpush3.bf16.msra.mxu1 %v6210_v4  ;;  %2898 = vmatprep.mubr.bf16.mxu1 %v7193_v12  ;;  %v6249_v4 = vld [vmem:[%s8709_s1 + $0x3f0] ss:$12 sps:$4 sm:$0xff]  }
  0x6f   :  { %2395 = vmatpush1.bf16.msra.mxu0 %v6158_v53  ;;  %5566 = vmatprep.subr.bf16.mxu1 %v6214_v5  ;;  %v6256_v5 = vld [vmem:[%s8709_s1 + $0x40c] ss:$12 sps:$4 sm:$0xff]  }
  0x70   :  { %2396 = vmatprep.subr.bf16.mxu0 %v6165_v56  ;;  %v6236_v56 = vld [vmem:[%s8709_s1 + $0x3c0] ss:$12 sps:$4 sm:$0xff]  }
  0x72   :  { %5567 = vmatpush3.bf16.msra.mxu1 %v6215_v8  ;;  %v6295_v8 = vld [vmem:[%s8709_s1 + $0x848] ss:$12 sps:$4 sm:$0xff]  }
  0x73   :  { %2397 = vmatpush1.bf16.msra.mxu0 %v6163_v60  ;;  %5568 = vmatprep.subr.bf16.mxu1 %v6221_v9  ;;  %v6276_v60 = vld [vmem:[%s8709_s1 + $0x680] ss:$12 sps:$4 sm:$0xff]   ;;  %v6261_v9 = vld [vmem:[%s8709_s1 + $0x424] ss:$12 sps:$4 sm:$0xff]  }
  0x74   :  { %2398 = vmatprep.subr.bf16.mxu0 %v6170_v61  ;;  %v6281_v61 = vld [vmem:[%s8709_s1 + $0x758] ss:$12 sps:$4 sm:$0xff]  }
  0x75   :  { %2899 = vmatmul.mubr.bf16.gmra.mrb[32].mxu1 %v7198_v14 }
  0x76   :  { %5569 = vmatpush3.bf16.msra.mxu1 %v6223_v15  ;;  %2938 = vmatprep.mubr.bf16.mxu1 %v7224_v22  ;;  %v6315_v15 = vld [vmem:[%s8708_s0 + $0x8c] ss:$52 sps:$4 sm:$0xff]  }
  0x77   :  { %2399 = vmatpush1.bf16.msra.mxu0 %v6168_v62  ;;  %5570 = vmatprep.subr.bf16.mxu1 %v6227_v16  ;;  %v6241_v62 = vld [vmem:[%s8709_s1 + $0x3d8] ss:$12 sps:$4 sm:$0xff]   ;;  %v6259_v16 = vld [vmem:[%s8709_s1 + $0x420] ss:$12 sps:$4 sm:$0xff]  }
  0x78   :  { %2400 = vmatprep.subr.bf16.mxu0 %v6178_v2  ;;  %v6287_v2 = vld [vmem:[%s8709_s1 + $0x770] ss:$12 sps:$4 sm:$0xff]  }
  0x7a   :  { %5571 = vmatpush3.bf16.msra.mxu1 %v6228_v20  ;;  %v6301_v20 = vld [vmem:[%s8709_s1 + $0x7a0] ss:$12 sps:$4 sm:$0xff]  }
  0x7b   :  { %2401 = vmatpush1.bf16.msra.mxu0 %v6176_v6  ;;  %5572 = vmatprep.subr.bf16.mxu1 %v6233_v21  ;;  %v6254_v6 = vld [vmem:[%s8709_s1 + $0x408] ss:$12 sps:$4 sm:$0xff]   ;;  %v6305_v21 = vld [vmem:[%s8709_s1 + $0x878] ss:$12 sps:$4 sm:$0xff]  }
  0x7c   :  { %2402 = vmatprep.subr.bf16.mxu0 %v6183_v7  ;;  %v6288_v7 = vld [vmem:[%s8709_s1 + $0x6b0] ss:$12 sps:$4 sm:$0xff]  }
  0x7f   :  { %2403 = vmatpush1.bf16.msra.mxu0 %v6181_v11  ;;  %v6296_v11 = vld [vmem:[%s8709_s1 + $0x788] ss:$12 sps:$4 sm:$0xff]  }
  0x80   :  { %2433 = vmatprep.subr.bf16.mxu0 %v6190_v13  ;;  %v6300_v13 = vld [vmem:[%s8709_s1 + $0x860] ss:$12 sps:$4 sm:$0xff]  }
  0x82   :  { %2405 = vmatmul.mubr.bf16.vlgmr.msra.gmra.mrb[0].mxu0 %v7001_v18  ;;  %v6235_v18 = vld [vmem:[%s8709_s1 + $0x518] ss:$12 sps:$4 sm:$0xff]  }
  0x83   :  { %2434 = vmatpush1.bf16.msra.mxu0 %v6188_v17  ;;  %2414 = vmatprep.mubr.bf16.mxu0 %v7034_v28  ;;  %v6206_v28 = vld [vmem:[%s8709_s1 + $0x348] ss:$12 sps:$4 sm:$0xff]  }
  0x84   :  { %2435 = vmatprep.subr.bf16.mxu0 %v6195_v19  ;;  %5573 = vmatpush3.bf16.msra.mxu1 %v6235_v18  ;;  %v6266_v17 = vld [vmem:[%s8709_s1 + $0x43c] ss:$12 sps:$4 sm:$0xff]   ;;  %v6264_v19 = vld [vmem:[%s8709_s1 + $0x438] ss:$12 sps:$4 sm:$0xff]  }
  0x85   :  { %5574 = vmatprep.subr.bf16.mxu1 %v6239_v25  ;;  %v6306_v18 = vld [vmem:[%s8709_s1 + $0x7b8] ss:$12 sps:$4 sm:$0xff]   ;;  %v66_v25 = vld [vmem:[%s8708_s0 + $0xf0] sm:$0xff] }
  0x87   :  { %2436 = vmatpush1.bf16.msra.mxu0 %v6193_v23  ;;  %v6274_v23 = vld [vmem:[%s8709_s1 + $0x454] ss:$12 sps:$4 sm:$0xff]  }
  0x88   :  { %2437 = vmatprep.subr.bf16.mxu0 %v6203_v24  ;;  %5575 = vmatpush3.bf16.msra.mxu1 %v6240_v29  ;;  %v6317_v24 = vld [vmem:[%s8708_s0 + $0x88] ss:$52 sps:$4 sm:$0xff]   ;;  %v6279_v29 = vld [vmem:[%s8709_s1 + $0x46c] ss:$12 sps:$4 sm:$0xff]  }
  0x89   :  { %5594 = vmatprep.subr.bf16.mxu1 %v6247_v31  ;;  %v6311_v31 = vld [vmem:[%s8709_s1 + $0x7d0] ss:$12 sps:$4 sm:$0xff]  }
  0x8a   :  { %2415 = vmatmul.mubr.bf16.gmra.mrb[4].mxu0 %v7042_v30  ;;  %v6252_v30 = vld [vmem:[%s8709_s1 + $0x6e0] ss:$12 sps:$4 sm:$0xff]  }
  0x8b   :  { %2438 = vmatpush1.bf16.msra.mxu0 %v6201_v26  ;;  %2424 = vmatprep.mubr.bf16.mxu0 %v7070_v39  ;;  %v6253_v39 = vld [vmem:[%s8709_s1 + $0x620] ss:$12 sps:$4 sm:$0xff]   ;;  %v6310_v26 = vld [vmem:[%s8709_s1 + $0x890] ss:$12 sps:$4 sm:$0xff]  }
  0x8c   :  { %2439 = vmatprep.subr.bf16.mxu0 %v6208_v27  ;;  %2939 = vmatmul.mubr.bf16.vlgmr.msra.gmra.mrb[36].mxu1 %v7263_v33  ;;  %v7433_v27 = vcombine.high %v66_v25, %v66_v25 }
  0x8d   :  { %5595 = vmatpush3.bf16.msra.mxu1 %v6248_v34  ;;  %2946 = vmatprep.mubr.bf16.mxu1 %v7281_v37  ;;  %v6277_v34 = vld [vmem:[%s8709_s1 + $0x468] ss:$12 sps:$4 sm:$0xff]  }
  0x8e   :  { %5596 = vmatprep.subr.bf16.mxu1 %v6252_v30  ;;  %v6286_v30 = vld [vmem:[%s8709_s1 + $0x484] ss:$12 sps:$4 sm:$0xff]  }
  0x8f   :  { %2440 = vmatpush1.bf16.msra.mxu0 %v6206_v28  ;;  %v6272_v28 = vld [vmem:[%s8709_s1 + $0x450] ss:$12 sps:$4 sm:$0xff]  }
  0x90   :  { %2441 = vmatprep.subr.bf16.mxu0 %v6213_v32  ;;  %v6318_v32 = vld [vmem:[%s8709_s1 + $0x8a8] ss:$12 sps:$4 sm:$0xff]  }
  0x91   :  { %5597 = vmatpush3.bf16.msra.mxu1 %v6253_v39  ;;  %v6323_v39 = vld [vmem:[%s8709_s1 + $0x8c0] ss:$12 sps:$4 sm:$0xff]  }
  0x92   :  { %2425 = vmatmul.mubr.bf16.gmra.mrb[8].mxu0 %v7072_v40  ;;  %5598 = vmatprep.subr.bf16.mxu1 %v6257_v41  ;;  %v65_v40 = vld [vmem:[%s8708_s0 + $0xe8] sm:$0xff] }
  0x93   :  { %2442 = vmatpush1.bf16.msra.mxu0 %v6211_v35  ;;  %2465 = vmatprep.mubr.bf16.mxu0 %v7100_v48  ;;  %v7319_v48 = vcombine.high %v65_v40, %v65_v40  ;;  %v7334_v53 = vcombine.low %v65_v40, %v65_v40  ;;  %v7454_v35 = vcombine.low %v66_v25, %v66_v25  ;;  %v6284_v41 = vld [vmem:[%s8709_s1 + $0x480] ss:$12 sps:$4 sm:$0xff]   ;;  %v6361_v25 = vld [vmem:[%s8709_s1 + $0x5bc] ss:$12 sps:$4 sm:$0xff]  }
  0x94   :  { %2443 = vmatprep.subr.bf16.mxu0 %v6218_v36  ;;  %2947 = vmatmul.mubr.bf16.gmra.mrb[40].mxu1 %v7299_v43  ;;  %v6319_v36 = vld [vmem:[%s8709_s1 + $0x7e8] ss:$12 sps:$4 sm:$0xff]  }
  0x95   :  { %5599 = vmatpush3.bf16.msra.mxu1 %v6258_v44  ;;  %2954 = vmatprep.mubr.bf16.mxu1 %v7319_v48  ;;  %v6324_v44 = vld [vmem:[%s8709_s1 + $0x800] ss:$12 sps:$4 sm:$0xff]  }
  0x96   :  { %5600 = vmatprep.subr.bf16.mxu1 %v6262_v45  ;;  %v6330_v45 = vld [vmem:[%s8709_s1 + $0x8d8] ss:$12 sps:$4 sm:$0xff]   ;;  %v6299_v40 = vld [vmem:[%s8709_s1 + $0x4b4] ss:$12 sps:$4 sm:$0xff]  }
  0x97   :  { %2444 = vmatpush1.bf16.msra.mxu0 %v6216_v38  ;;  %v6342_v38 = vld [vmem:[%s8708_s0 + $0x2c] ss:$52 sps:$4 sm:$0xff]  }
  0x98   :  { %2445 = vmatprep.subr.bf16.mxu0 %v6226_v42  ;;  %v6291_v42 = vld [vmem:[%s8709_s1 + $0x49c] ss:$12 sps:$4 sm:$0xff]  }
  0x99   :  { %5601 = vmatpush3.bf16.msra.mxu1 %v6263_v49  ;;  %v6304_v49 = vld [vmem:[%s8709_s1 + $0x4cc] ss:$12 sps:$4 sm:$0xff]  }
  0x9a   :  { %5602 = vmatprep.subr.bf16.mxu1 %v6269_v50  ;;  %v6336_v50 = vld [vmem:[%s8709_s1 + $0x830] ss:$12 sps:$4 sm:$0xff]  }
  0x9b   :  { %2446 = vmatpush1.bf16.msra.mxu0 %v6224_v46  ;;  %v6289_v46 = vld [vmem:[%s8709_s1 + $0x498] ss:$12 sps:$4 sm:$0xff]  }
  0x9c   :  { %2447 = vmatprep.subr.bf16.mxu0 %v6231_v47  ;;  %2955 = vmatmul.mubr.bf16.gmra.mrb[44].mxu1 %v7334_v53  ;;  %v6335_v47 = vld [vmem:[%s8709_s1 + $0x8f0] ss:$12 sps:$4 sm:$0xff]  }
  0x9d   :  { %5603 = vmatpush3.bf16.msra.mxu1 %v6271_v54  ;;  %2994 = vmatprep.mubr.bf16.mxu1 %v7348_v58  ;;  %v6340_v54 = vld [vmem:[%s8708_s0 + $0x28] ss:$52 sps:$4 sm:$0xff]  }
  0x9e   :  { %5604 = vmatprep.subr.bf16.mxu1 %v6275_v55  ;;  %v6343_v55 = vld [vmem:[%s8709_s1 + $0x908] ss:$12 sps:$4 sm:$0xff]  }
  0x9f   :  { %2448 = vmatpush1.bf16.msra.mxu0 %v6229_v51  ;;  %v6302_v51 = vld [vmem:[%s8709_s1 + $0x4c8] ss:$12 sps:$4 sm:$0xff]  }
  0xa0   :  { %2449 = vmatprep.subr.bf16.mxu0 %v6238_v52  ;;  %v6309_v52 = vld [vmem:[%s8709_s1 + $0x4e4] ss:$12 sps:$4 sm:$0xff]  }
  0xa1   :  { %5605 = vmatpush3.bf16.msra.mxu1 %v6276_v60  ;;  %v6347_v60 = vld [vmem:[%s8709_s1 + $0x920] ss:$12 sps:$4 sm:$0xff]  }
  0xa2   :  { %5606 = vmatprep.subr.bf16.mxu1 %v6281_v61  ;;  %v67_v61 = vld [vmem:[%s8708_s0 + $0xf8] sm:$0xff] }
  0xa3   :  { %2450 = vmatpush1.bf16.msra.mxu0 %v6236_v56  ;;  %v6351_v56 = vld [vmem:[%s8708_s0 + $0x94] ss:$52 sps:$4 sm:$0xff]  }
  0xa4   :  { %2451 = vmatprep.subr.bf16.mxu0 %v6243_v59  ;;  %v6697_v59 = vmov 0.0  }
  0xa5   :  { %5607 = vmatpush3.bf16.msra.mxu1 %v6283_v0  ;;  %v6353_v0 = vld [vmem:[%s8708_s0 + $0x90] ss:$52 sps:$4 sm:$0xff]  }
  0xa6   :  { %5608 = vmatprep.subr.bf16.mxu1 %v6287_v2  ;;  %v7546_v2 = vcombine.high %v67_v61, %v67_v61 }
  0xa7   :  { %2452 = vmatpush1.bf16.msra.mxu0 %v6241_v62  ;;  %v6312_v62 = vld [vmem:[%s8709_s1 + $0x4f8] ss:$12 sps:$4 sm:$0xff]  }
  0xa8   :  { %2453 = vmatprep.subr.bf16.mxu0 %v6251_v63  ;;  %v6322_v63 = vld [vmem:[%s8709_s1 + $0x514] ss:$12 sps:$4 sm:$0xff]  }
  0xa9   :  { %5609 = vmatpush3.bf16.msra.mxu1 %v6288_v7  ;;  %v6334_v7 = vld [vmem:[%s8709_s1 + $0x544] ss:$12 sps:$4 sm:$0xff]  }
  0xaa   :  { %5628 = vmatprep.subr.bf16.mxu1 %v6295_v8  ;;  %v7566_v8 = vcombine.low %v67_v61, %v67_v61 }
  0xab   :  { %2454 = vmatpush1.bf16.msra.mxu0 %v6249_v4  ;;  %v6327_v4 = vld [vmem:[%s8709_s1 + $0x52c] ss:$12 sps:$4 sm:$0xff]  }
  0xac   :  { %2455 = vmatprep.subr.bf16.mxu0 %v6256_v5  ;;  %2995 = vmatmul.mubr.bf16.vlgmr.msra.gmra.mrb[48].mxu1 %v6292_v10  ;;  %v6358_v5 = vld [vmem:[%s8709_s1 + $0x950] ss:$12 sps:$4 sm:$0xff]   ;;  %v6332_v10 = vld [vmem:[%s8709_s1 + $0x540] ss:$12 sps:$4 sm:$0xff]  }
  0xad   :  { %5629 = vmatpush3.bf16.msra.mxu1 %v6296_v11  ;;  %3002 = vmatprep.mubr.bf16.mxu1 %v6315_v15  ;;  %v6339_v11 = vld [vmem:[%s8709_s1 + $0x55c] ss:$12 sps:$4 sm:$0xff]   ;;  %v6337_v15 = vld [vmem:[%s8709_s1 + $0x558] ss:$12 sps:$4 sm:$0xff]  }
  0xae   :  { %5630 = vmatprep.subr.bf16.mxu1 %v6300_v13  ;;  %v6368_v13 = vld [vmem:[%s8709_s1 + $0x980] ss:$12 sps:$4 sm:$0xff]  }
  0xaf   :  { %2456 = vmatpush1.bf16.msra.mxu0 %v6254_v6  ;;  %v6325_v6 = vld [vmem:[%s8709_s1 + $0x528] ss:$12 sps:$4 sm:$0xff]  }
  0xb0   :  { %2457 = vmatprep.subr.bf16.mxu0 %v6261_v9  ;;  %v6364_v9 = vld [vmem:[%s8709_s1 + $0x968] ss:$12 sps:$4 sm:$0xff]  }
  0xb1   :  { %5631 = vmatpush3.bf16.msra.mxu1 %v6301_v20  ;;  %v6350_v20 = vld [vmem:[%s8709_s1 + $0x58c] ss:$12 sps:$4 sm:$0xff]  }
  0xb2   :  { %5632 = vmatprep.subr.bf16.mxu1 %v6305_v21  ;;  %v6348_v21 = vld [vmem:[%s8709_s1 + $0x588] ss:$12 sps:$4 sm:$0xff]  }
  0xb3   :  { %2458 = vmatpush1.bf16.msra.mxu0 %v6259_v16  ;;  %v6346_v16 = vld [vmem:[%s8709_s1 + $0x574] ss:$12 sps:$4 sm:$0xff]  }
  0xb4   :  { %2459 = vmatprep.subr.bf16.mxu0 %v6266_v17  ;;  %3003 = vmatmul.mubr.bf16.gmra.mrb[52].mxu1 %v6317_v24  ;;  %v6372_v17 = vld [vmem:[%s8708_s0 + $0x30] ss:$52 sps:$4 sm:$0xff]   ;;  %v7612_v24 = vld [vmem:[%s8708_s0 + $0x98] ss:$52 sps:$4 sm:$0xff]  }
  0xb5   :  { %5633 = vmatpush3.bf16.msra.mxu1 %v6306_v18  ;;  %3010 = vmatprep.mubr.bf16.mxu1 %v7433_v27  ;;  %v6355_v18 = vld [vmem:[%s8709_s1 + $0x5a0] ss:$12 sps:$4 sm:$0xff]  }
  0xb6   :  { %5634 = vmatprep.subr.bf16.mxu1 %v6310_v26  ;;  %v6359_v26 = vld [vmem:[%s8709_s1 + $0x5b8] ss:$12 sps:$4 sm:$0xff]  }
  0xb7   :  { %2460 = vmatpush1.bf16.msra.mxu0 %v6264_v19  ;;  %v6344_v19 = vld [vmem:[%s8709_s1 + $0x570] ss:$12 sps:$4 sm:$0xff]  }
  0xb8   :  { %2461 = vmatprep.subr.bf16.mxu0 %v6274_v23  ;;  %v6357_v23 = vld [vmem:[%s8709_s1 + $0x5a4] ss:$12 sps:$4 sm:$0xff]  }
  0xb9   :  { %5635 = vmatpush3.bf16.msra.mxu1 %v6311_v31  ;;  %v6365_v31 = vld [vmem:[%s8709_s1 + $0x5d0] ss:$12 sps:$4 sm:$0xff]  }
  0xba   :  { %5636 = vmatprep.subr.bf16.mxu1 %v6318_v32  ;;  %v6371_v32 = vld [vmem:[%s8709_s1 + $0x5ec] ss:$12 sps:$4 sm:$0xff]  }
  0xbb   :  { %2462 = vmatpush1.bf16.msra.mxu0 %v6272_v28  ;;  %v6367_v28 = vld [vmem:[%s8709_s1 + $0x5d4] ss:$12 sps:$4 sm:$0xff]  }
  0xbc   :  { %2463 = vmatprep.subr.bf16.mxu0 %v6279_v29  ;;  %3011 = vmatmul.mubr.bf16.gmra.mrb[56].mxu1 %v7454_v35  ;;  %v7633_v29 = vld [vmem:[%s8708_s0 + $0x100] ss:$0 sps:$4 sm:$0xff]  }
  0xbd   :  { %5637 = vmatpush3.bf16.msra.mxu1 %v6319_v36  ;;  %3050 = vmatprep.mubr.bf16.mxu1 %v6342_v38  ;;  %v6373_v36 = vld [vmem:[%s8709_s1 + $0x600] ss:$12 sps:$4 sm:$0xff]   ;;  %v6378_v38 = vld [vmem:[%s8709_s1 + $0x61c] ss:$12 sps:$4 sm:$0xff]  }
  0xbe   :  { %5638 = vmatprep.subr.bf16.mxu1 %v6323_v39  ;;  %v6376_v39 = vld [vmem:[%s8709_s1 + $0x618] ss:$12 sps:$4 sm:$0xff]  }
  0xbf   :  { %2464 = vmatpush1.bf16.msra.mxu0 %v6277_v34  ;;  %v6369_v34 = vld [vmem:[%s8709_s1 + $0x5e8] ss:$12 sps:$4 sm:$0xff]  }
  0xc0   :  { %2494 = vmatprep.subr.bf16.mxu0 %v6286_v30  ;;  %v6375_v30 = vld [vmem:[%s8709_s1 + $0x604] ss:$12 sps:$4 sm:$0xff]  }
  0xc1   :  { %5639 = vmatpush3.bf16.msra.mxu1 %v6324_v44  ;;  %v6383_v44 = vld [vmem:[%s8709_s1 + $0x648] ss:$12 sps:$4 sm:$0xff]  }
  0xc2   :  { %2466 = vmatmul.mubr.bf16.vlgmr.msra.gmra.mrb[0].mxu0 %v7130_v57  ;;  %v6331_v57 = vld [vmem:[%s8709_s1 + $0x818] ss:$12 sps:$4 sm:$0xff]   ;;  %5640 = vmatprep.subr.bf16.mxu1 %v6330_v45  ;;  %v6387_v45 = vld [vmem:[%s8709_s1 + $0x660] ss:$12 sps:$4 sm:$0xff]  }
  0xc3   :  { %2495 = vmatpush1.bf16.msra.mxu0 %v6284_v41  ;;  %2475 = vmatprep.mubr.bf16.mxu0 %v7157_v1  ;;  %v6297_v1 = vld [vmem:[%s8709_s1 + $0x4b0] ss:$12 sps:$4 sm:$0xff]   ;;  %v6382_v41 = vld [vmem:[%s8709_s1 + $0x634] ss:$12 sps:$4 sm:$0xff]  }
  0xc4   :  { %2496 = vmatprep.subr.bf16.mxu0 %v6291_v42  ;;  %v6380_v42 = vld [vmem:[%s8709_s1 + $0x630] ss:$12 sps:$4 sm:$0xff]  }
  0xc5   :  { %5641 = vmatpush3.bf16.msra.mxu1 %v6331_v57  ;;  %v6395_v57 = vld [vmem:[%s8709_s1 + $0x694] ss:$12 sps:$4 sm:$0xff]  }
  0xc6   :  { %5642 = vmatprep.subr.bf16.mxu1 %v6335_v47 }
  0xc7   :  { %2497 = vmatpush1.bf16.msra.mxu0 %v6289_v46  ;;  %v6390_v46 = vld [vmem:[%s8709_s1 + $0x678] ss:$12 sps:$4 sm:$0xff]  }
  0xc8   :  { %2498 = vmatprep.subr.bf16.mxu0 %v6299_v40  ;;  %v479_v40 = vlaneseq }
  0xc9   :  { %5643 = vmatpush3.bf16.msra.mxu1 %v6336_v50  ;;  %v6398_v50 = vld [vmem:[%s8709_s1 + $0x6ac] ss:$12 sps:$4 sm:$0xff]  }
  0xca   :  { %2476 = vmatmul.mubr.bf16.gmra.mrb[4].mxu0 %v7166_v3  ;;  %5715 = vmatprep.subr.bf16.mxu1 %v6697_v59  ;;  %v6307_v3 = vld [vmem:[%s8709_s1 + $0x4e0] ss:$12 sps:$4 sm:$0xff]  }
  0xcb   :  { %2499 = vmatpush1.bf16.msra.mxu0 %v6297_v1  ;;  %2485 = vmatprep.mubr.bf16.mxu0 %v7193_v12  ;;  %v6314_v12 = vld [vmem:[%s8709_s1 + $0x4fc] ss:$12 sps:$4 sm:$0xff]  }
  0xcc   :  { %2500 = vmatprep.subr.bf16.mxu0 %v6304_v49  ;;  %3051 = vmatmul.mubr.bf16.vlgmr.msra.gmra.mrb[60].mxu1 %v6340_v54  ;;  %v6393_v1 = vld [vmem:[%s8709_s1 + $0x690] ss:$12 sps:$4 sm:$0xff]  }
  0xcd   :  { %5716 = vmatpush3.bf16.msra.mxu1 %v6343_v55  ;;  %3058 = vmatprep.mubr.bf16.mxu1 %v6351_v56  ;;  %v6396_v56 = vld [vmem:[%s8709_s1 + $0x6a8] ss:$12 sps:$4 sm:$0xff]  }
  0xce   :  { %5717 = vmatprep.subr.bf16.mxu1 %v6697_v59 }
  0xcf   :  { %2501 = vmatpush1.bf16.msra.mxu0 %v6302_v51 }
  0xd0   :  { %2502 = vmatprep.subr.bf16.mxu0 %v6309_v52 }
  0xd1   :  { %5718 = vmatpush3.bf16.msra.mxu1 %v6347_v60  ;;  %v7708_v60 = vld [vmem:[%s8710_s2] sm:$0x7] }
  0xd2   :  { %2486 = vmatmul.mubr.bf16.gmra.mrb[8].mxu0 %v7198_v14  ;;  %v6354_v14 = vld [vmem:[%s8709_s1 + $0x938] ss:$12 sps:$4 sm:$0xff]   ;;  %5719 = vmatprep.subr.bf16.mxu1 %v6697_v59 }
  0xd3   :  { %2503 = vmatpush1.bf16.msra.mxu0 %v6307_v3  ;;  %2526 = vmatprep.mubr.bf16.mxu0 %v7224_v22  ;;  %v6320_v22 = vld [vmem:[%s8709_s1 + $0x510] ss:$12 sps:$4 sm:$0xff]  }
  0xd4   :  { %2504 = vmatprep.subr.bf16.mxu0 %v6314_v12  ;;  %3059 = vmatmul.mubr.bf16.gmra.mrb[64].mxu1 %v6353_v0  ;;  %v6401_v12 = vld [vmem:[%s8709_s1 + $0x6c4] ss:$12 sps:$4 sm:$0xff]  }
  0xd5   :  { %5720 = vmatpush3.bf16.msra.mxu1 %v6354_v14  ;;  %3066 = vmatprep.mubr.bf16.mxu1 %v7546_v2 }
  0xd6   :  { %5721 = vmatprep.subr.bf16.mxu1 %v6697_v59 }
  0xd7   :  { %2505 = vmatpush1.bf16.msra.mxu0 %v6312_v62 }
  0xd8   :  { %2506 = vmatprep.subr.bf16.mxu0 %v6322_v63 }
  0xd9   :  { %5722 = vmatpush3.bf16.msra.mxu1 %v6358_v5 }
  0xda   :  { %5723 = vmatprep.subr.bf16.mxu1 %v6697_v59 }
  0xdb   :  { %2507 = vmatpush1.bf16.msra.mxu0 %v6320_v22  ;;  %v6399_v22 = vld [vmem:[%s8709_s1 + $0x6c0] ss:$12 sps:$4 sm:$0xff]  }
  0xdc   :  { %2508 = vmatprep.subr.bf16.mxu0 %v6327_v4  ;;  %3067 = vmatmul.mubr.bf16.gmra.mrb[68].mxu1 %v7566_v8 }
  0xdd   :  { %5724 = vmatpush3.bf16.msra.mxu1 %v6364_v9  ;;  %5727 = vmatprep.mubr.msk.bf16.mxu1 %vm6698_vm0, %v6697_v59 }
  0xde   :  { %5725 = vmatprep.subr.bf16.mxu1 %v6697_v59 }
  0xdf   :  { %2509 = vmatpush1.bf16.msra.mxu0 %v6325_v6  ;;  %v6404_v6 = vld [vmem:[%s8709_s1 + $0x6dc] ss:$12 sps:$4 sm:$0xff]  }
  0xe0   :  { %2510 = vmatprep.subr.bf16.mxu0 %v6334_v7 }
  0xe1   :  { %5726 = vmatpush3.bf16.msra.mxu1 %v6368_v13 }
  0xe3   :  { %2511 = vmatpush1.bf16.msra.mxu0 %v6332_v10  ;;  %v6402_v10 = vld [vmem:[%s8709_s1 + $0x6d8] ss:$12 sps:$4 sm:$0xff]  }
  0xe4   :  { %2512 = vmatprep.subr.bf16.mxu0 %v6339_v11  ;;  %5728 = vmatmul.mubr.msk.bf16.vlgmr.msra.gmra.mrb[72].mxu1 %vm2301_vm1, %v6372_v17  ;;  %v6407_v11 = vld [vmem:[%s8709_s1 + $0x6f4] ss:$12 sps:$4 sm:$0xff]   ;;  %v6405_v17 = vld [vmem:[%s8709_s1 + $0x6f0] ss:$12 sps:$4 sm:$0xff]  }
  0xe5   :  { %5731 = vmatprep.mubr.msk.bf16.mxu1 %vm6698_vm0, %v6697_v59 }
  0xe7   :  { %2513 = vmatpush1.bf16.msra.mxu0 %v6337_v15 }
  0xe8   :  { %2514 = vmatprep.subr.bf16.mxu0 %v6346_v16 }
  0xeb   :  { %2515 = vmatpush1.bf16.msra.mxu0 %v6344_v19 }
  0xec   :  { %2516 = vmatprep.subr.bf16.mxu0 %v6350_v20  ;;  %5732 = vmatmul.mubr.msk.bf16.gmra.mrb[76].mxu1 %vm2301_vm1, %v7612_v24 }
  0xed   :  { %5735 = vmatprep.mubr.msk.bf16.mxu1 %vm6698_vm0, %v6697_v59 }
  0xef   :  { %2517 = vmatpush1.bf16.msra.mxu0 %v6348_v21 }
  0xf0   :  { %2518 = vmatprep.subr.bf16.mxu0 %v6357_v23  ;;  %v6410_v23 = vld [vmem:[%s8709_s1 + $0x70c] ss:$12 sps:$4 sm:$0xff]  }
  0xf3   :  { %2519 = vmatpush1.bf16.msra.mxu0 %v6355_v18 }
  0xf4   :  { %2520 = vmatprep.subr.bf16.mxu0 %v6361_v25  ;;  %5736 = vmatmul.mubr.msk.bf16.gmra.mrb[80].mxu1 %vm2301_vm1, %v7633_v29 }
  0xf7   :  { %2521 = vmatpush1.bf16.msra.mxu0 %v6359_v26 }
  0xf8   :  { %2522 = vmatprep.subr.bf16.mxu0 %v6367_v28  ;;  %v6408_v28 = vld [vmem:[%s8709_s1 + $0x708] ss:$12 sps:$4 sm:$0xff]  }
  0xfb   :  { %2523 = vmatpush1.bf16.msra.mxu0 %v6365_v31 }
  0xfc   :  { %2524 = vmatprep.subr.bf16.mxu0 %v6371_v32  ;;  %v6413_v32 = vld [vmem:[%s8709_s1 + $0x724] ss:$12 sps:$4 sm:$0xff]  }
  0xff   :  { %2525 = vmatpush1.bf16.msra.mxu0 %v6369_v34 }
 0x100   :  { %2555 = vmatprep.subr.bf16.mxu0 %v6375_v30 }
 0x102   :  { %2527 = vmatmul.mubr.bf16.vlgmr.msra.gmra.mrb[0].mxu0 %v7263_v33  ;;  %v6385_v33 = vld [vmem:[%s8709_s1 + $0x64c] ss:$12 sps:$4 sm:$0xff]  }
 0x103   :  { %2556 = vmatpush1.bf16.msra.mxu0 %v6373_v36  ;;  %2536 = vmatprep.mubr.bf16.mxu0 %v7281_v37  ;;  %v6389_v37 = vld [vmem:[%s8709_s1 + $0x664] ss:$12 sps:$4 sm:$0xff]  }
 0x104   :  { %2557 = vmatprep.subr.bf16.mxu0 %v6378_v38  ;;  %v6411_v38 = vld [vmem:[%s8709_s1 + $0x720] ss:$12 sps:$4 sm:$0xff]  }
 0x107   :  { %2558 = vmatpush1.bf16.msra.mxu0 %v6376_v39 }
 0x108   :  { %2559 = vmatprep.subr.bf16.mxu0 %v6382_v41 }
 0x10a   :  { %2537 = vmatmul.mubr.bf16.gmra.mrb[4].mxu0 %v7299_v43  ;;  %v6392_v43 = vld [vmem:[%s8709_s1 + $0x67c] ss:$12 sps:$4 sm:$0xff]  }
 0x10b   :  { %2560 = vmatpush1.bf16.msra.mxu0 %v6380_v42  ;;  %2546 = vmatprep.mubr.bf16.mxu0 %v7319_v48  ;;  %v5474_v48 = vpop.f32.mrb[0].mxu1 }
 0x10c   :  { %2561 = vmatprep.subr.bf16.mxu0 %v6385_v33  ;;  %v5475_v47 = vpop.f32.mrb[1].mxu1  ;;  %v6416_v33 = vld [vmem:[%s8709_s1 + $0x73c] ss:$12 sps:$4 sm:$0xff]  }
 0x10d   :  { %v5477_v49 = vpop.f32.mrb[2].mxu1 }
 0x10e   :  { %v5478_v51 = vpop.f32.mrb[3].mxu1 }
 0x10f   :  { %2562 = vmatpush1.bf16.msra.mxu0 %v6383_v44  ;;  %v5479_v52 = vadd.f32 %v5478_v51, %v5477_v49  ;;  %v5480_v54 = vpop.f32.mrb[4].mxu1 }
 0x110   :  { %2563 = vmatprep.subr.bf16.mxu0 %v6389_v37  ;;  %v5481_v55 = vpop.f32.mrb[5].mxu1 }
 0x111   :  { %v5482_v59 = vadd.f32 %v5481_v55, %v5480_v54  ;;  %v5483_v3 = vpop.f32.mrb[6].mxu1  ;;  %v6420_v54 = vld [vmem:[%s8709_s1 + $0x768] ss:$12 sps:$4 sm:$0xff]   ;;  %v6425_v55 = vld [vmem:[%s8709_s1 + $0x784] ss:$12 sps:$4 sm:$0xff]  }
 0x112   :  { %2547 = vmatmul.mubr.bf16.gmra.mrb[8].mxu0 %v7334_v53  ;;  %v5476_v53 = vadd.f32 %v5475_v47, %v5474_v48  ;;  %v5484_v61 = vpop.f32.mrb[7].mxu1  ;;  %v6419_v48 = vld [vmem:[%s8709_s1 + $0x754] ss:$12 sps:$4 sm:$0xff]  }
 0x113   :  { %2564 = vmatpush1.bf16.msra.mxu0 %v6387_v45  ;;  %2587 = vmatprep.mubr.bf16.mxu0 %v7348_v58  ;;  %v7697_v58 = vshrl.u32 %v479_v40, 7  ;;  %v5485_v63 = vadd.f32 %v5484_v61, %v5483_v3  ;;  %v5486_v0 = vpop.f32.mrb[8].mxu1 }
 0x114   :  { %2565 = vmatprep.subr.bf16.mxu0 %v6392_v43  ;;  %v5487_v14 = vpop.f32.mrb[9].mxu1  ;;  %v6414_v43 = vld [vmem:[%s8709_s1 + $0x738] ss:$12 sps:$4 sm:$0xff]  }
 0x115   :  { %v489_v62 = vsub.s32 2, %v7697_v58  ;;  %v5488_v4 = vadd.f32 %v5487_v14, %v5486_v0  ;;  %v5489_v5 = vpop.f32.mrb[10].mxu1 }
 0x116   :  { %v5490_v7 = vpop.f32.mrb[11].mxu1 }
 0x117   :  { %2566 = vmatpush1.bf16.msra.mxu0 %v6390_v46  ;;  %v490_v9 = vrot.slane %v7708_v60, %v489_v62 }
 0x118   :  { %2567 = vmatprep.subr.bf16.mxu0 %v6395_v57  ;;  %v5508_v15 = vpop.f32.mrb[12].mxu1 }
 0x119   :  { %v2773_v13 = vadd.f32 %v5476_v53, %v490_v9  ;;  %v5509_v16 = vpop.f32.mrb[13].mxu1  ;;  %v2776_v19 = vadd.f32 %v5479_v52, %v490_v9  ;;  %v2781_v34 = vadd.f32 %v5482_v59, %v490_v9  ;;  %v2784_v39 = vadd.f32 %v5485_v63, %v490_v9 }
 0x11a   :  { %v5510_v20 = vadd.f32 %v5509_v16, %v5508_v15  ;;  %v5511_v21 = vpop.f32.mrb[14].mxu1  ;;  %v2789_v40 = vadd.f32 %v5488_v4, %v490_v9 }
 0x11b   :  { %2568 = vmatpush1.bf16.msra.mxu0 %v6393_v1  ;;  %v5512_v18 = vpop.f32.mrb[15].mxu1  ;;  %v6417_v1 = vld [vmem:[%s8709_s1 + $0x750] ss:$12 sps:$4 sm:$0xff]  }
 0x11c   :  { %2569 = vmatprep.subr.bf16.mxu0 %v6398_v50  ;;  %v2829_v25 = vadd.f32 %v5510_v20, %v2773_v13  ;;  %v5513_v26 = vadd.f32 %v5512_v18, %v5511_v21  ;;  %v6422_v50 = vld [vmem:[%s8709_s1 + $0x76c] ss:$12 sps:$4 sm:$0xff]  }
 0x11e   :  { %v2832_v31 = vadd.f32 %v5513_v26, %v2776_v19 }
 0x11f   :  { %2570 = vmatpush1.bf16.msra.mxu0 %v6396_v56 }
 0x120   :  { %2571 = vmatprep.subr.bf16.mxu0 %v6401_v12  ;;  %v5514_v30 = vpop.f32.mrb[16].mxu1 }
 0x121   :  { %v5515_v36 = vpop.f32.mrb[17].mxu1 }
 0x122   :  { %v5516_v41 = vadd.f32 %v5515_v36, %v5514_v30  ;;  %v5517_v42 = vpop.f32.mrb[18].mxu1 }
 0x123   :  { %2572 = vmatpush1.bf16.msra.mxu0 %v6399_v22  ;;  %v5518_v44 = vpop.f32.mrb[19].mxu1 }
 0x124   :  { %2573 = vmatprep.subr.bf16.mxu0 %v6404_v6  ;;  %v2837_v37 = vadd.f32 %v5516_v41, %v2781_v34  ;;  %v5519_v45 = vadd.f32 %v5518_v44, %v5517_v42 }
 0x126   :  { %v2840_v46 = vadd.f32 %v5519_v45, %v2784_v39 }
 0x127   :  { %2574 = vmatpush1.bf16.msra.mxu0 %v6402_v10 }
 0x128   :  { %2575 = vmatprep.subr.bf16.mxu0 %v6407_v11  ;;  %v5520_v57 = vpop.f32.mrb[20].mxu1 }
 0x129   :  { %v5521_v47 = vpop.f32.mrb[21].mxu1 }
 0x12a   :  { %v5522_v53 = vadd.f32 %v5521_v47, %v5520_v57  ;;  %v5523_v49 = vpop.f32.mrb[22].mxu1 }
 0x12b   :  { %2576 = vmatpush1.bf16.msra.mxu0 %v6405_v17  ;;  %v5524_v51 = vpop.f32.mrb[23].mxu1 }
 0x12c   :  { %2577 = vmatprep.subr.bf16.mxu0 %v6410_v23  ;;  %v7756_v52 = vadd.f32 %v5522_v53, %v2789_v40 }
 0x12f   :  { %2578 = vmatpush1.bf16.msra.mxu0 %v6408_v28 }
 0x130   :  { %2579 = vmatprep.subr.bf16.mxu0 %v6413_v32 }
 0x133   :  { %2580 = vmatpush1.bf16.msra.mxu0 %v6411_v38 }
 0x134   :  { %2581 = vmatprep.subr.bf16.mxu0 %v6416_v33 }
 0x137   :  { %2582 = vmatpush1.bf16.msra.mxu0 %v6414_v43 }
 0x138   :  { %2583 = vmatprep.subr.bf16.mxu0 %v6419_v48 }
 0x13b   :  { %2584 = vmatpush1.bf16.msra.mxu0 %v6417_v1 }
 0x13c   :  { %2585 = vmatprep.subr.bf16.mxu0 %v6422_v50 }
 0x13d   :  { %14 = vsyncpa [#allocation3], 0  ;;  %v6423_v56 = vld [vmem:[%s8709_s1 + $0x780] ss:$12 sps:$4 sm:$0xff]   ;;  %v6428_v59 = vld [vmem:[%s8709_s1 + $0x79c] ss:$12 sps:$4 sm:$0xff]  }
 0x13e   :  { %v6665_v3 = vld [vmem:[%s8708_s0 + $0x20] ss:$52 sps:$4 sm:$0xff]   ;;  %v6426_v12 = vld [vmem:[%s8709_s1 + $0x798] ss:$12 sps:$4 sm:$0xff]   ;;  %v5542_v63 = vpop.f32.mrb[24].mxu1  ;;  %s6702_s27 = smov 64  }
 0x13f   :  { %2586 = vmatpush1.bf16.msra.mxu0 %v6420_v54  ;;  %v6666_v61 = vld [vmem:[%s8708_s0 + $0x8c] ss:$52 sps:$4 sm:$0xff]   ;;  %v5543_v14 = vpop.f32.mrb[25].mxu1  ;;  %v6429_v6 = vld [vmem:[%s8709_s1 + $0x7b0] ss:$12 sps:$4 sm:$0xff]   ;;  %s6703_s28 = smov 32  }
 0x140   :  { %2616 = vmatprep.subr.bf16.mxu0 %v6425_v55  ;;  %v6431_v0 = vld [vmem:[%s8709_s1 + $0x7b4] ss:$12 sps:$4 sm:$0xff]   ;;  %v5544_v22 = vadd.f32 %v5543_v14, %v5542_v63  ;;  %v5545_v4 = vpop.f32.mrb[26].mxu1  ;;  %v6434_v10 = vld [vmem:[%s8709_s1 + $0x7cc] ss:$12 sps:$4 sm:$0xff]   ;;  %s6704_s2 = smov 80  }
 0x141   :  { %v5546_v5 = vpop.f32.mrb[27].mxu1  ;;  %v6667_v13 = vld [vmem:[%s8708_s0 + $0x88] ss:$52 sps:$4 sm:$0xff]   ;;  %v6437_v17 = vld [vmem:[%s8709_s1 + $0x7e4] ss:$12 sps:$4 sm:$0xff]   ;;  %s6705_s29 = smov 48  }
 0x142   :  { %2588 = vmatmul.mubr.bf16.vlgmr.msra.gmra.mrb[0].mxu0 %v6665_v3  ;;  %v2885_v7 = vadd.f32 %v5544_v22, %v2829_v25  ;;  %v5547_v9 = vadd.f32 %v5546_v5, %v5545_v4  ;;  %v6432_v15 = vld [vmem:[%s8709_s1 + $0x7c8] ss:$12 sps:$4 sm:$0xff]   ;;  %v5548_v16 = vpop.f32.mrb[28].mxu1  ;;  %v6435_v18 = vld [vmem:[%s8709_s1 + $0x7e0] ss:$12 sps:$4 sm:$0xff]   ;;  %vm3535_vm2 = vcmask 130048  }
 0x143   :  { %2617 = vmatpush1.bf16.msra.mxu0 %v6423_v56  ;;  %2597 = vmatprep.mubr.bf16.mxu0 %v6666_v61  ;;  %v5549_v19 = vpop.f32.mrb[29].mxu1  ;;  %v6668_v32 = vld [vmem:[%s8708_s0 + $0x2c] ss:$52 sps:$4 sm:$0xff]   ;;  %v6441_v41 = vld [vmem:[%s8709_s1 + $0x810] ss:$12 sps:$4 sm:$0xff]   ;;  %vm3541_vm3 = vcmask 261120  }
 0x144   :  { %2618 = vmatprep.subr.bf16.mxu0 %v6428_v59  ;;  %v2888_v11 = vadd.f32 %v5547_v9, %v2832_v31  ;;  %v5550_v20 = vadd.f32 %v5549_v19, %v5548_v16  ;;  %v5551_v21 = vpop.f32.mrb[30].mxu1  ;;  %v6438_v31 = vld [vmem:[%s8709_s1 + $0x7f8] ss:$12 sps:$4 sm:$0xff]   ;;  %v6443_v30 = vld [vmem:[%s8709_s1 + $0x814] ss:$12 sps:$4 sm:$0xff]   ;;  %vm3547_vm4 = vcmask 392192  }
 0x145   :  { %v5552_v23 = vpop.f32.mrb[31].mxu1  ;;  %v6446_v33 = vld [vmem:[%s8709_s1 + $0x82c] ss:$12 sps:$4 sm:$0xff]   ;;  %v6444_v44 = vld [vmem:[%s8709_s1 + $0x828] ss:$12 sps:$4 sm:$0xff]   ;;  %vm3553_vm5 = vcmask 523264  }
 0x146   :  { %v2893_v25 = vadd.f32 %v5550_v20, %v2837_v37  ;;  %v5553_v26 = vadd.f32 %v5552_v23, %v5551_v21  ;;  %v6449_v37 = vld [vmem:[%s8709_s1 + $0x844] ss:$12 sps:$4 sm:$0xff]   ;;  %v6447_v45 = vld [vmem:[%s8709_s1 + $0x840] ss:$12 sps:$4 sm:$0xff]   ;;  %v6452_v43 = vld [vmem:[%s8709_s1 + $0x85c] ss:$12 sps:$4 sm:$0xff]  }
 0x147   :  { %2619 = vmatpush1.bf16.msra.mxu0 %v6426_v12  ;;  %v6455_v40 = vld [vmem:[%s8709_s1 + $0x874] ss:$12 sps:$4 sm:$0xff]   ;;  %v6453_v49 = vld [vmem:[%s8709_s1 + $0x870] ss:$12 sps:$4 sm:$0xff]   ;;  %v6470_v19 = vld [vmem:[%s8709_s1 + $0x8ec] ss:$12 sps:$4 sm:$0xff]  }
 0x148   :  { %2620 = vmatprep.subr.bf16.mxu0 %v6431_v0  ;;  %v2896_v28 = vadd.f32 %v5553_v26, %v2840_v46  ;;  %v5554_v34 = vpop.f32.mrb[32].mxu1  ;;  %v6450_v46 = vld [vmem:[%s8709_s1 + $0x858] ss:$12 sps:$4 sm:$0xff]   ;;  %v6456_v55 = vld [vmem:[%s8709_s1 + $0x888] ss:$12 sps:$4 sm:$0xff]   ;;  %vm3559_vm6 = vcmask 654336  }
 0x149   :  { %v5555_v36 = vpop.f32.mrb[33].mxu1  ;;  %v6461_v59 = vld [vmem:[%s8709_s1 + $0x8a4] ss:$12 sps:$4 sm:$0xff]   ;;  %v6459_v0 = vld [vmem:[%s8709_s1 + $0x8a0] ss:$12 sps:$4 sm:$0xff]   ;;  %vm3586_vm7 = vcmask 785412  }
 0x14a   :  { %2598 = vmatmul.mubr.bf16.gmra.mrb[4].mxu0 %v6667_v13  ;;  %v5556_v38 = vadd.f32 %v5555_v36, %v5554_v34  ;;  %v5557_v39 = vpop.f32.mrb[34].mxu1  ;;  %v6464_v4 = vld [vmem:[%s8709_s1 + $0x8bc] ss:$12 sps:$4 sm:$0xff]   ;;  %v6467_v9 = vld [vmem:[%s8709_s1 + $0x8d4] ss:$12 sps:$4 sm:$0xff]   ;;  %vm3597_vm8 = vcmask 785414  }
 0x14b   :  { %2621 = vmatpush1.bf16.msra.mxu0 %v6429_v6  ;;  %2607 = vmatprep.mubr.bf16.mxu0 %v7433_v27  ;;  %v6440_v27 = vld [vmem:[%s8709_s1 + $0x7fc] ss:$12 sps:$4 sm:$0xff]   ;;  %v6462_v6 = vld [vmem:[%s8709_s1 + $0x8b8] ss:$12 sps:$4 sm:$0xff]   ;;  %v6471_v23 = vld [vmem:[%s8709_s1 + $0x900] ss:$12 sps:$4 sm:$0xff]  }
 0x14c   :  { %2622 = vmatprep.subr.bf16.mxu0 %v6434_v10  ;;  %v2901_v42 = vadd.f32 %v5556_v38, %v7756_v52  ;;  %v6458_v52 = vld [vmem:[%s8709_s1 + $0x88c] ss:$12 sps:$4 sm:$0xff]   ;;  %v6465_v16 = vld [vmem:[%s8709_s1 + $0x8d0] ss:$12 sps:$4 sm:$0xff]   ;;  %v6468_v20 = vld [vmem:[%s8709_s1 + $0x8e8] ss:$12 sps:$4 sm:$0xff]  }
 0x14d   :  { %v6473_v21 = vld [vmem:[%s8709_s1 + $0x904] ss:$12 sps:$4 sm:$0xff]   ;;  %vm3566_vm9 = vcmask 779264   ;;  %vm3575_vm10 = vcmask 785410   ;;  %vm3577_vm11 = vcmask 781312   ;;  %vm3588_vm12 = vcmask 783360  }
 0x14e   :  { %v6474_v26 = vld [vmem:[%s8709_s1 + $0x918] ss:$12 sps:$4 sm:$0xff]   ;;  %v6477_v38 = vld [vmem:[%s8709_s1 + $0x930] ss:$12 sps:$4 sm:$0xff]   ;;  %vm3624_vm13 = vcmask 1040384   ;;  %vm3626_vm14 = vcmask 1041408  }
 0x14f   :  { %2623 = vmatpush1.bf16.msra.mxu0 %v6432_v15  ;;  %vm3628_vm15 = vcmask 1042432   ;;  %vm3630_vm0 = vcmask 1043456   ;;  %s6706_s23 = smov 16  }
 0x150   :  { %2624 = vmatprep.subr.bf16.mxu0 %v6437_v17 }
 0x152   :  { %2608 = vmatmul.mubr.bf16.gmra.mrb[8].mxu0 %v7454_v35  ;;  %v5558_v35 = vpop.f32.mrb[35].mxu1 }
 0x153   :  { %2625 = vmatpush1.bf16.msra.mxu0 %v6435_v18  ;;  %2648 = vmatprep.mubr.bf16.mxu0 %v6668_v32  ;;  %v6476_v18 = vld [vmem:[%s8709_s1 + $0x91c] ss:$12 sps:$4 sm:$0xff]  }
 0x154   :  { %2626 = vmatprep.subr.bf16.mxu0 %v6440_v27  ;;  %v6670_v27 = vld [vmem:[%s8708_s0 + $0x94] ss:$52 sps:$4 sm:$0xff]  }
 0x157   :  { %2627 = vmatpush1.bf16.msra.mxu0 %v6438_v31  ;;  %v6479_v31 = vld [vmem:[%s8709_s1 + $0x934] ss:$12 sps:$4 sm:$0xff]  }
 0x158   :  { %2628 = vmatprep.subr.bf16.mxu0 %v6443_v30 }
 0x15b   :  { %2629 = vmatpush1.bf16.msra.mxu0 %v6441_v41  ;;  %v6482_v41 = vld [vmem:[%s8709_s1 + $0x94c] ss:$12 sps:$4 sm:$0xff]  }
 0x15c   :  { %2630 = vmatprep.subr.bf16.mxu0 %v6446_v33  ;;  %v6671_v33 = vld [vmem:[%s8708_s0 + $0x90] ss:$52 sps:$4 sm:$0xff]  }
 0x15f   :  { %2631 = vmatpush1.bf16.msra.mxu0 %v6444_v44  ;;  %v5576_v48 = vpop.f32.mrb[36].mxu1  ;;  %v6480_v44 = vld [vmem:[%s8709_s1 + $0x948] ss:$12 sps:$4 sm:$0xff]  }
 0x160   :  { %2632 = vmatprep.subr.bf16.mxu0 %v6449_v37  ;;  %v5577_v57 = vpop.f32.mrb[37].mxu1 }
 0x161   :  { %v5578_v47 = vadd.f32 %v5577_v57, %v5576_v48  ;;  %v5579_v1 = vpop.f32.mrb[38].mxu1  ;;  %v6483_v57 = vld [vmem:[%s8709_s1 + $0x960] ss:$12 sps:$4 sm:$0xff]  }
 0x162   :  { %v5580_v53 = vpop.f32.mrb[39].mxu1 }
 0x163   :  { %2633 = vmatpush1.bf16.msra.mxu0 %v6447_v45  ;;  %v2941_v50 = vadd.f32 %v5578_v47, %v2885_v7  ;;  %v5581_v51 = vadd.f32 %v5580_v53, %v5579_v1  ;;  %v6485_v45 = vld [vmem:[%s8709_s1 + $0x964] ss:$12 sps:$4 sm:$0xff]  }
 0x164   :  { %2634 = vmatprep.subr.bf16.mxu0 %v6452_v43 }
 0x165   :  { %v2944_v54 = vadd.f32 %v5581_v51, %v2888_v11 }
 0x167   :  { %2635 = vmatpush1.bf16.msra.mxu0 %v6450_v46  ;;  %v5582_v56 = vpop.f32.mrb[40].mxu1 }
 0x168   :  { %2636 = vmatprep.subr.bf16.mxu0 %v6455_v40  ;;  %v5583_v3 = vpop.f32.mrb[41].mxu1 }
 0x169   :  { %v5584_v12 = vadd.f32 %v5583_v3, %v5582_v56  ;;  %v5585_v61 = vpop.f32.mrb[42].mxu1 }
 0x16a   :  { %v5586_v63 = vpop.f32.mrb[43].mxu1 }
 0x16b   :  { %2637 = vmatpush1.bf16.msra.mxu0 %v6453_v49  ;;  %v2949_v14 = vadd.f32 %v5584_v12, %v2893_v25  ;;  %v5587_v22 = vadd.f32 %v5586_v63, %v5585_v61  ;;  %v6669_v25 = vld [vmem:[%s8708_s0 + $0x28] ss:$52 sps:$4 sm:$0xff]   ;;  %v6486_v49 = vld [vmem:[%s8709_s1 + $0x978] ss:$12 sps:$4 sm:$0xff]  }
 0x16c   :  { %2638 = vmatprep.subr.bf16.mxu0 %v6458_v52 }
 0x16d   :  { %v2952_v5 = vadd.f32 %v5587_v22, %v2896_v28 }
 0x16f   :  { %2639 = vmatpush1.bf16.msra.mxu0 %v6456_v55  ;;  %v5588_v7 = vpop.f32.mrb[44].mxu1 }
 0x170   :  { %2640 = vmatprep.subr.bf16.mxu0 %v6461_v59  ;;  %v5589_v10 = vpop.f32.mrb[45].mxu1 }
 0x171   :  { %v5590_v11 = vadd.f32 %v5589_v10, %v5588_v7  ;;  %v5591_v13 = vpop.f32.mrb[46].mxu1 }
 0x172   :  { %v5592_v15 = vpop.f32.mrb[47].mxu1 }
 0x173   :  { %2641 = vmatpush1.bf16.msra.mxu0 %v6459_v0  ;;  %v2957_v17 = vadd.f32 %v5590_v11, %v2901_v42 }
 0x174   :  { %2642 = vmatprep.subr.bf16.mxu0 %v6464_v4 }
 0x177   :  { %2643 = vmatpush1.bf16.msra.mxu0 %v6462_v6 }
 0x178   :  { %2644 = vmatprep.subr.bf16.mxu0 %v6467_v9 }
 0x17b   :  { %2645 = vmatpush1.bf16.msra.mxu0 %v6465_v16 }
 0x17c   :  { %2646 = vmatprep.subr.bf16.mxu0 %v6470_v19 }
 0x17f   :  { %2647 = vmatpush1.bf16.msra.mxu0 %v6468_v20  ;;  %v5610_v28 = vpop.f32.mrb[48].mxu1 }
 0x180   :  { %2677 = vmatprep.subr.bf16.mxu0 %v6473_v21  ;;  %v5611_v32 = vpop.f32.mrb[49].mxu1 }
 0x181   :  { %v5612_v34 = vadd.f32 %v5611_v32, %v5610_v28  ;;  %v5613_v30 = vpop.f32.mrb[50].mxu1 }
 0x182   :  { %2649 = vmatmul.mubr.bf16.vlgmr.msra.gmra.mrb[0].mxu0 %v6669_v25  ;;  %v5614_v36 = vpop.f32.mrb[51].mxu1 }
 0x183   :  { %2678 = vmatpush1.bf16.msra.mxu0 %v6471_v23  ;;  %2658 = vmatprep.mubr.bf16.mxu0 %v6670_v27  ;;  %v2997_v39 = vadd.f32 %v5612_v34, %v2941_v50  ;;  %v5615_v35 = vadd.f32 %v5614_v36, %v5613_v30  ;;  %v6699_v50 = vmov 0  }
 0x184   :  { %2679 = vmatprep.subr.bf16.mxu0 %v6476_v18 }
 0x185   :  { %v3000_v42 = vadd.f32 %v5615_v35, %v2944_v54 }
 0x187   :  { %2680 = vmatpush1.bf16.msra.mxu0 %v6474_v26  ;;  %v5616_v37 = vpop.f32.mrb[52].mxu1 }
 0x188   :  { %2681 = vmatprep.subr.bf16.mxu0 %v6479_v31  ;;  %v5617_v43 = vpop.f32.mrb[53].mxu1 }
 0x189   :  { %v5618_v46 = vadd.f32 %v5617_v43, %v5616_v37  ;;  %v5619_v48 = vpop.f32.mrb[54].mxu1  ;;  %v7941_v37 = vsub.s32 0, %v7697_v58 }
 0x18a   :  { %2659 = vmatmul.mubr.bf16.gmra.mrb[4].mxu0 %v6671_v33  ;;  %v5620_v40 = vpop.f32.mrb[55].mxu1 }
 0x18b   :  { %2682 = vmatpush1.bf16.msra.mxu0 %v6477_v38  ;;  %2668 = vmatprep.mubr.bf16.mxu0 %v7546_v2  ;;  %v3005_v47 = vadd.f32 %v5618_v46, %v2949_v14  ;;  %v5621_v1 = vadd.f32 %v5620_v40, %v5619_v48  ;;  %v6488_v2 = vld [vmem:[%s8709_s1 + $0x97c] ss:$12 sps:$4 sm:$0xff]   ;;  %v7944_v46 = vsub.s32 1, %v7697_v58  ;;  %v482_v48 = vrot.slane %v7708_v60, %v7941_v37  ;;  %s6701_s1 = smov 96  }
 0x18c   :  { %2683 = vmatprep.subr.bf16.mxu0 %v6482_v41 }
 0x18d   :  { %v3008_v53 = vadd.f32 %v5621_v1, %v2952_v5  ;;  %v486_v40 = vrot.slane %v7708_v60, %v7944_v46 }
 0x18f   :  { %2684 = vmatpush1.bf16.msra.mxu0 %v6480_v44  ;;  %v5622_v51 = vpop.f32.mrb[56].mxu1 }
 0x190   :  { %2685 = vmatprep.subr.bf16.mxu0 %v6485_v45  ;;  %v5623_v52 = vpop.f32.mrb[57].mxu1 }
 0x191   :  { %v5624_v54 = vadd.f32 %v5623_v52, %v5622_v51  ;;  %v5625_v55 = vpop.f32.mrb[58].mxu1 }
 0x192   :  { %2669 = vmatmul.mubr.bf16.gmra.mrb[8].mxu0 %v7566_v8  ;;  %v5626_v56 = vpop.f32.mrb[59].mxu1  ;;  %v6672_v8 = vld [vmem:[%s8708_s0 + $0x30] ss:$52 sps:$4 sm:$0xff]   ;;  %s6700_s0 = smov 112  }
 0x193   :  { %2686 = vmatpush1.bf16.msra.mxu0 %v6483_v57  ;;  %2709 = vmatprep.mubr.bf16.mxu0 %v6699_v50  ;;  %v3013_v59 = vadd.f32 %v5624_v54, %v2957_v17 }
 0x194   :  { %2687 = vmatprep.subr.bf16.mxu0 %v6488_v2 }
 0x197   :  { %2688 = vmatpush1.bf16.msra.mxu0 %v6486_v49 }
 0x19a   :  { %5323 = vmatmul.mubr.msk.bf16.vlgmr.msra.gmra.mrb[0].mxu0 %vm2301_vm1, %v6672_v8 }
 0x19b   :  { %2719 = vmatprep.mubr.bf16.mxu0 %v6699_v50 }
 0x19f   :  { %v5644_v3 = vpop.f32.mrb[60].mxu1 }
 0x1a0   :  { %v5645_v12 = vpop.f32.mrb[61].mxu1 }
 0x1a1   :  { %v5646_v61 = vadd.f32 %v5645_v12, %v5644_v3  ;;  %v5647_v63 = vpop.f32.mrb[62].mxu1 }
 0x1a2   :  { %5324 = vmatmul.mubr.msk.bf16.gmra.mrb[4].mxu0 %vm2301_vm1, %v7612_v24  ;;  %v5648_v0 = vpop.f32.mrb[63].mxu1 }
 0x1a3   :  { %2729 = vmatprep.mubr.bf16.mxu0 %v6699_v50  ;;  %v5649_v14 = vadd.f32 %v5648_v0, %v5647_v63  ;;  %v3053_v22 = vadd.f32 %v5646_v61, %v2997_v39 }
 0x1a5   :  { %v3056_v4 = vadd.f32 %v5649_v14, %v3000_v42 }
 0x1a7   :  { %v5650_v5 = vpop.f32.mrb[64].mxu1 }
 0x1a8   :  { %v5651_v6 = vpop.f32.mrb[65].mxu1 }
 0x1a9   :  { %v5652_v7 = vadd.f32 %v5651_v6, %v5650_v5  ;;  %v5653_v9 = vpop.f32.mrb[66].mxu1 }
 0x1aa   :  { %5325 = vmatmul.mubr.msk.bf16.gmra.mrb[8].mxu0 %vm2301_vm1, %v7633_v29  ;;  %v5654_v10 = vpop.f32.mrb[67].mxu1 }
 0x1ab   :  { %v5655_v11 = vadd.f32 %v5654_v10, %v5653_v9  ;;  %v3061_v24 = vadd.f32 %v5652_v7, %v3005_v47 }
 0x1ad   :  { %v3064_v13 = vadd.f32 %v5655_v11, %v3008_v53 }
 0x1af   :  { %v5656_v15 = vpop.f32.mrb[68].mxu1 }
 0x1b0   :  { %v5657_v16 = vpop.f32.mrb[69].mxu1 }
 0x1b1   :  { %v5658_v17 = vadd.f32 %v5657_v16, %v5656_v15  ;;  %v5659_v19 = vpop.f32.mrb[70].mxu1 }
 0x1b2   :  { %v5660_v20 = vpop.f32.mrb[71].mxu1 }
 0x1b3   :  { %v3069_v21 = vadd.f32 %v5658_v17, %v3013_v59 }
 0x1b7   :  { %v3108_v23 = vpop.f32.mrb[72].mxu1 }
 0x1b8   :  { %v7930_v18 = vadd.f32 %v3108_v23, %v3053_v22  ;;  %v5729_v25 = vpop.f32.mrb[73].mxu1 }
 0x1b9   :  { %v3111_v26 = vpop.f32.mrb[74].mxu1 }
 0x1ba   :  { %v7932_v29 = vadd.f32 %v3111_v26, %v3056_v4  ;;  %v5730_v27 = vpop.f32.mrb[75].mxu1  ;;  %v3132_v20 = vmax.f32 %v7930_v18, 0.0 }
 0x1bc   :  { %v3135_v27 = vmax.f32 %v7932_v29, 0.0 }
 0x1bf   :  { %v3116_v28 = vpop.f32.mrb[76].mxu1 }
 0x1c0   :  { %v7934_v31 = vadd.f32 %v3116_v28, %v3061_v24  ;;  %v5733_v32 = vpop.f32.mrb[77].mxu1 }
 0x1c1   :  { %v3119_v34 = vpop.f32.mrb[78].mxu1 }
 0x1c2   :  { %v7936_v30 = vadd.f32 %v3119_v34, %v3064_v13  ;;  %v5734_v36 = vpop.f32.mrb[79].mxu1  ;;  %v3138_v15 = vmax.f32 %v7934_v31, 0.0 }
 0x1c4   :  { %v3141_v16 = vmax.f32 %v7936_v30, 0.0 }
 0x1c6   :  { %v5865_v25 = vpack.i.bf16 %v3141_v16, %v3138_v15 }
 0x1c7   :  { %v3124_v38 = vpop.f32.mrb[80].mxu1 }
 0x1c8   :  { %v7938_v39 = vadd.f32 %v3124_v38, %v3069_v21  ;;  %v5737_v35 = vpop.f32.mrb[81].mxu1 }
 0x1c9   :  { %v3127_v41 = vpop.f32.mrb[82].mxu1 }
 0x1ca   :  { %v5738_v42 = vpop.f32.mrb[83].mxu1  ;;  %v3144_v21 = vmax.f32 %v7938_v39, 0.0 }
 0x1cc   :  { %v5870_v26 = vpack.i.bf16 %v3132_v20, %v3144_v21 }
 0x26d   :  { %v2711_v33 = vpop.f32.mrb[0].mxu0 }
 0x26e   :  { %v2713_v44 = vpop.f32.mrb[1].mxu0  ;;  %v5739_v3 = vadd.f32 %v2711_v33, %v482_v48 }
 0x26f   :  { %v2715_v45 = vpop.f32.mrb[2].mxu0  ;;  %v5740_v6 = vadd.f32 %v2713_v44, %v486_v40 }
 0x270   :  { %v2717_v43 = vpop.f32.mrb[3].mxu0  ;;  %v5741_v57 = vadd.f32 %v2715_v45, %v482_v48  ;;  %v3130_v5 = vmax.f32 %v5739_v3, 0.0 }
 0x271   :  { %v5742_v60 = vadd.f32 %v2717_v43, %v486_v40  ;;  %v3131_v19 = vmax.f32 %v5740_v6, 0.0 }
 0x272   :  { %v3133_v54 = vmax.f32 %v5741_v57, 0.0 }
 0x273   :  { %v3134_v24 = vmax.f32 %v5742_v60, 0.0 }
 0x275   :  { %v2721_v47 = vpop.f32.mrb[4].mxu0  ;;  %v5855_v23 = vpack.i.bf16 %v3134_v24, %v3131_v19 }
 0x276   :  { %v5743_v1 = vadd.f32 %v2721_v47, %v482_v48  ;;  %v2723_v2 = vpop.f32.mrb[5].mxu0 }
 0x277   :  { %v5744_v53 = vadd.f32 %v2723_v2, %v486_v40  ;;  %v2725_v49 = vpop.f32.mrb[6].mxu0 }
 0x278   :  { %v5745_v51 = vadd.f32 %v2725_v49, %v482_v48  ;;  %v2727_v52 = vpop.f32.mrb[7].mxu0  ;;  %v3136_v56 = vmax.f32 %v5743_v1, 0.0 }
 0x279   :  { %v3137_v55 = vmax.f32 %v5744_v53, 0.0  ;;  %v5746_v61 = vadd.f32 %v2727_v52, %v486_v40 }
 0x27a   :  { %v3139_v59 = vmax.f32 %v5745_v51, 0.0 }
 0x27b   :  { %v5840_v8 = vpack.i.bf16 %v3137_v55, %v3133_v54  ;;  %v3140_v10 = vmax.f32 %v5746_v61, 0.0 }
 0x27c   :  { %v5845_v12 = vpack.i.bf16 %v3139_v59, %v3136_v56 }
 0x27d   :  { %v2731_v63 = vpop.f32.mrb[8].mxu0  ;;  %5841 = vrot.lane.b32.xlu1 %v5840_v8, %s6700_s0 }
 0x27e   :  { %v7951_v0 = vadd.f32 %v2731_v63, %v482_v48  ;;  %v2733_v14 = vpop.f32.mrb[9].mxu0  ;;  %5846 = vrot.lane.b32.xlu0 %v5845_v12, %s6700_s0 }
 0x27f   :  { %v5748_v22 = vadd.f32 %v2733_v14, %v486_v40  ;;  %v2735_v4 = vpop.f32.mrb[10].mxu0 }
 0x280   :  { %v3142_v7 = vmax.f32 %v7951_v0, 0.0  ;;  %v2736_v9 = vpop.f32.mrb[11].mxu0 }
 0x281   :  { %v3143_v11 = vmax.f32 %v5748_v22, 0.0 }
 0x282   :  { %v5850_v13 = vpack.i.bf16 %v3130_v5, %v3142_v7 }
 0x283   :  { %v5860_v17 = vpack.i.bf16 %v3143_v11, %v3140_v10 }
 0x284   :  { %5851 = vrot.lane.b32.xlu0 %v5850_v13, %s6700_s0 }
 0x285   :  { %5861 = vrot.lane.b32.xlu1 %v5860_v17, %s6700_s0 }
 0x288   :  { %5856 = vrot.lane.b32.xlu0 %v5855_v23, %s6700_s0 }
 0x289   :  { %5866 = vrot.lane.b32.xlu1 %v5865_v25, %s6700_s0 }
 0x28c   :  { %5871 = vrot.lane.b32.xlu0 %v5870_v26, %s6700_s0 }
 0x28d   :  { %3202 = vrot.lane.b32.xlu1 %v3135_v27, %s6700_s0 }
 0x2ef   :  { %v5842_v18 = vpop.permute.xlu1 %5841 }
 0x2f0   :  { %v5844_v28 = vunpack.i.h.bf16 %v5842_v18  ;;  %v5843_v31 = vunpack.i.l.bf16 %v5842_v18  ;;  %v5847_v32 = vpop.permute.xlu0 %5846 }
 0x2f1   :  { %v5849_v34 = vunpack.i.h.bf16 %v5847_v32  ;;  %v5848_v36 = vunpack.i.l.bf16 %v5847_v32 }
 0x2f2   :  { %v7972_v38 = vmax.f32 %v3137_v55, %v5844_v28  ;;  %v7974_v35 = vmax.f32 %v3133_v54, %v5843_v31 }
 0x2f3   :  { %v7976_v41 = vmax.f32 %v3139_v59, %v5849_v34  ;;  %v7978_v42 = vmax.f32 %v3136_v56, %v5848_v36 }
 0x2f4   :  { %v5885_v29 = vpack.i.bf16 %v7972_v38, %v7974_v35 }
 0x2f5   :  { %v5890_v48 = vpack.i.bf16 %v7976_v41, %v7978_v42 }
 0x2f6   :  { %5886 = vrot.lane.b32.xlu0 %v5885_v29, %s6701_s1  ;;  %v5852_v33 = vpop.permute.xlu0 %5851 }
 0x2f7   :  { %v5854_v44 = vunpack.i.h.bf16 %v5852_v33  ;;  %v5862_v45 = vpop.permute.xlu1 %5861  ;;  %v5853_v8 = vunpack.i.l.bf16 %v5852_v33 }
 0x2f8   :  { %v5863_v43 = vunpack.i.l.bf16 %v5862_v45  ;;  %v5864_v53 = vunpack.i.h.bf16 %v5862_v45 }
 0x2f9   :  { %v7985_v40 = vmax.f32 %v3130_v5, %v5854_v44  ;;  %v8011_v63 = vmax.f32 %v3142_v7, %v5853_v8 }
 0x2fa   :  { %v7987_v57 = vmax.f32 %v3140_v10, %v5863_v43  ;;  %5891 = vrot.lane.b32.xlu0 %v5890_v48, %s6701_s1  ;;  %v5857_v47 = vpop.permute.xlu0 %5856  ;;  %v7999_v55 = vmax.f32 %v3143_v11, %v5864_v53 }
 0x2fb   :  { %v5859_v1 = vunpack.i.h.bf16 %v5857_v47  ;;  %v5858_v2 = vunpack.i.l.bf16 %v5857_v47  ;;  %v5867_v59 = vpop.permute.xlu1 %5866  ;;  %v5910_v5 = vpack.i.bf16 %v7985_v40, %v8011_v63  ;;  %v5915_v10 = vpack.i.bf16 %v7972_v38, %v8011_v63 }
 0x2fc   :  { %v5900_v49 = vpack.i.bf16 %v7985_v40, %v7987_v57  ;;  %v5905_v56 = vpack.i.bf16 %v7987_v57, %v7972_v38  ;;  %v5868_v3 = vunpack.i.l.bf16 %v5867_v59  ;;  %v5920_v12 = vpack.i.bf16 %v7999_v55, %v7987_v57 }
 0x2fd   :  { %v7992_v51 = vmax.f32 %v3134_v24, %v5859_v1  ;;  %v7994_v52 = vmax.f32 %v3131_v19, %v5858_v2  ;;  %v5869_v24 = vunpack.i.h.bf16 %v5867_v59 }
 0x2fe   :  { %5901 = vrot.lane.b32.xlu0 %v5900_v49, %s6702_s27  ;;  %v5872_v61 = vpop.permute.xlu0 %5871  ;;  %v8013_v60 = vmax.f32 %v3138_v15, %v5868_v3  ;;  %v5925_v15 = vpack.i.bf16 %v7999_v55, %v7974_v35 }
 0x2ff   :  { %v5875_v54 = vpack.i.bf16 %v7992_v51, %v7994_v52  ;;  %v5874_v14 = vunpack.i.h.bf16 %v5872_v61  ;;  %v5930_v22 = vpack.i.bf16 %v7994_v52, %v7999_v55  ;;  %v3203_v4 = vpop.permute.xlu1 %3202  ;;  %v5873_v7 = vunpack.i.l.bf16 %v5872_v61 }
 0x300   :  { %v8023_v9 = vmax.f32 %v3135_v27, %v3203_v4  ;;  %v5935_v0 = vpack.i.bf16 %v8013_v60, %v7992_v51  ;;  %v8043_v17 = vmax.f32 %v3141_v16, %v5869_v24 }
 0x301   :  { %5876 = vrot.lane.b32.xlu1 %v5875_v54, %s6701_s1  ;;  %v8021_v6 = vmax.f32 %v3132_v20, %v5874_v14  ;;  %v8037_v13 = vmax.f32 %v3144_v21, %v5873_v7 }
 0x302   :  { %5906 = vrot.lane.b32.xlu0 %v5905_v56, %s6703_s28 }
 0x303   :  { %v5945_v11 = vpack.i.bf16 %v8023_v9, %v8021_v6  ;;  %v5940_v19 = vpack.i.bf16 %v8037_v13, %v8043_v17 }
 0x305   :  { %5881 = vrot.lane.b32.xlu1 %v5875_v54, %s6702_s27 }
 0x306   :  { %5921 = vrot.lane.b32.xlu0 %v5920_v12, %s6701_s1 }
 0x309   :  { %5896 = vrot.lane.b32.xlu1 %v5890_v48, %s6702_s27 }
 0x30a   :  { %5931 = vrot.lane.b32.xlu0 %v5930_v22, %s6703_s28 }
 0x30d   :  { %5911 = vrot.lane.b32.xlu1 %v5910_v5, %s6701_s1 }
 0x30e   :  { %5936 = vrot.lane.b32.xlu0 %v5935_v0, %s6703_s28 }
 0x311   :  { %5916 = vrot.lane.b32.xlu1 %v5915_v10, %s6702_s27 }
 0x312   :  { %5946 = vrot.lane.b32.xlu0 %v5945_v11, %s6703_s28 }
 0x315   :  { %5926 = vrot.lane.b32.xlu1 %v5925_v15, %s6702_s27 }
 0x316   :  { %5956 = vrot.lane.b32.xlu0 %v5910_v5, %s6703_s28 }
 0x319   :  { %5941 = vrot.lane.b32.xlu1 %v5940_v19, %s6703_s28 }
 0x31d   :  { %5951 = vrot.lane.b32.xlu1 %v5890_v48, %s6703_s28 }
 0x321   :  { %3267 = vrot.lane.b32.xlu1 %v7974_v35, %s6703_s28 }
 0x368   :  { %v5887_v39 = vpop.permute.xlu0 %5886 }
 0x369   :  { %v5888_v18 = vunpack.i.l.bf16 %v5887_v39  ;;  %v5889_v48 = vunpack.i.h.bf16 %v5887_v39 }
 0x36b   :  { %v3241_v45 = vmax.f32 %v7974_v35, %v5888_v18  ;;  %v3367_v0 = vmax.f32 %v7978_v42, %v5889_v48  ;;  %v3387_v24 = vmax.f32 %v7972_v38, %v5889_v48 }
 0x36c   :  { %v5892_v20 = vpop.permute.xlu0 %5891 }
 0x36d   :  { %v5894_v26 = vunpack.i.h.bf16 %v5892_v20  ;;  %v5893_v27 = vunpack.i.l.bf16 %v5892_v20 }
 0x36f   :  { %v3243_v33 = vmax.f32 %v7976_v41, %v5894_v26  ;;  %v3242_v44 = vmax.f32 %v7978_v42, %v5893_v27 }
 0x370   :  { %v8053_v21 = vpop.permute.xlu0 %5901 }
 0x371   :  { %v8072_v53 = vunpack.i.l.bf16 %v8053_v21 }
 0x373   :  { %v8055_v30 = vpop.permute.xlu1 %5876  ;;  %v3338_v7 = vmax.f32 %v3243_v33, %v8072_v53 }
 0x374   :  { %v5907_v16 = vpop.permute.xlu0 %5906  ;;  %v5879_v36 = vunpack.i.h.bf16 %v8055_v30  ;;  %v5878_v19 = vunpack.i.l.bf16 %v8055_v30 }
 0x375   :  { %v8076_v59 = vunpack.i.h.bf16 %v5907_v16  ;;  %v8078_v8 = vunpack.i.l.bf16 %v5907_v16 }
 0x376   :  { %v3386_v49 = vmax.f32 %v7992_v51, %v5879_v36  ;;  %v3366_v15 = vmax.f32 %v7974_v35, %v5879_v36 }
 0x377   :  { %v5882_v23 = vpop.permute.xlu1 %5881  ;;  %v3343_v27 = vmax.f32 %v3338_v7, %v8076_v59 }
 0x378   :  { %v8057_v25 = vpop.permute.xlu0 %5921  ;;  %v5884_v29 = vunpack.i.h.bf16 %v5882_v23 }
 0x379   :  { %v5923_v3 = vunpack.i.l.bf16 %v8057_v25 }
 0x37a   :  { %v3336_v54 = vmax.f32 %v3241_v45, %v5884_v29  ;;  %v8083_v61 = vmax.f32 %v3386_v49, %v5884_v29  ;;  %v3371_v48 = vmax.f32 %v3366_v15, %v5884_v29  ;;  %v3348_v29 = vmax.f32 %v3343_v27, %v7987_v57 }
 0x37b   :  { %v5897_v28 = vpop.permute.xlu1 %5896  ;;  %v3388_v20 = vmax.f32 %v7987_v57, %v5923_v3  ;;  %v3368_v18 = vmax.f32 %v7976_v41, %v5923_v3  ;;  %v5924_v41 = vunpack.i.h.bf16 %v8057_v25 }
 0x37c   :  { %v5899_v31 = vunpack.i.h.bf16 %v5897_v28  ;;  %v5898_v32 = vunpack.i.l.bf16 %v5897_v28  ;;  %v8059_v34 = vpop.permute.xlu0 %5931 }
 0x37d   :  { %v3373_v7 = vmax.f32 %v3368_v18, %v8072_v53 }
 0x37e   :  { %v8065_v47 = vmax.f32 %v3243_v33, %v5899_v31  ;;  %v8067_v1 = vmax.f32 %v3242_v44, %v5898_v32 }
 0x37f   :  { %v5912_v43 = vpop.permute.xlu1 %5911 }
 0x380   :  { %v8069_v2 = vpop.permute.xlu0 %5936  ;;  %v3312_v22 = vmax.f32 %v8067_v1, %v8078_v8  ;;  %v3313_v4 = vmax.f32 %v8065_v47, %v8076_v59  ;;  %v5914_v16 = vunpack.i.h.bf16 %v5912_v43  ;;  %v5913_v26 = vunpack.i.l.bf16 %v5912_v43 }
 0x381   :  { %v5938_v56 = vunpack.i.l.bf16 %v8069_v2  ;;  %v8107_v43 = vunpack.i.l.bf16 %v5882_v23  ;;  %v5939_v27 = vunpack.i.h.bf16 %v8069_v2 }
 0x382   :  { %v3317_v31 = vmax.f32 %v3312_v22, %v7972_v38  ;;  %v3318_v32 = vmax.f32 %v3313_v4, %v7987_v57  ;;  %v3240_v3 = vmax.f32 %v7985_v40, %v5914_v16  ;;  %v3393_v22 = vmax.f32 %v3388_v20, %v8072_v53 }
 0x383   :  { %v8081_v12 = vpop.permute.xlu1 %5916  ;;  %v3341_v14 = vmax.f32 %v3336_v54, %v5938_v56  ;;  %v3396_v11 = vmax.f32 %v8083_v61, %v5938_v56  ;;  %v5933_v20 = vunpack.i.l.bf16 %v8059_v34 }
 0x384   :  { %v5919_v5 = vunpack.i.h.bf16 %v8081_v12  ;;  %v5960_v25 = vpack.i.bf16 %v3318_v32, %v3317_v31  ;;  %v3398_v16 = vmax.f32 %v3393_v22, %v8076_v59 }
 0x385   :  { %v3346_v10 = vmax.f32 %v3341_v14, %v7992_v51  ;;  %v3401_v33 = vmax.f32 %v3396_v11, %v8023_v9  ;;  %v3244_v14 = vmax.f32 %v8011_v63, %v5913_v26  ;;  %v5918_v11 = vunpack.i.l.bf16 %v8081_v12 }
 0x386   :  { %v3337_v39 = vmax.f32 %v3242_v44, %v5919_v5  ;;  %v3392_v35 = vmax.f32 %v3387_v24, %v5919_v5  ;;  %v3372_v49 = vmax.f32 %v3367_v0, %v5919_v5  ;;  %v5904_v26 = vunpack.i.h.bf16 %v8053_v21 }
 0x387   :  { %3462 = vrot.lane.b32.xlu0 %v3346_v10, %s6701_s1  ;;  %v5927_v42 = vpop.permute.xlu1 %5926  ;;  %v3378_v12 = vmax.f32 %v3373_v7, %v8076_v59  ;;  %v8140_v32 = vmax.f32 %v3244_v14, %v5918_v11  ;;  %v3403_v59 = vmax.f32 %v3398_v16, %v8043_v17 }
 0x388   :  { %v5928_v28 = vunpack.i.l.bf16 %v5927_v42  ;;  %v8103_v36 = vunpack.i.h.bf16 %v5927_v42  ;;  %v3342_v44 = vmax.f32 %v3337_v39, %v8078_v8  ;;  %v3397_v10 = vmax.f32 %v3392_v35, %v8078_v8 }
 0x389   :  { %v3377_v53 = vmax.f32 %v3372_v49, %v8078_v8  ;;  %v3389_v39 = vmax.f32 %v7999_v55, %v5924_v41  ;;  %v5934_v42 = vunpack.i.h.bf16 %v8059_v34  ;;  %v3385_v34 = vmax.f32 %v7994_v52, %v5878_v19 }
 0x38a   :  { %v8109_v54 = vmax.f32 %v3241_v45, %v5928_v28  ;;  %v3376_v45 = vmax.f32 %v3371_v48, %v5938_v56  ;;  %v3339_v5 = vmax.f32 %v3244_v14, %v8103_v36  ;;  %v3347_v0 = vmax.f32 %v3342_v44, %v7972_v38 }
 0x38b   :  { %3502 = vrot.lane.b32.xlu0 %v3401_v33, %s6702_s27  ;;  %v8116_v4 = vpop.permute.xlu1 %5941  ;;  %v3394_v8 = vmax.f32 %v3389_v39, %v8103_v36  ;;  %v3402_v28 = vmax.f32 %v3397_v10, %v8013_v60  ;;  %v3382_v21 = vmax.f32 %v3377_v53, %v7972_v38  ;;  %v3369_v48 = vmax.f32 %v8011_v63, %v5924_v41 }
 0x38c   :  { %v3311_v23 = vmax.f32 %v8109_v54, %v5938_v56  ;;  %v5943_v24 = vunpack.i.l.bf16 %v8116_v4  ;;  %v3335_v56 = vmax.f32 %v3240_v3, %v8107_v43  ;;  %v5965_v18 = vpack.i.bf16 %v3348_v29, %v3347_v0 }
 0x38d   :  { %v3344_v31 = vmax.f32 %v3339_v5, %v5933_v20  ;;  %v3381_v44 = vmax.f32 %v3376_v45, %v7992_v51  ;;  %v8150_v49 = vmax.f32 %v3240_v3, %v5904_v26  ;;  %v3383_v14 = vmax.f32 %v3378_v12, %v7987_v57 }
 0x38e   :  { %v3316_v15 = vmax.f32 %v3311_v23, %v7992_v51  ;;  %v3428_v33 = vmax.f32 %v3393_v22, %v5943_v24  ;;  %v3340_v2 = vmax.f32 %v3335_v56, %v5934_v42  ;;  %v3427_v22 = vmax.f32 %v3392_v35, %v5939_v27 }
 0x38f   :  { %5961 = vrot.lane.b32.xlu0 %v5960_v25, %s6700_s0  ;;  %v3390_v7 = vmax.f32 %v3385_v34, %v8107_v43  ;;  %v3399_v23 = vmax.f32 %v3394_v8, %v5933_v20  ;;  %v5975_v29 = vpack.i.bf16 %v3403_v59, %v3402_v28  ;;  %v3349_v45 = vmax.f32 %v3344_v31, %v7999_v55  ;;  %v5947_v25 = vpop.permute.xlu0 %5946  ;;  %v6495_v34 = vld [vmem:[%s8711_s3 + $0x20] ss:$8 sps:$4 sm:$0xff]   ;;  %v6498_v59 = vld [vmem:[%s8711_s3 + $0x30] ss:$8 sps:$4 sm:$0xff]  }
 0x390   :  { %3442 = vrot.lane.b32.xlu1 %v3316_v15, %s6700_s0  ;;  %v3314_v5 = vmax.f32 %v8140_v32, %v5933_v20  ;;  %v3374_v0 = vmax.f32 %v3369_v48, %v8103_v36  ;;  %v3433_v63 = vmax.f32 %v3428_v33, %v8043_v17  ;;  %v5970_v41 = vpack.i.bf16 %v3383_v14, %v3382_v21  ;;  %v6491_v21 = vld [vmem:[%s8711_s3 + $0x4] ss:$8 sps:$4 sm:$0xff]   ;;  %v6501_v14 = vld [vmem:[%s8711_s3 + $0x40] ss:$8 sps:$4 sm:$0xff]  }
 0x391   :  { %v3365_v3 = vmax.f32 %v7985_v40, %v5878_v19  ;;  %v3395_v10 = vmax.f32 %v3390_v7, %v5934_v42  ;;  %v3345_v35 = vmax.f32 %v3340_v2, %v7994_v52  ;;  %v3310_v11 = vmax.f32 %v8150_v49, %v5934_v42  ;;  %4138 = vmatprep.subr.bf16.mxu1 %v6491_v21  ;;  %v6500_v2 = vld [vmem:[%s8711_s3 + $0x34] ss:$8 sps:$4 sm:$0xff]   ;;  %v6503_v48 = vld [vmem:[%s8711_s3 + $0x44] ss:$8 sps:$4 sm:$0xff]  }
 0x392   :  { %v3432_v24 = vmax.f32 %v3427_v22, %v8013_v60  ;;  %v5949_v15 = vunpack.i.h.bf16 %v5947_v25  ;;  %v3404_v53 = vmax.f32 %v3399_v23, %v8037_v13  ;;  %v5944_v30 = vunpack.i.h.bf16 %v8116_v4  ;;  %v6506_v22 = vld [vmem:[%s8711_s3 + $0x54] ss:$8 sps:$4 sm:$0xff]   ;;  %v6509_v23 = vld [vmem:[%s8711_s3 + $0x64] ss:$8 sps:$4 sm:$0xff]  }
 0x393   :  { %5966 = vrot.lane.b32.xlu0 %v5965_v18, %s6701_s1  ;;  %v3370_v36 = vmax.f32 %v3365_v3, %v8107_v43  ;;  %v5990_v17 = vpack.i.bf16 %v3345_v35, %v3349_v45  ;;  %v3319_v19 = vmax.f32 %v3314_v5, %v7999_v55  ;;  %v3379_v39 = vmax.f32 %v3374_v0, %v5933_v20  ;;  %v6512_v45 = vld [vmem:[%s8711_s3 + $0x74] ss:$8 sps:$4 sm:$0xff]   ;;  %v6510_v5 = vld [vmem:[%s8711_s3 + $0x70] ss:$8 sps:$4 sm:$0xff]   ;;  %v6513_v0 = vld [vmem:[%s8711_s3 + $0x80] ss:$8 sps:$4 sm:$0xff]  }
 0x394   :  { %3482 = vrot.lane.b32.xlu1 %v3381_v44, %s6704_s2  ;;  %v5980_v40 = vpack.i.bf16 %v3433_v63, %v3432_v24  ;;  %v3400_v56 = vmax.f32 %v3395_v10, %v8021_v6  ;;  %v5948_v16 = vunpack.i.l.bf16 %v5947_v25  ;;  %v3315_v60 = vmax.f32 %v3310_v11, %v7994_v52  ;;  %v6515_v25 = vld [vmem:[%s8711_s3 + $0x84] ss:$8 sps:$4 sm:$0xff]   ;;  %v6518_v63 = vld [vmem:[%s8711_s3 + $0x94] ss:$8 sps:$4 sm:$0xff]   ;;  %v6519_v10 = vld [vmem:[%s8711_s3 + $0xa0] ss:$8 sps:$4 sm:$0xff]  }
 0x395   :  { %v3375_v43 = vmax.f32 %v3370_v36, %v5934_v42  ;;  %v3426_v26 = vmax.f32 %v8083_v61, %v5949_v15  ;;  %v3429_v27 = vmax.f32 %v3394_v8, %v5944_v30  ;;  %v3384_v4 = vmax.f32 %v3379_v39, %v7999_v55  ;;  %v6489_v8 = vld [vmem:[%s8711_s3] ss:$8 sps:$4 sm:$0xff]   ;;  %v6521_v3 = vld [vmem:[%s8711_s3 + $0xa4] ss:$8 sps:$4 sm:$0xff]   ;;  %v6524_v35 = vld [vmem:[%s8711_s3 + $0xb4] ss:$8 sps:$4 sm:$0xff]   ;;  %v5957_v15 = vpop.permute.xlu0 %5956 }
 0x396   :  { %v6000_v12 = vpack.i.bf16 %v3400_v56, %v3404_v53  ;;  %v5985_v18 = vpack.i.bf16 %v3315_v60, %v3319_v19  ;;  %v3425_v20 = vmax.f32 %v3390_v7, %v5948_v16  ;;  %4139 = vmatpush1.bf16.msra.mxu1 %v6489_v8  ;;  %v6504_v7 = vld [vmem:[%s8711_s3 + $0x50] ss:$8 sps:$4 sm:$0xff]   ;;  %v6527_v24 = vld [vmem:[%s8711_s3 + $0xc4] ss:$8 sps:$4 sm:$0xff]   ;;  %v6525_v36 = vld [vmem:[%s8711_s3 + $0xc0] ss:$8 sps:$4 sm:$0xff]   ;;  %v5959_v16 = vunpack.i.h.bf16 %v5957_v15 }
 0x397   :  { %5976 = vrot.lane.b32.xlu0 %v5975_v29, %s6702_s27  ;;  %v3380_v28 = vmax.f32 %v3375_v43, %v7994_v52  ;;  %v3431_v31 = vmax.f32 %v3426_v26, %v8023_v9  ;;  %v3434_v33 = vmax.f32 %v3429_v27, %v8037_v13  ;;  %v6494_v9 = vld [vmem:[%s8711_s3 + $0x14] ss:$8 sps:$4 sm:$0xff]   ;;  %v6497_v13 = vld [vmem:[%s8711_s3 + $0x24] ss:$8 sps:$4 sm:$0xff]   ;;  %v6507_v29 = vld [vmem:[%s8711_s3 + $0x60] ss:$8 sps:$4 sm:$0xff]   ;;  %v5958_v43 = vunpack.i.l.bf16 %v5957_v15 }
 0x398   :  { %5971 = vrot.lane.b32.xlu1 %v5970_v41, %s6704_s2  ;;  %v3430_v61 = vmax.f32 %v3425_v20, %v8021_v6  ;;  %v6492_v6 = vld [vmem:[%s8711_s3 + $0x10] ss:$8 sps:$4 sm:$0xff]   ;;  %4140 = vmatprep.subr.bf16.mxu1 %v6494_v9 }
 0x399   :  { %v5995_v44 = vpack.i.bf16 %v3380_v28, %v3384_v4  ;;  %v6516_v41 = vld [vmem:[%s8711_s3 + $0x90] ss:$8 sps:$4 sm:$0xff]   ;;  %v8265_v4 = vmax.f32 %v8150_v49, %v5959_v16 }
 0x39a   :  { %v6005_v42 = vpack.i.bf16 %v3430_v61, %v3434_v33  ;;  %4141 = vmatpush1.bf16.msra.mxu1 %v6492_v6  ;;  %v6522_v11 = vld [vmem:[%s8711_s3 + $0xb0] ss:$8 sps:$4 sm:$0xff]   ;;  %v3284_v33 = vmax.f32 %v8140_v32, %v5958_v43 }
 0x39b   :  { %5991 = vrot.lane.b32.xlu0 %v5990_v17, %s6701_s1  ;;  %4142 = vmatprep.subr.bf16.mxu1 %v6497_v13  ;;  %v5952_v17 = vpop.permute.xlu1 %5951 }
 0x39c   :  { %5981 = vrot.lane.b32.xlu1 %v5980_v40, %s6705_s29  ;;  %v5954_v19 = vunpack.i.h.bf16 %v5952_v17  ;;  %v5953_v39 = vunpack.i.l.bf16 %v5952_v17  ;;  %v3289_v13 = vmax.f32 %v3284_v33, %v7999_v55 }
 0x39e   :  { %4143 = vmatpush1.bf16.msra.mxu1 %v6495_v34  ;;  %v3282_v27 = vmax.f32 %v8067_v1, %v5953_v39  ;;  %v3285_v1 = vmax.f32 %v8265_v4, %v7994_v52 }
 0x39f   :  { %6001 = vrot.lane.b32.xlu0 %v6000_v12, %s6702_s27  ;;  %4144 = vmatprep.subr.bf16.mxu1 %v6500_v2  ;;  %v3268_v40 = vpop.permute.xlu1 %3267  ;;  %v3283_v12 = vmax.f32 %v8065_v47, %v5954_v19 }
 0x3a0   :  { %5986 = vrot.lane.b32.xlu1 %v5985_v18, %s6700_s0  ;;  %v3281_v26 = vmax.f32 %v8109_v54, %v3268_v40  ;;  %v3287_v47 = vmax.f32 %v3282_v27, %v7972_v38 }
 0x3a1   :  { %v3288_v54 = vmax.f32 %v3283_v12, %v7987_v57 }
 0x3a2   :  { %4145 = vmatpush1.bf16.msra.mxu1 %v6498_v59 }
 0x3a3   :  { %3522 = vrot.lane.b32.xlu0 %v3431_v31, %s6705_s29  ;;  %4146 = vmatprep.subr.bf16.mxu1 %v6503_v48 }
 0x3a4   :  { %5996 = vrot.lane.b32.xlu1 %v5995_v44, %s6704_s2  ;;  %v3286_v44 = vmax.f32 %v3281_v26, %v7992_v51  ;;  %s6707_s2 = smov [#allocation2]  }
 0x3a6   :  { %4147 = vmatpush1.bf16.msra.mxu1 %v6501_v14 }
 0x3a7   :  { %4148 = vmatprep.subr.bf16.mxu1 %v6506_v22 }
 0x3a8   :  { %6006 = vrot.lane.b32.xlu1 %v6005_v42, %s6705_s29 }
 0x3aa   :  { %4149 = vmatpush1.bf16.msra.mxu1 %v6504_v7 }
 0x3ab   :  { %4150 = vmatprep.subr.bf16.mxu1 %v6509_v23 }
 0x3ae   :  { %4151 = vmatpush1.bf16.msra.mxu1 %v6507_v29 }
 0x3af   :  { %4152 = vmatprep.subr.bf16.mxu1 %v6512_v45 }
 0x3b2   :  { %4153 = vmatpush1.bf16.msra.mxu1 %v6510_v5 }
 0x3b3   :  { %4154 = vmatprep.subr.bf16.mxu1 %v6515_v25 }
 0x3b6   :  { %4155 = vmatpush1.bf16.msra.mxu1 %v6513_v0 }
 0x3b7   :  { %4156 = vmatprep.subr.bf16.mxu1 %v6518_v63 }
 0x3ba   :  { %4157 = vmatpush1.bf16.msra.mxu1 %v6516_v41 }
 0x3bb   :  { %4158 = vmatprep.subr.bf16.mxu1 %v6521_v3 }
 0x3be   :  { %4159 = vmatpush1.bf16.msra.mxu1 %v6519_v10 }
 0x3bf   :  { %4160 = vmatprep.subr.bf16.mxu1 %v6524_v35 }
 0x3c2   :  { %4161 = vmatpush1.bf16.msra.mxu1 %v6522_v11 }
 0x3c3   :  { %4162 = vmatprep.subr.bf16.mxu1 %v6527_v24 }
 0x3c6   :  { %4163 = vmatpush1.bf16.msra.mxu1 %v6525_v36 }
 0x3f9   :  { %v3463_v53 = vpop.permute.xlu0 %3462 }
 0x3fd   :  { %v3503_v30 = vpop.permute.xlu0 %3502 }
 0x401   :  { %v5962_v56 = vpop.permute.xlu0 %5961 }
 0x402   :  { %v3443_v60 = vpop.permute.xlu1 %3442  ;;  %v5964_v28 = vunpack.i.h.bf16 %v5962_v56  ;;  %v5963_v31 = vunpack.i.l.bf16 %v5962_v56 }
 0x403   :  { %v3537_v49 = vsel %vm3535_vm2, %v3286_v44, %v3443_v60 }
 0x404   :  { %v3538_v9 = vsel %vm3535_vm2, %v3287_v47, %v5963_v31  ;;  %v3539_v32 = vsel %vm3535_vm2, %v3288_v54, %v5964_v28  ;;  %v3543_v52 = vsel %vm3541_vm3, %v3537_v49, %v3463_v53 }
 0x405   :  { %v5967_v18 = vpop.permute.xlu0 %5966 }
 0x406   :  { %v3483_v20 = vpop.permute.xlu1 %3482  ;;  %v5969_v61 = vunpack.i.h.bf16 %v5967_v18  ;;  %v5968_v42 = vunpack.i.l.bf16 %v5967_v18 }
 0x407   :  { %v3549_v48 = vsel %vm3547_vm4, %v3543_v52, %v3483_v20 }
 0x408   :  { %v3545_v57 = vsel %vm3541_vm3, %v3539_v32, %v5969_v61  ;;  %v3544_v38 = vsel %vm3541_vm3, %v3538_v9, %v5968_v42  ;;  %v3555_v63 = vsel %vm3553_vm5, %v3549_v48, %v3503_v30 }
 0x409   :  { %v5977_v8 = vpop.permute.xlu0 %5976 }
 0x40a   :  { %v5972_v21 = vpop.permute.xlu1 %5971  ;;  %v5979_v14 = vunpack.i.h.bf16 %v5977_v8  ;;  %v5978_v22 = vunpack.i.l.bf16 %v5977_v8 }
 0x40b   :  { %v5974_v51 = vunpack.i.h.bf16 %v5972_v21  ;;  %v5973_v6 = vunpack.i.l.bf16 %v5972_v21 }
 0x40d   :  { %v3550_v34 = vsel %vm3547_vm4, %v3544_v38, %v5973_v6  ;;  %v3551_v2 = vsel %vm3547_vm4, %v3545_v57, %v5974_v51  ;;  %v5992_v59 = vpop.permute.xlu0 %5991 }
 0x40e   :  { %v5982_v7 = vpop.permute.xlu1 %5981  ;;  %v3556_v29 = vsel %vm3553_vm5, %v3550_v34, %v5978_v22  ;;  %v3557_v45 = vsel %vm3553_vm5, %v3551_v2, %v5979_v14  ;;  %v5994_v41 = vunpack.i.h.bf16 %v5992_v59  ;;  %v5993_v24 = vunpack.i.l.bf16 %v5992_v59 }
 0x40f   :  { %v5984_v55 = vunpack.i.h.bf16 %v5982_v7  ;;  %v5983_v23 = vunpack.i.l.bf16 %v5982_v7 }
 0x411   :  { %v3562_v5 = vsel %vm3559_vm6, %v3556_v29, %v5983_v23  ;;  %v3563_v25 = vsel %vm3559_vm6, %v3557_v45, %v5984_v55  ;;  %v6002_v0 = vpop.permute.xlu0 %6001 }
 0x412   :  { %v3654_v3 = vsel %vm3586_vm7, %v3562_v5, -inf  ;;  %v3663_v10 = vsel %vm3597_vm8, %v3562_v5, -inf  ;;  %v8291_v35 = vsel %vm2301_vm1, %v3563_v25, -inf  ;;  %v5987_v11 = vpop.permute.xlu1 %5986  ;;  %v6004_v53 = vunpack.i.h.bf16 %v6002_v0 }
 0x413   :  { %v3665_v36 = vmax.f32 %v3663_v10, %v8291_v35  ;;  %v5989_v15 = vunpack.i.h.bf16 %v5987_v11  ;;  %v5988_v17 = vunpack.i.l.bf16 %v5987_v11  ;;  %v6003_v40 = vunpack.i.l.bf16 %v6002_v0 }
 0x414   :  { %v3607_v19 = vsel %vm3566_vm9, %v3562_v5, -inf  ;;  %v3655_v30 = vsel %vm3588_vm12, %v3563_v25, -inf  ;;  %v3616_v26 = vsel %vm3577_vm11, %v3562_v5, -inf  ;;  %v3680_v4 = vsel %vm3575_vm10, %v3563_v25, -inf }
 0x415   :  { %v3666_v39 = vrot.slane %v3665_v36, 4  ;;  %v3536_v56 = vsel %vm3535_vm2, %v3285_v1, %v5989_v15  ;;  %v3540_v16 = vsel %vm3535_vm2, %v3289_v13, %v5988_v17  ;;  %v3656_v60 = vmax.f32 %v3654_v3, %v3655_v30  ;;  %v3523_v43 = vpop.permute.xlu0 %3522 }
 0x416   :  { %v3561_v12 = vsel %vm3559_vm6, %v3555_v63, %v3523_v43  ;;  %v3542_v27 = vsel %vm3541_vm3, %v3536_v56, %v5994_v41  ;;  %v5997_v18 = vpop.permute.xlu1 %5996  ;;  %v3546_v31 = vsel %vm3541_vm3, %v3540_v16, %v5993_v24  ;;  %v3689_v33 = vsel %vm3586_vm7, %v3563_v25, -inf }
 0x417   :  { %v3667_v20 = vmax.f32 %v3665_v36, %v3666_v39  ;;  %v3657_v28 = vrot.slane %v3656_v60, 4  ;;  %v3567_v44 = vsel %vm3566_vm9, %v3561_v12, -inf  ;;  %v3599_v61 = vsel %vm2301_vm1, %v3561_v12, -inf }
 0x418   :  { %v3615_v42 = vsel %vm3575_vm10, %v3561_v12, -inf  ;;  %v5999_v54 = vunpack.i.h.bf16 %v5997_v18  ;;  %v3608_v1 = vmax.f32 %v3599_v61, %v3607_v19  ;;  %v3578_v21 = vsel %vm3577_vm11, %v3561_v12, -inf }
 0x419   :  { %v3668_v47 = vrot.slane %v3667_v20, 2  ;;  %v3658_v8 = vmax.f32 %v3656_v60, %v3657_v28  ;;  %v3617_v49 = vmax.f32 %v3615_v42, %v3616_v26  ;;  %v3589_v9 = vsel %vm3588_vm12, %v3561_v12, -inf }
 0x41a   :  { %v3548_v32 = vsel %vm3547_vm4, %v3542_v27, %v5999_v54  ;;  %v5998_v51 = vunpack.i.l.bf16 %v5997_v18  ;;  %v6007_v6 = vpop.permute.xlu1 %6006  ;;  %v3609_v38 = vrot.slane %v3608_v1, 4  ;;  %v3698_v2 = vsel %vm3597_vm8, %v3563_v25, -inf }
 0x41b   :  { %v3669_v13 = vmax.f32 %v3667_v20, %v3668_v47  ;;  %v3659_v57 = vrot.slane %v3658_v8, 2  ;;  %v3618_v52 = vrot.slane %v3617_v49, 4  ;;  %v6009_v59 = vunpack.i.h.bf16 %v6007_v6 }
 0x41c   :  { %v3552_v34 = vsel %vm3547_vm4, %v3546_v31, %v5998_v51  ;;  %v6008_v48 = vunpack.i.l.bf16 %v6007_v6  ;;  %v8312_v14 = vmax.f32 %v3608_v1, %v3609_v38  ;;  %v3554_v22 = vsel %vm3553_vm5, %v3548_v32, %v6004_v53 }
 0x41d   :  { %v3558_v7 = vsel %vm3553_vm5, %v3552_v34, %v6003_v40  ;;  %v3660_v55 = vmax.f32 %v3658_v8, %v3659_v57  ;;  %v3560_v23 = vsel %vm3559_vm6, %v3554_v22, %v6009_v59  ;;  %v3670_v45 = vrot.slane %v3669_v13, 1 }
 0x41e   :  { %v3564_v29 = vsel %vm3559_vm6, %v3558_v7, %v6008_v48  ;;  %v8318_v5 = vmax.f32 %v3617_v49, %v3618_v52  ;;  %v3565_v0 = vsel %vm2301_vm1, %v3560_v23, -inf  ;;  %v3576_v25 = vsel %vm3575_vm10, %v3560_v23, -inf }
 0x41f   :  { %v3587_v63 = vsel %vm3586_vm7, %v3560_v23, -inf  ;;  %v3598_v41 = vsel %vm3597_vm8, %v3560_v23, -inf  ;;  %v3568_v3 = vmax.f32 %v3565_v0, %v3567_v44  ;;  %v3579_v10 = vmax.f32 %v3576_v25, %v3578_v21 }
 0x420   :  { %v3590_v11 = vmax.f32 %v3587_v63, %v3589_v9  ;;  %v3600_v24 = vmax.f32 %v3598_v41, %v3599_v61  ;;  %v3672_v36 = vsel %vm3566_vm9, %v3564_v29, -inf  ;;  %v3681_v15 = vsel %vm3577_vm11, %v3564_v29, -inf }
 0x421   :  { %v3690_v17 = vsel %vm3588_vm12, %v3564_v29, -inf  ;;  %v3699_v53 = vsel %vm2301_vm1, %v3564_v29, -inf  ;;  %v3569_v40 = vrot.slane %v3568_v3, 4  ;;  %v3580_v19 = vrot.slane %v3579_v10, 4 }
 0x422   :  { %v3591_v30 = vrot.slane %v3590_v11, 4  ;;  %v3601_v39 = vrot.slane %v3600_v24, 4  ;;  %v3673_v56 = vmax.f32 %v8291_v35, %v3672_v36  ;;  %v3682_v16 = vmax.f32 %v3680_v4, %v3681_v15 }
 0x423   :  { %v3691_v60 = vmax.f32 %v3689_v33, %v3690_v17  ;;  %v3700_v43 = vmax.f32 %v3698_v2, %v3699_v53  ;;  %v3570_v26 = vmax.f32 %v3568_v3, %v3569_v40  ;;  %v3581_v12 = vmax.f32 %v3579_v10, %v3580_v19 }
 0x424   :  { %v3592_v27 = vmax.f32 %v3590_v11, %v3591_v30  ;;  %v3602_v18 = vmax.f32 %v3600_v24, %v3601_v39  ;;  %v3674_v20 = vrot.slane %v3673_v56, 4  ;;  %v3683_v28 = vrot.slane %v3682_v16, 4 }
 0x425   :  { %v3692_v31 = vrot.slane %v3691_v60, 4  ;;  %v3661_v44 = vrot.slane %v3660_v55, 1  ;;  %v3571_v61 = vrot.slane %v3570_v26, 2  ;;  %v3582_v42 = vrot.slane %v3581_v12, 2 }
 0x426   :  { %v3593_v54 = vrot.slane %v3592_v27, 2  ;;  %v3671_v47 = vmax.f32 %v3669_v13, %v3670_v45  ;;  %v3675_v8 = vmax.f32 %v3673_v56, %v3674_v20  ;;  %v3684_v1 = vmax.f32 %v3682_v16, %v3683_v28 }
 0x427   :  { %v3662_v35 = vmax.f32 %v3660_v55, %v3661_v44  ;;  %v3693_v4 = vmax.f32 %v3691_v60, %v3692_v31  ;;  %v3572_v33 = vmax.f32 %v3570_v26, %v3571_v61  ;;  %v3583_v49 = vmax.f32 %v3581_v12, %v3582_v42  ;;  %v6528_v12 = vld [vmem:[%s8711_s3 + $0xd0] ss:$8 sps:$4 sm:$0xff]   ;;  %v6531_v44 = vld [vmem:[%s8711_s3 + $0xe0] ss:$8 sps:$4 sm:$0xff]   ;;  %v6536_v42 = vld [vmem:[%s8711_s3 + $0xf4] ss:$8 sps:$4 sm:$0xff]  }
 0x428   :  { %v3701_v21 = vrot.slane %v3700_v43, 4  ;;  %v3594_v9 = vmax.f32 %v3592_v27, %v3593_v54  ;;  %v3676_v32 = vrot.slane %v3675_v8, 2  ;;  %v3685_v51 = vrot.slane %v3684_v1, 2 }
 0x429   :  { %v3694_v6 = vrot.slane %v3693_v4, 2  ;;  %v3707_v57 = vsel %vm3624_vm13, %v3662_v35, %v3671_v47  ;;  %v3573_v52 = vrot.slane %v3572_v33, 1  ;;  %v3584_v34 = vrot.slane %v3583_v49, 1  ;;  %v6534_v47 = vld [vmem:[%s8711_s3 + $0xf0] ss:$8 sps:$4 sm:$0xff]  }
 0x42a   :  { %v3702_v38 = vmax.f32 %v3700_v43, %v3701_v21  ;;  %v3595_v2 = vrot.slane %v3594_v9, 1  ;;  %v3677_v59 = vmax.f32 %v3675_v8, %v3676_v32  ;;  %v3686_v13 = vmax.f32 %v3684_v1, %v3685_v51  ;;  %v6539_v8 = vld [vmem:[%s8711_s3 + $0x104] ss:$8 sps:$4 sm:$0xff]  }
 0x42b   :  { %v3695_v48 = vmax.f32 %v3693_v4, %v3694_v6  ;;  %v3603_v22 = vrot.slane %v3602_v18, 2  ;;  %v3574_v55 = vmax.f32 %v3572_v33, %v3573_v52  ;;  %v3585_v23 = vmax.f32 %v3583_v49, %v3584_v34 }
 0x42c   :  { %v3703_v7 = vrot.slane %v3702_v38, 2  ;;  %v3596_v29 = vmax.f32 %v3594_v9, %v3595_v2  ;;  %v3678_v45 = vrot.slane %v3677_v59, 1  ;;  %v3687_v0 = vrot.slane %v3686_v13, 1 }
 0x42d   :  { %v3696_v25 = vrot.slane %v3695_v48, 1  ;;  %v3604_v63 = vmax.f32 %v3602_v18, %v3603_v22  ;;  %v3611_v3 = vrot.slane %v8312_v14, 2  ;;  %v3620_v10 = vrot.slane %v8318_v5, 2  ;;  %v6533_v18 = vld [vmem:[%s8711_s3 + $0xe4] ss:$8 sps:$4 sm:$0xff]  }
 0x42e   :  { %v3704_v41 = vmax.f32 %v3702_v38, %v3703_v7  ;;  %v3625_v11 = vsel %vm3624_vm13, %v3574_v55, %v3585_v23  ;;  %v3679_v24 = vmax.f32 %v3677_v59, %v3678_v45  ;;  %v3688_v36 = vmax.f32 %v3686_v13, %v3687_v0 }
 0x42f   :  { %v3605_v15 = vrot.slane %v3604_v63, 1  ;;  %v3612_v53 = vmax.f32 %v8312_v14, %v3611_v3  ;;  %v3621_v40 = vmax.f32 %v8318_v5, %v3620_v10  ;;  %v3627_v19 = vsel %vm3626_vm14, %v3625_v11, %v3596_v29  ;;  %v6530_v14 = vld [vmem:[%s8711_s3 + $0xd4] ss:$8 sps:$4 sm:$0xff]  }
 0x430   :  { %v3705_v17 = vrot.slane %v3704_v41, 1  ;;  %vm3632_vm1 = vcmask 1044480   ;;  %v3697_v30 = vmax.f32 %v3695_v48, %v3696_v25  ;;  %v3708_v39 = vsel %vm3626_vm14, %v3707_v57, %v3679_v24  ;;  %4164 = vmatprep.subr.bf16.mxu1 %v6530_v14  ;;  %v6542_v10 = vld [vmem:[%s8711_s3 + $0x114] ss:$8 sps:$4 sm:$0xff]   ;;  %v6540_v24 = vld [vmem:[%s8711_s3 + $0x110] ss:$8 sps:$4 sm:$0xff]  }
 0x431   :  { %v3606_v56 = vmax.f32 %v3604_v63, %v3605_v15  ;;  %v3709_v60 = vsel %vm3628_vm15, %v3708_v39, %v3688_v36  ;;  %v3613_v43 = vrot.slane %v3612_v53, 1  ;;  %v3622_v26 = vrot.slane %v3621_v40, 1  ;;  %4165 = vmatpush1.bf16.msra.mxu1 %v6528_v12  ;;  %v6537_v63 = vld [vmem:[%s8711_s3 + $0x100] ss:$8 sps:$4 sm:$0xff]   ;;  %v6545_v36 = vld [vmem:[%s8711_s3 + $0x124] ss:$8 sps:$4 sm:$0xff]  }
 0x432   :  { %v3706_v16 = vmax.f32 %v3704_v41, %v3705_v17  ;;  %v3710_v5 = vsel %vm3630_vm0, %v3709_v60, %v3697_v30  ;;  %4166 = vmatprep.subr.bf16.mxu1 %v6533_v18  ;;  %vm3639_vm4 = vcmask 916480   ;;  %vm3645_vm6 = vcmask 1046528   ;;  %v6543_v15 = vld [vmem:[%s8711_s3 + $0x120] ss:$8 sps:$4 sm:$0xff]   ;;  %v6548_v17 = vld [vmem:[%s8711_s3 + $0x134] ss:$8 sps:$4 sm:$0xff]  }
 0x433   :  { %v3629_v27 = vsel %vm3628_vm15, %v3627_v19, %v3606_v56  ;;  %v3614_v28 = vmax.f32 %v3612_v53, %v3613_v43  ;;  %v3623_v31 = vmax.f32 %v3621_v40, %v3622_v26  ;;  %v6546_v53 = vld [vmem:[%s8711_s3 + $0x130] ss:$8 sps:$4 sm:$0xff]   ;;  %v6551_v40 = vld [vmem:[%s8711_s3 + $0x144] ss:$8 sps:$4 sm:$0xff]   ;;  %v6549_v19 = vld [vmem:[%s8711_s3 + $0x140] ss:$8 sps:$4 sm:$0xff]  }
 0x434   :  { %v3711_v20 = vsel %vm3632_vm1, %v3710_v5, %v3706_v16  ;;  %v6554_v30 = vld [vmem:[%s8711_s3 + $0x154] ss:$8 sps:$4 sm:$0xff]   ;;  %v6552_v39 = vld [vmem:[%s8711_s3 + $0x150] ss:$8 sps:$4 sm:$0xff]   ;;  %v6557_v56 = vld [vmem:[%s8711_s3 + $0x164] ss:$8 sps:$4 sm:$0xff]  }
 0x435   :  { %3713 = vrot.lane.b32.xlu1 %v3711_v20, %s6706_s23  ;;  %v3631_v61 = vsel %vm3630_vm0, %v3629_v27, %v3614_v28  ;;  %4167 = vmatpush1.bf16.msra.mxu1 %v6531_v44  ;;  %v6555_v16 = vld [vmem:[%s8711_s3 + $0x160] ss:$8 sps:$4 sm:$0xff]   ;;  %v6560_v60 = vld [vmem:[%s8711_s3 + $0x174] ss:$8 sps:$4 sm:$0xff]   ;;  %v6558_v43 = vld [vmem:[%s8711_s3 + $0x170] ss:$8 sps:$4 sm:$0xff]  }
 0x436   :  { %v3633_v54 = vsel %vm3632_vm1, %v3631_v61, %v3623_v31  ;;  %4168 = vmatprep.subr.bf16.mxu1 %v6536_v42  ;;  %v6563_v26 = vld [vmem:[%s8711_s3 + $0x184] ss:$8 sps:$4 sm:$0xff]   ;;  %v6561_v12 = vld [vmem:[%s8711_s3 + $0x180] ss:$8 sps:$4 sm:$0xff]   ;;  %v6566_v14 = vld [vmem:[%s8711_s3 + $0x194] ss:$8 sps:$4 sm:$0xff]  }
 0x437   :  { %3635 = vrot.lane.b32.xlu0 %v3633_v54, %s6706_s23  ;;  %v6564_v5 = vld [vmem:[%s8711_s3 + $0x190] ss:$8 sps:$4 sm:$0xff]   ;;  %v6569_v27 = vld [vmem:[%s8711_s3 + $0x1a4] ss:$8 sps:$4 sm:$0xff]   ;;  %v6567_v18 = vld [vmem:[%s8711_s3 + $0x1a0] ss:$8 sps:$4 sm:$0xff]  }
 0x438   :  { %v6572_v20 = vld [vmem:[%s8711_s3 + $0x1b4] ss:$8 sps:$4 sm:$0xff]   ;;  %v6570_v28 = vld [vmem:[%s8711_s3 + $0x1b0] ss:$8 sps:$4 sm:$0xff]   ;;  %v6575_v31 = vld [vmem:[%s8711_s3 + $0x1c4] ss:$8 sps:$4 sm:$0xff]  }
 0x439   :  { %4169 = vmatpush1.bf16.msra.mxu1 %v6534_v47  ;;  %v6573_v44 = vld [vmem:[%s8711_s3 + $0x1c0] ss:$8 sps:$4 sm:$0xff]   ;;  %v6578_v61 = vld [vmem:[%s8711_s3 + $0x1d4] ss:$8 sps:$4 sm:$0xff]   ;;  %v6576_v42 = vld [vmem:[%s8711_s3 + $0x1d0] ss:$8 sps:$4 sm:$0xff]  }
 0x43a   :  { %4181 = vmatprep.subr.bf16.mxu1 %v6539_v8  ;;  %v6581_v54 = vld [vmem:[%s8711_s3 + $0x1e4] ss:$8 sps:$4 sm:$0xff]   ;;  %v6579_v47 = vld [vmem:[%s8711_s3 + $0x1e0] ss:$8 sps:$4 sm:$0xff]   ;;  %v6584_v8 = vld [vmem:[%s8711_s3 + $0x1f4] ss:$8 sps:$4 sm:$0xff]  }
 0x43b   :  { %vm4297_vm7 = vcmask 517120   ;;  %vm4274_vm8 = vcmask 520194   ;;  %vm4266_vm9 = vcmask 518144  }
 0x4a7   :  { %v3714_v1 = vpop.permute.xlu1 %3713 }
 0x4a8   :  { %v3716_v35 = vsel %vm3535_vm2, 0.0, %v3714_v1  ;;  %v6582_v1 = vld [vmem:[%s8711_s3 + $0x1f0] ss:$8 sps:$4 sm:$0xff]   ;;  %s4970_s3 = sshll.u32 %s6707_s2, 4  ;;  %s4971_s3 = int_to_ptr.vmem [resolvable:$true] %s4970_s3 }
 0x4a9   :  { %v3717_v4 = vsel %vm3639_vm4, %v3716_v35, 0.0  ;;  %v3636_v49 = vpop.permute.xlu0 %3635  ;;  %v3806_v35 = vld [vmem:[%s8712_s4] sm:$0x3]  ;;  %s6673_s4 = scalar_lea.vmem %s4971_s3, 32  ;;  %p6678_p1 = scmp.lt.s32.totalorder %s4971_s3, %s4971_s3 }
 0x4aa   :  { %v3719_v33 = vrot.slane %v3717_v4, 7  ;;  %v3638_v21 = vsel %vm3535_vm2, 0.0, %v3636_v49  ;;  %v3811_v4 = vrot.slane %v3806_v35, %v7941_v37  ;;  %vm4295_vm2 = vcmask 523271   ;;  %p6674_p0 = scmp.ne.s32.totalorder %s4971_s3, %s6673_s4  ;;  %p6679_p2 = scmp.lt.s32.totalorder %s6673_s4, %s6673_s4 }
 0x4ab   :  { %v3640_v32 = vsel %vm3639_vm4, %v3638_v21, 0.0 }
 0x4ac   :  { %v3721_v9 = vsel %vm3624_vm13, 0.0, %v3719_v33  ;;  %v3642_v6 = vrot.slane %v3640_v32, 7  ;;  %v3815_v33 = vrot.slane %v3806_v35, %v7944_v46  ;;  %p6680_p3 = por %p6679_p2, %p6678_p1 }
 0x4ad   :  { %v3722_v51 = vsel %vm3645_vm6, %v3721_v9, 0.0 }
 0x4ae   :  { %v3725_v57 = vrot.slane %v3722_v51, 2  ;;  %v3726_v38 = vrot.slane %v3722_v51, 3  ;;  %v3724_v52 = vrot.slane %v3722_v51, 1  ;;  %v3644_v34 = vsel %vm3624_vm13, 0.0, %v3642_v6  ;;  %p6681_p4 = pnand %p6680_p3, %p6674_p0 }
 0x4af   :  { %v3646_v59 = vsel %vm3645_vm6, %v3644_v34, 0.0 }
 0x4b0   :  { %v8368_v2 = vrot.slane %v3725_v57, 3  ;;  %v3727_v13 = vrot.slane %v3724_v52, 3  ;;  %v3729_v48 = vrot.slane %v3726_v38, 3  ;;  %v3648_v22 = vrot.slane %v3646_v59, 1 }
 0x4b1   :  { %v3650_v7 = vrot.slane %v3646_v59, 2  ;;  %v3652_v55 = vrot.slane %v3646_v59, 3  ;;  %v3734_v23 = vsel %vm3632_vm1, %v3646_v59, %v3726_v38 }
 0x4b2   :  { %v3735_v29 = vsel %vm3632_vm1, %v3648_v22, %v3727_v13  ;;  %v3738_v3 = vpack.c.bf16 %v3726_v38, %v3734_v23 }
 0x4b3   :  { %v3737_v45 = vsel %vm3632_vm1, %v3652_v55, %v3729_v48  ;;  %v8375_v0 = vsel %vm3632_vm1, %v3650_v7, %v8368_v2  ;;  %v3739_v25 = vpack.c.bf16 %v3727_v13, %v3735_v29 }
 0x4b4   :  { %v3740_v41 = vpack.c.bf16 %v8368_v2, %v8375_v0  ;;  %v3741_v11 = vpack.c.bf16 %v3729_v48, %v3737_v45 }
 0x4b5   :  { %4170 = vmatprep.mubr.bf16.mxu1 %v3739_v25 }
 0x4b6   :  { %4171 = vmatmul.mubr.bf16.vlgmr.msra.gmra.mrb[84].mxu1 %v3738_v3 }
 0x4b7   :  { %4182 = vmatpush1.bf16.msra.mxu1 %v6537_v63  ;;  %4213 = vmatprep.mubr.bf16.mxu1 %v3741_v11  ;;  %v6587_v11 = vld [vmem:[%s8713_s5 + $0x4] ss:$16 sps:$4 sm:$0xff]  }
 0x4b8   :  { %4183 = vmatprep.subr.bf16.mxu1 %v6542_v10  ;;  %v6585_v10 = vld [vmem:[%s8713_s5] ss:$16 sps:$4 sm:$0xff]  }
 0x4bb   :  { %4184 = vmatpush1.bf16.msra.mxu1 %v6540_v24  ;;  %v6590_v24 = vld [vmem:[%s8713_s5 + $0x24] ss:$16 sps:$4 sm:$0xff]  }
 0x4bc   :  { %4185 = vmatprep.subr.bf16.mxu1 %v6545_v36  ;;  %v6588_v36 = vld [vmem:[%s8713_s5 + $0x20] ss:$16 sps:$4 sm:$0xff]  }
 0x4bf   :  { %4186 = vmatpush1.bf16.msra.mxu1 %v6543_v15  ;;  %v6593_v15 = vld [vmem:[%s8713_s5 + $0x44] ss:$16 sps:$4 sm:$0xff]  }
 0x4c0   :  { %4187 = vmatprep.subr.bf16.mxu1 %v6548_v17  ;;  %v6591_v17 = vld [vmem:[%s8713_s5 + $0x40] ss:$16 sps:$4 sm:$0xff]  }
 0x4c3   :  { %4188 = vmatpush1.bf16.msra.mxu1 %v6546_v53  ;;  %v6596_v53 = vld [vmem:[%s8713_s5 + $0x64] ss:$16 sps:$4 sm:$0xff]  }
 0x4c4   :  { %4189 = vmatprep.subr.bf16.mxu1 %v6551_v40  ;;  %v6594_v40 = vld [vmem:[%s8713_s5 + $0x60] ss:$16 sps:$4 sm:$0xff]  }
 0x4c7   :  { %4190 = vmatpush1.bf16.msra.mxu1 %v6549_v19  ;;  %v6599_v19 = vld [vmem:[%s8713_s5 + $0x84] ss:$16 sps:$4 sm:$0xff]  }
 0x4c8   :  { %4191 = vmatprep.subr.bf16.mxu1 %v6554_v30  ;;  %v6597_v30 = vld [vmem:[%s8713_s5 + $0x80] ss:$16 sps:$4 sm:$0xff]  }
 0x4cb   :  { %4192 = vmatpush1.bf16.msra.mxu1 %v6552_v39  ;;  %v6602_v39 = vld [vmem:[%s8713_s5 + $0xa4] ss:$16 sps:$4 sm:$0xff]  }
 0x4cc   :  { %4193 = vmatprep.subr.bf16.mxu1 %v6557_v56  ;;  %v6600_v56 = vld [vmem:[%s8713_s5 + $0xa0] ss:$16 sps:$4 sm:$0xff]  }
 0x4cf   :  { %4194 = vmatpush1.bf16.msra.mxu1 %v6555_v16  ;;  %v6605_v16 = vld [vmem:[%s8713_s5 + $0xc4] ss:$16 sps:$4 sm:$0xff]  }
 0x4d0   :  { %4195 = vmatprep.subr.bf16.mxu1 %v6560_v60  ;;  %v6603_v60 = vld [vmem:[%s8713_s5 + $0xc0] ss:$16 sps:$4 sm:$0xff]  }
 0x4d3   :  { %4196 = vmatpush1.bf16.msra.mxu1 %v6558_v43 }
 0x4d4   :  { %4197 = vmatprep.subr.bf16.mxu1 %v6563_v26 }
 0x4d7   :  { %4198 = vmatpush1.bf16.msra.mxu1 %v6561_v12 }
 0x4d8   :  { %4199 = vmatprep.subr.bf16.mxu1 %v6566_v14 }
 0x4db   :  { %4200 = vmatpush1.bf16.msra.mxu1 %v6564_v5 }
 0x4dc   :  { %4201 = vmatprep.subr.bf16.mxu1 %v6569_v27 }
 0x4df   :  { %4202 = vmatpush1.bf16.msra.mxu1 %v6567_v18 }
 0x4e0   :  { %4203 = vmatprep.subr.bf16.mxu1 %v6572_v20 }
 0x4e3   :  { %4204 = vmatpush1.bf16.msra.mxu1 %v6570_v28 }
 0x4e4   :  { %4205 = vmatprep.subr.bf16.mxu1 %v6575_v31 }
 0x4e7   :  { %4206 = vmatpush1.bf16.msra.mxu1 %v6573_v44 }
 0x4e8   :  { %4207 = vmatprep.subr.bf16.mxu1 %v6578_v61 }
 0x4eb   :  { %4208 = vmatpush1.bf16.msra.mxu1 %v6576_v42 }
 0x4ec   :  { %4209 = vmatprep.subr.bf16.mxu1 %v6581_v54 }
 0x4ef   :  { %4210 = vmatpush1.bf16.msra.mxu1 %v6579_v47 }
 0x4f0   :  { %4211 = vmatprep.subr.bf16.mxu1 %v6584_v8 }
 0x4f3   :  { %4212 = vmatpush1.bf16.msra.mxu1 %v6582_v1 }
 0x4f4   :  { %4530 = vmatprep.subr.bf16.mxu1 %v6587_v11 }
 0x4f6   :  { %4214 = vmatmul.mubr.bf16.vlgmr.msra.gmra.mrb[84].mxu1 %v3740_v41 }
 0x4f7   :  { %4562 = vmatprep.mubr.bf16.mxu1 %v6699_v50  ;;  %4531 = vmatpush1.bf16.msra.mxu1 %v6585_v10 }
 0x4f8   :  { %4532 = vmatprep.subr.bf16.mxu1 %v6590_v24 }
 0x4fb   :  { %4533 = vmatpush1.bf16.msra.mxu1 %v6588_v36 }
 0x4fc   :  { %4534 = vmatprep.subr.bf16.mxu1 %v6593_v15 }
 0x4ff   :  { %4535 = vmatpush1.bf16.msra.mxu1 %v6591_v17 }
 0x500   :  { %4536 = vmatprep.subr.bf16.mxu1 %v6596_v53 }
 0x503   :  { %4537 = vmatpush1.bf16.msra.mxu1 %v6594_v40 }
 0x504   :  { %4538 = vmatprep.subr.bf16.mxu1 %v6599_v19 }
 0x507   :  { %4539 = vmatpush1.bf16.msra.mxu1 %v6597_v30 }
 0x508   :  { %4540 = vmatprep.subr.bf16.mxu1 %v6602_v39 }
 0x50b   :  { %4541 = vmatpush1.bf16.msra.mxu1 %v6600_v56 }
 0x50c   :  { %4542 = vmatprep.subr.bf16.mxu1 %v6605_v16 }
 0x50f   :  { %4543 = vmatpush1.bf16.msra.mxu1 %v6603_v60 }
 0x5c9   :  { %v4215_v49 = vpop.f32.mrb[84].mxu1 }
 0x5ca   :  { %v5749_v21 = vadd.f32 %v4215_v49, %v3811_v4  ;;  %v4217_v9 = vpop.f32.mrb[85].mxu1  ;;  %v6608_v49 = vld [vmem:[%s8713_s5 + $0xe4] ss:$16 sps:$4 sm:$0xff]  }
 0x5cb   :  { %v5750_v32 = vadd.f32 %v4217_v9, %v3815_v33  ;;  %v4219_v51 = vpop.f32.mrb[86].mxu1  ;;  %v6611_v9 = vld [vmem:[%s8713_s5 + $0xc] ss:$16 sps:$4 sm:$0xff]   ;;  %4544 = vmatprep.subr.bf16.mxu1 %v6608_v49  ;;  %v6649_v49 = vld [vmem:[%s8715_s7 + $0xc0] sm:$0xff]  }
 0x5cc   :  { %v5751_v6 = vadd.f32 %v4219_v51, %v3811_v4  ;;  %v4221_v57 = vpop.f32.mrb[87].mxu1  ;;  %v4224_v52 = vmax.f32 %v5749_v21, 0.0 }
 0x5cd   :  { %v5752_v38 = vadd.f32 %v4221_v57, %v3815_v33  ;;  %v4225_v2 = vmax.f32 %v5750_v32, 0.0  ;;  %v6606_v33 = vld [vmem:[%s8713_s5 + $0xe0] ss:$16 sps:$4 sm:$0xff]  }
 0x5ce   :  { %v4226_v34 = vmax.f32 %v5751_v6, 0.0  ;;  %4545 = vmatpush1.bf16.msra.mxu1 %v6606_v33  ;;  %v6647_v33 = vld [vmem:[%s8715_s7 + $0x78] sm:$0xff]  }
 0x5cf   :  { %v4227_v59 = vmax.f32 %v5752_v38, 0.0  ;;  %4571 = vmatprep.subr.bf16.mxu1 %v6611_v9  ;;  %v6650_v9 = vld [vmem:[%s8715_s7 + $0x80] sm:$0xff]  }
 0x5d0   :  { %v6010_v13 = vpack.i.bf16 %v4226_v34, %v4224_v52 }
 0x5d1   :  { %v6015_v48 = vpack.i.bf16 %v4227_v59, %v4225_v2  ;;  %v6634_v2 = vld [vmem:[%s8715_s7] sm:$0xff]   ;;  %v6635_v59 = vld [vmem:[%s8715_s7 + $0x48] sm:$0xff]  }
 0x5d2   :  { %6011 = vrot.lane.b32.xlu1 %v6010_v13, %s6701_s1 }
 0x5d3   :  { %6016 = vrot.lane.b32.xlu0 %v6015_v48, %s6702_s27  ;;  %v6637_v48 = vld [vmem:[%s8715_s7 + $0x50] sm:$0xff]  }
 0x5d6   :  { %6021 = vrot.lane.b32.xlu1 %v6010_v13, %s6702_s27  ;;  %v6636_v13 = vld [vmem:[%s8715_s7 + $0x8] sm:$0xff]  }
 0x644   :  { %v6012_v22 = vpop.permute.xlu1 %6011 }
 0x645   :  { %v6014_v7 = vunpack.i.h.bf16 %v6012_v22  ;;  %v6013_v55 = vunpack.i.l.bf16 %v6012_v22  ;;  %v6017_v23 = vpop.permute.xlu0 %6016  ;;  %v6638_v22 = vld [vmem:[%s8715_s7 + $0x10] sm:$0xff]  }
 0x646   :  { %v6019_v29 = vunpack.i.h.bf16 %v6017_v23  ;;  %v6018_v45 = vunpack.i.l.bf16 %v6017_v23  ;;  %v6641_v23 = vld [vmem:[%s8715_s7 + $0x60] sm:$0xff]  }
 0x647   :  { %v4237_v0 = vmax.f32 %v4226_v34, %v6014_v7  ;;  %v4236_v25 = vmax.f32 %v4224_v52, %v6013_v55  ;;  %v6633_v34 = vld [vmem:[%s8715_s7 + $0x40] sm:$0xff]   ;;  %v6639_v7 = vld [vmem:[%s8715_s7 + $0x58] sm:$0xff]  }
 0x648   :  { %v6022_v43 = vpop.permute.xlu1 %6021  ;;  %5671 = vmatprep.subr.bf16.mxu0 %v6633_v34  ;;  %v6640_v55 = vld [vmem:[%s8715_s7 + $0x18] sm:$0xff]   ;;  %v6657_v34 = vld [vmem:[%s8715_s7 + $0xe0] sm:$0xff]  }
 0x649   :  { %v4254_v63 = vmax.f32 %v4236_v25, %v6018_v45  ;;  %v4255_v41 = vmax.f32 %v4237_v0, %v6019_v29  ;;  %v6024_v26 = vunpack.i.h.bf16 %v6022_v43  ;;  %v6023_v12 = vunpack.i.l.bf16 %v6022_v43  ;;  %5672 = vmatpush3.bf16.msra.mxu0 %v6634_v2  ;;  %v6642_v29 = vld [vmem:[%s8715_s7 + $0x20] sm:$0xff]   ;;  %v6643_v45 = vld [vmem:[%s8715_s7 + $0x68] sm:$0xff]  }
 0x64a   :  { %5673 = vmatprep.subr.bf16.mxu0 %v6635_v59  ;;  %v6658_v2 = vld [vmem:[%s8715_s7 + $0xa0] sm:$0xff]   ;;  %v6659_v59 = vld [vmem:[%s8715_s7 + $0xe8] sm:$0xff]  }
 0x64b   :  { %v6025_v3 = vpack.i.bf16 %v4255_v41, %v4254_v63  ;;  %v4244_v5 = vmax.f32 %v4236_v25, %v6023_v12  ;;  %v4245_v27 = vmax.f32 %v4237_v0, %v6024_v26  ;;  %v6644_v0 = vld [vmem:[%s8715_s7 + $0x28] sm:$0xff]  }
 0x64c   :  { %v6609_v12 = vld [vmem:[%s8713_s5 + $0x8] ss:$16 sps:$4 sm:$0xff]  }
 0x64d   :  { %6026 = vrot.lane.b32.xlu0 %v6025_v3, %s6701_s1  ;;  %5674 = vmatpush3.bf16.msra.mxu0 %v6636_v13  ;;  %v6660_v13 = vld [vmem:[%s8715_s7 + $0xa8] sm:$0xff]  }
 0x64e   :  { %5675 = vmatprep.subr.bf16.mxu0 %v6637_v48  ;;  %v6661_v48 = vld [vmem:[%s8715_s7 + $0xf0] sm:$0xff]  }
 0x651   :  { %5676 = vmatpush3.bf16.msra.mxu0 %v6638_v22  ;;  %v6662_v22 = vld [vmem:[%s8715_s7 + $0xb0] sm:$0xff]  }
 0x652   :  { %5677 = vmatprep.subr.bf16.mxu0 %v6639_v7  ;;  %v6663_v7 = vld [vmem:[%s8715_s7 + $0xf8] sm:$0xff]  }
 0x655   :  { %5678 = vmatpush3.bf16.msra.mxu0 %v6640_v55  ;;  %v6664_v55 = vld [vmem:[%s8715_s7 + $0xb8] sm:$0xff]  }
 0x656   :  { %5679 = vmatprep.subr.bf16.mxu0 %v6641_v23  ;;  %v4348_v23 = vld [vmem:[%s8714_s6] sm:$0xf] }
 0x659   :  { %5680 = vmatpush3.bf16.msra.mxu0 %v6642_v29  ;;  %v4353_v29 = vrot.slane %v4348_v23, %v7941_v37 }
 0x65a   :  { %5681 = vmatprep.subr.bf16.mxu0 %v6643_v45  ;;  %v4357_v45 = vrot.slane %v4348_v23, %v7944_v46 }
 0x65d   :  { %5682 = vmatpush3.bf16.msra.mxu0 %v6644_v0 }
 0x6bf   :  { %v6027_v14 = vpop.permute.xlu0 %6026 }
 0x6c0   :  { %v6029_v18 = vunpack.i.h.bf16 %v6027_v14  ;;  %v6028_v20 = vunpack.i.l.bf16 %v6027_v14 }
 0x6c2   :  { %v4265_v28 = vsel %vm3541_vm3, %v4245_v27, %v6029_v18  ;;  %v4264_v31 = vsel %vm3541_vm3, %v4244_v5, %v6028_v20  ;;  %vm4287_vm3 = vcmask 523269   ;;  %v6614_v5 = vld [vmem:[%s8713_s5 + $0x2c] ss:$16 sps:$4 sm:$0xff]   ;;  %v6612_v27 = vld [vmem:[%s8713_s5 + $0x28] ss:$16 sps:$4 sm:$0xff]  }
 0x6c3   :  { %v4298_v44 = vsel %vm4297_vm7, %v4265_v28, -inf  ;;  %v4296_v61 = vsel %vm4295_vm2, %v4264_v31, -inf  ;;  %v4275_v54 = vsel %vm4274_vm8, %v4264_v31, -inf  ;;  %v4288_v25 = vsel %vm4287_vm3, %v4264_v31, -inf  ;;  %v6617_v18 = vld [vmem:[%s8713_s5 + $0x4c] ss:$16 sps:$4 sm:$0xff]  }
 0x6c4   :  { %v4299_v42 = vmax.f32 %v4296_v61, %v4298_v44  ;;  %v4276_v47 = vrot.slane %v4275_v54, 4  ;;  %v4267_v63 = vsel %vm4266_vm9, %v4264_v31, -inf  ;;  %v4289_v41 = vrot.slane %v4288_v25, 4  ;;  %v6615_v20 = vld [vmem:[%s8713_s5 + $0x48] ss:$16 sps:$4 sm:$0xff]  }
 0x6c5   :  { %v4268_v3 = vrot.slane %v4267_v63, 4  ;;  %v6620_v28 = vld [vmem:[%s8713_s5 + $0x6c] ss:$16 sps:$4 sm:$0xff]   ;;  %v6621_v44 = vld [vmem:[%s8713_s5 + $0x88] ss:$16 sps:$4 sm:$0xff]  }
 0x6c6   :  { %v4300_v8 = vrot.slane %v4299_v42, 4  ;;  %v4277_v1 = vmax.f32 %v4275_v54, %v4276_v47  ;;  %v4290_v10 = vmax.f32 %v4288_v25, %v4289_v41  ;;  %v6623_v31 = vld [vmem:[%s8713_s5 + $0x8c] ss:$16 sps:$4 sm:$0xff]   ;;  %v6627_v47 = vld [vmem:[%s8713_s5 + $0xc8] ss:$16 sps:$4 sm:$0xff]  }
 0x6c7   :  { %v4269_v11 = vmax.f32 %v4267_v63, %v4268_v3  ;;  %v6626_v61 = vld [vmem:[%s8713_s5 + $0xac] ss:$16 sps:$4 sm:$0xff]  }
 0x6c8   :  { %v4301_v35 = vmax.f32 %v4299_v42, %v4300_v8  ;;  %v4278_v4 = vrot.slane %v4277_v1, 2  ;;  %v4291_v24 = vrot.slane %v4290_v10, 2  ;;  %v6624_v42 = vld [vmem:[%s8713_s5 + $0xa8] ss:$16 sps:$4 sm:$0xff]   ;;  %v6629_v54 = vld [vmem:[%s8713_s5 + $0xcc] ss:$16 sps:$4 sm:$0xff]  }
 0x6c9   :  { %v4270_v36 = vrot.slane %v4269_v11, 2  ;;  %v6632_v8 = vld [vmem:[%s8713_s5 + $0xec] ss:$16 sps:$4 sm:$0xff]  }
 0x6ca   :  { %v4302_v21 = vrot.slane %v4301_v35, 2  ;;  %v4279_v32 = vmax.f32 %v4277_v1, %v4278_v4  ;;  %v4292_v15 = vmax.f32 %v4290_v10, %v4291_v24  ;;  %v6630_v1 = vld [vmem:[%s8713_s5 + $0xe8] ss:$16 sps:$4 sm:$0xff]   ;;  %v6646_v4 = vld [vmem:[%s8715_s7 + $0x30] sm:$0xff]  }
 0x6cb   :  { %v4271_v17 = vmax.f32 %v4269_v11, %v4270_v36 }
 0x6cc   :  { %v4303_v51 = vmax.f32 %v4301_v35, %v4302_v21  ;;  %v4280_v6 = vrot.slane %v4279_v32, 1  ;;  %v4293_v53 = vrot.slane %v4292_v15, 1  ;;  %v6645_v35 = vld [vmem:[%s8715_s7 + $0x70] sm:$0xff]   ;;  %v6648_v21 = vld [vmem:[%s8715_s7 + $0x38] sm:$0xff]  }
 0x6cd   :  { %v4272_v40 = vrot.slane %v4271_v17, 1  ;;  %5683 = vmatprep.subr.bf16.mxu0 %v6645_v35 }
 0x6ce   :  { %v4304_v57 = vrot.slane %v4303_v51, 1  ;;  %v4281_v38 = vmax.f32 %v4279_v32, %v4280_v6  ;;  %v4294_v19 = vmax.f32 %v4292_v15, %v4293_v53  ;;  %5684 = vmatpush3.bf16.msra.mxu0 %v6646_v4  ;;  %v6651_v32 = vld [vmem:[%s8715_s7 + $0xc8] sm:$0xff]   ;;  %v6653_v6 = vld [vmem:[%s8715_s7 + $0xd0] sm:$0xff]   ;;  %v4361_v53 = vrot.slane %v4348_v23, %v489_v62 }
 0x6cf   :  { %v4273_v56 = vmax.f32 %v4271_v17, %v4272_v40  ;;  %5685 = vmatprep.subr.bf16.mxu0 %v6647_v33  ;;  %v4364_v17 = vsub.s32 3, %v7697_v58  ;;  %v5425_v58 = vld [vmem:[%s8716_s8] ss:$0 sm:$0xff] }
 0x6d0   :  { %v4305_v52 = vmax.f32 %v4303_v51, %v4304_v57  ;;  %4283 = vrot.lane.b32.xlu0 %v4281_v38, %s6702_s27  ;;  %v6652_v51 = vld [vmem:[%s8715_s7 + $0x88] sm:$0xff]   ;;  %v6654_v57 = vld [vmem:[%s8715_s7 + $0x90] sm:$0xff]   ;;  %v6655_v38 = vld [vmem:[%s8715_s7 + $0xd8] sm:$0xff]  }
 0x6d1   :  { %v4365_v37 = vrot.slane %v4348_v23, %v4364_v17 }
 0x6d2   :  { %4307 = vrot.lane.b32.xlu1 %v4305_v52, %s6702_s27  ;;  %5686 = vmatpush3.bf16.msra.mxu0 %v6648_v21  ;;  %v6656_v52 = vld [vmem:[%s8715_s7 + $0x98] sm:$0xff]  }
 0x742   :  { %v4284_v30 = vpop.permute.xlu0 %4283 }
 0x743   :  { %v4286_v43 = vsel %vm3553_vm5, %v4273_v56, %v4284_v30 }
 0x744   :  { %v4308_v39 = vpop.permute.xlu1 %4307 }
 0x745   :  { %v4310_v16 = vsel %vm3553_vm5, %v4294_v19, %v4308_v39 }
 0x746   :  { %v4312_v60 = vrot.slane %v4310_v16, 7 }
 0x748   :  { %v4314_v26 = vsel %vm3624_vm13, %v4286_v43, %v4312_v60 }
 0x749   :  { %v4315_v14 = vpack.c.bf16 %v4314_v26, %v4314_v26 }
 0x74b   :  { %4563 = vmatmul.mubr.bf16.vlgmr.msra.gmra.mrb[88].mxu1 %v4315_v14 }
 0x74c   :  { %4572 = vmatpush1.bf16.msra.mxu1 %v6609_v12  ;;  %4603 = vmatprep.mubr.bf16.mxu1 %v6699_v50  ;;  %v6618_v50 = vld [vmem:[%s8713_s5 + $0x68] ss:$16 sps:$4 sm:$0xff]  }
 0x74d   :  { %4573 = vmatprep.subr.bf16.mxu1 %v6614_v5 }
 0x750   :  { %4574 = vmatpush1.bf16.msra.mxu1 %v6612_v27 }
 0x751   :  { %4575 = vmatprep.subr.bf16.mxu1 %v6617_v18 }
 0x754   :  { %4576 = vmatpush1.bf16.msra.mxu1 %v6615_v20 }
 0x755   :  { %4577 = vmatprep.subr.bf16.mxu1 %v6620_v28 }
 0x758   :  { %4578 = vmatpush1.bf16.msra.mxu1 %v6618_v50 }
 0x759   :  { %4579 = vmatprep.subr.bf16.mxu1 %v6623_v31 }
 0x75c   :  { %4580 = vmatpush1.bf16.msra.mxu1 %v6621_v44 }
 0x75d   :  { %4581 = vmatprep.subr.bf16.mxu1 %v6626_v61 }
 0x760   :  { %4582 = vmatpush1.bf16.msra.mxu1 %v6624_v42 }
 0x761   :  { %4583 = vmatprep.subr.bf16.mxu1 %v6629_v54 }
 0x764   :  { %4584 = vmatpush1.bf16.msra.mxu1 %v6627_v47 }
 0x765   :  { %4585 = vmatprep.subr.bf16.mxu1 %v6632_v8 }
 0x768   :  { %4586 = vmatpush1.bf16.msra.mxu1 %v6630_v1 }
 0x769   :  { %5693 = vmatprep.subr.bf16.mxu1 %v6649_v49 }
 0x76b   :  { %4604 = vmatmul.mubr.bf16.vlgmr.msra.gmra.mrb[92].mxu1 %v4315_v14 }
 0x76c   :  { %5694 = vmatpush3.bf16.msra.mxu1 %v6650_v9 }
 0x76d   :  { %5695 = vmatprep.subr.bf16.mxu1 %v6651_v32 }
 0x770   :  { %5696 = vmatpush3.bf16.msra.mxu1 %v6652_v51 }
 0x771   :  { %5697 = vmatprep.subr.bf16.mxu1 %v6653_v6 }
 0x774   :  { %5698 = vmatpush3.bf16.msra.mxu1 %v6654_v57 }
 0x775   :  { %5699 = vmatprep.subr.bf16.mxu1 %v6655_v38 }
 0x778   :  { %5700 = vmatpush3.bf16.msra.mxu1 %v6656_v52 }
 0x779   :  { %5701 = vmatprep.subr.bf16.mxu1 %v6657_v34 }
 0x77c   :  { %5702 = vmatpush3.bf16.msra.mxu1 %v6658_v2 }
 0x77d   :  { %5703 = vmatprep.subr.bf16.mxu1 %v6659_v59 }
 0x780   :  { %5704 = vmatpush3.bf16.msra.mxu1 %v6660_v13 }
 0x781   :  { %5705 = vmatprep.subr.bf16.mxu1 %v6661_v48 }
 0x784   :  { %5706 = vmatpush3.bf16.msra.mxu1 %v6662_v22 }
 0x785   :  { %5707 = vmatprep.subr.bf16.mxu1 %v6663_v7 }
 0x788   :  { %5708 = vmatpush3.bf16.msra.mxu1 %v6664_v55 }
 0x81e   :  { %v4564_v0 = vpop.f32.mrb[88].mxu1 }
 0x81f   :  { %v4565_v25 = vadd.f32 %v4564_v0, %v4353_v29  ;;  %v4566_v63 = vpop.f32.mrb[89].mxu1 }
 0x820   :  { %v4567_v41 = vadd.f32 %v4566_v63, %v4357_v45  ;;  %v4568_v3 = vpop.f32.mrb[90].mxu1 }
 0x821   :  { %v4612_v10 = vmax.f32 %v4565_v25, 0.0  ;;  %v4569_v11 = vpop.f32.mrb[91].mxu1 }
 0x822   :  { %v4613_v24 = vmax.f32 %v4567_v41, 0.0 }
 0x823   :  { %v4616_v15 = vpack.c.bf16 %v4612_v10, %v4612_v10 }
 0x824   :  { %v4617_v36 = vpack.c.bf16 %v4613_v24, %v4613_v24 }
 0x826   :  { %4915 = vmatprep.mubr.bf16.mxu0 %v4617_v36 }
 0x827   :  { %4916 = vmatmul.mubr.bf16.vlgmr.msra.gmra.mrb[12].mxu0 %v4616_v15 }
 0x83e   :  { %v4605_v40 = vpop.f32.mrb[92].mxu1 }
 0x83f   :  { %v4606_v46 = vadd.f32 %v4605_v40, %v4361_v53  ;;  %v4607_v19 = vpop.f32.mrb[93].mxu1 }
 0x840   :  { %v4608_v30 = vadd.f32 %v4607_v19, %v4365_v37  ;;  %v4609_v39 = vpop.f32.mrb[94].mxu1 }
 0x841   :  { %v4614_v56 = vmax.f32 %v4606_v46, 0.0  ;;  %v4610_v16 = vpop.f32.mrb[95].mxu1 }
 0x842   :  { %v4615_v60 = vmax.f32 %v4608_v30, 0.0 }
 0x843   :  { %v4618_v26 = vpack.c.bf16 %v4614_v56, %v4614_v56 }
 0x844   :  { %v4619_v43 = vpack.c.bf16 %v4615_v60, %v4615_v60 }
 0x846   :  { %4955 = vmatprep.mubr.bf16.mxu1 %v4619_v43 }
 0x847   :  { %4956 = vmatmul.mubr.bf16.vlgmr.msra.gmra.mrb[96].mxu1 %v4618_v26 }
 0x8fa   :  { %v5687_v12 = vpop.f32.mrb[12].mxu0 }
 0x8fb   :  { %v5688_v14 = vpop.f32.mrb[13].mxu0 }
 0x8fc   :  { %v5689_v5 = vadd.f32 %v5688_v14, %v5687_v12  ;;  %v5690_v27 = vpop.f32.mrb[14].mxu0 }
 0x8fd   :  { %v5691_v18 = vpop.f32.mrb[15].mxu0 }
 0x8fe   :  { %v4918_v28 = vadd.f32 %v5689_v5, %v5425_v58 }
 0x91a   :  { %v5709_v62 = vpop.f32.mrb[96].mxu1 }
 0x91b   :  { %v5710_v20 = vpop.f32.mrb[97].mxu1 }
 0x91c   :  { %v5711_v50 = vadd.f32 %v5710_v20, %v5709_v62  ;;  %v5712_v31 = vpop.f32.mrb[98].mxu1 }
 0x91d   :  { %v5713_v44 = vpop.f32.mrb[99].mxu1 }
 0x91e   :  { %v4958_v61 = vadd.f32 %v5711_v50, %v4918_v28 }
 0x920   :  { %4963 = vst [vmem:[#allocation2] sm:$0x3] %v4958_v61 }
 0x921   :  { %6684 = shalt.err (!%p6681_p4)
}
 0x922   :  { %s6685_s30 = scalar_lea.hbm %s8717_s9, 32 }
 0x923   :  { %p6686_p5 = scmp.ne.s32.totalorder %s8717_s9, %s6685_s30  ;;  %p6689_p6 = scmp.lt.u32.totalorder %s6685_s30, %s8717_s9 }
 0x925   :  { %p6691_p7 = pnand %p6689_p6, %p6686_p5 }
 0x927   :  { %6694 = shalt.err (!%p6691_p7)
}
 0x928   :  { %4973 = dma.vmem_to_hbm [thread:$0]  %s4971_s3, 32, %s8717_s9, [#allocation3]  }
 0x929   :  { %6695 = dma.done.wait [#allocation3], 32  }
 0x92a   :  { %6696 = vsyncadd [#allocation3], 4294967264 }
 0x92b   :  { %4977 = vsyncpa [#allocation3], 1 }

</bundles_post_ra>
